<compile_context>
chip_gen: v7x
topology: tpu7x:2x2x1
jax: 0.10.0
libtpu: 0.0.40
codegen_flags: <defaults>
</compile_context>

<pallas_src>
import functools

import jax
import jax.numpy as jnp
from jax.experimental import pallas as pl
from jax.experimental.pallas import tpu as pltpu


# ----------------------------------------------------------------------------
# Fused Pallas kernel: conv1+ReLU+pool1 + conv2+ReLU+pool2 + FC1+ReLU + FC2
# ----------------------------------------------------------------------------
def _waternet_kernel(x_ref, w1_ref, b1_ref, w2_ref, b2_ref,
                     w3_ref, b3_ref, w4_ref, b4_ref, o_ref, *, bt, hh, ww):
    """One batch tile of `bt` images.

    x_ref : (hh*ww*bt, Cin)  pixel-major rows: row = (h*ww + w)*bt + b_local
    w1_ref: (9, Cin, 64)     conv1 taps, b1_ref: (1, 64)
    w2_ref: (9, 64, 128)     conv2 taps, b2_ref: (1, 128)
    w3_ref: (128, 1024)      FC1 (in,out), b3_ref: (1, 1024)
    w4_ref: (1024, 128)      FC2 padded to 128 lanes, b4_ref: (1, 128)
    o_ref : (bt, 128)        padded logits for this batch tile
    """
    hw = hh * ww
    xs = x_ref[...]                       # (hw*bt, Cin)  whole tile in vregs/VMEM
    b1 = b1_ref[...]                      # (1, 64)

    # ---- Conv1 (3x3, pad=1) + ReLU -------------------------------------
    # 9 whole-slab tap matmuls on the MXU; each tap's result is scattered
    # (static row slices, multiples of bt=8 sublanes) into the per-output-pixel
    # accumulators.  No im2col materialization anywhere.
    acc1 = [None] * hw
    for kh in range(3):
        for kw in range(3):
            tap = jnp.dot(xs, w1_ref[kh * 3 + kw],
                          preferred_element_type=jnp.float32)  # (hw*bt, 64)
            for oh in range(hh):
                for ow in range(ww):
                    ih, iw = oh + kh - 1, ow + kw - 1
                    if 0 <= ih < hh and 0 <= iw < ww:          # zero padding
                        p = ih * ww + iw
                        o = oh * ww + ow
                        t = tap[p * bt:(p + 1) * bt, :]
                        acc1[o] = t if acc1[o] is None else acc1[o] + t
    y1 = [jnp.maximum(a + b1, 0.0) for a in acc1]              # hw x (bt, 64)

    # ---- MaxPool2d(2) fused: 4-way max over the 2x2 window corners ------
    hp, wp = hh // 2, ww // 2
    p1 = []
    for ph in range(hp):
        for pw in range(wp):
            c00 = y1[(2 * ph) * ww + 2 * pw]
            c01 = y1[(2 * ph) * ww + 2 * pw + 1]
            c10 = y1[(2 * ph + 1) * ww + 2 * pw]
            c11 = y1[(2 * ph + 1) * ww + 2 * pw + 1]
            p1.append(jnp.maximum(jnp.maximum(c00, c01),
                                  jnp.maximum(c10, c11)))      # (bt, 64)

    # ---- Conv2 (3x3, pad=1 on hp x wp) + ReLU + MaxPool2d(2) fused ------
    # For the 2x2 pooled map every input pixel lies in every output pixel's
    # 3x3 window; the pool over the 2x2 conv output reduces to an elementwise
    # max of the per-output-pixel results -> feat is the flattened (bt, 128).
    b2 = b2_ref[...]                      # (1, 128)
    feat = None
    for oh in range(hp):
        for ow in range(wp):
            acc = None
            for ih in range(hp):
                for iw in range(wp):
                    kh, kw = ih - oh + 1, iw - ow + 1
                    if 0 <= kh < 3 and 0 <= kw < 3:
                        t = jnp.dot(p1[ih * wp + iw], w2_ref[kh * 3 + kw],
                                    preferred_element_type=jnp.float32)
                        acc = t if acc is None else acc + t
            pix = jnp.maximum(acc + b2, 0.0)                   # (bt, 128)
            feat = pix if feat is None else jnp.maximum(feat, pix)

    # ---- Linear(128,1024)+ReLU and Linear(1024,classes->128) back-to-back ---
    hid = jnp.maximum(
        jnp.dot(feat, w3_ref[...], preferred_element_type=jnp.float32)
        + b3_ref[...], 0.0)                                    # (bt, 1024)
    out = jnp.dot(hid, w4_ref[...], preferred_element_type=jnp.float32) \
        + b4_ref[...]                                          # (bt, 128) lane-dense
    o_ref[...] = out.astype(o_ref.dtype)


# ----------------------------------------------------------------------------
# Wrapper: layout glue + single pallas_call
# ----------------------------------------------------------------------------
def waternet_forward(x_nchw, params, *, classes):
    """x_nchw: (B, Cin, 4, 4) float32 -> (B, classes) float32."""
    B, Cin, H, W = x_nchw.shape
    assert H == 4 and W == 4, "WaterNet's 1*1*128 regressor implies 4x4 input"
    BT = 8                                   # batch tile = 8 sublanes (f32)
    nb = (B + BT - 1) // BT
    Bpad = nb * BT
    HW = H * W

    # NCHW -> NHWC, pad batch to a multiple of 8, pixel-major rows per tile:
    # row (within tile) = (h*W + w)*BT + b_local, so per-pixel row groups are
    # contiguous, 8-sublane-aligned slices inside the kernel.
    x = jnp.transpose(x_nchw, (0, 2, 3, 1)).astype(jnp.float32)
    x = jnp.pad(x, ((0, Bpad - B), (0, 0), (0, 0), (0, 0)))
    x = x.reshape(nb, BT, HW, Cin)
    x = jnp.transpose(x, (0, 2, 1, 3)).reshape(nb * HW * BT, Cin)

    w1, b1 = params["w1"], params["b1"]
    w2, b2 = params["w2"], params["b2"]
    w3, b3 = params["w3"], params["b3"]
    w4p, b4p = params["w4p"], params["b4p"]
    NPAD = w4p.shape[1]                      # 128 (lane-dense padded classes)

    kernel = functools.partial(_waternet_kernel, bt=BT, hh=H, ww=W)

    def full_spec(arr):                      # whole array resident in VMEM
        nd = arr.ndim
        return pl.BlockSpec(arr.shape, lambda *_: (0,) * nd)

    out = pl.pallas_call(
        kernel,
        out_shape=jax.ShapeDtypeStruct((Bpad, NPAD), jnp.float32),
        grid=(nb,),
        in_specs=[
            pl.BlockSpec((HW * BT, Cin), lambda i: (i, 0)),     # per-tile input
            full_spec(w1), full_spec(b1),
            full_spec(w2), full_spec(b2),
            full_spec(w3), full_spec(b3),
            full_spec(w4p), full_spec(b4p),
        ],
        out_specs=pl.BlockSpec((BT, NPAD), lambda i: (i, 0)),
        compiler_params=pltpu.CompilerParams(
            dimension_semantics=("parallel",),                  # megacore / v7x
        ),
    )(x, w1, b1, w2, b2, w3, b3, w4p, b4p)

    return out[:B, :classes]


# ----------------------------------------------------------------------------
# Parameters (layouts pre-arranged for the kernel)
# ----------------------------------------------------------------------------
def init_params(key, in_channels, classes):
    assert classes <= 128
    k1, k2, k3, k4 = jax.random.split(key, 4)
    scale = 0.05
    # Conv weights: (9, Cin, Cout), tap index kh*3+kw (== PyTorch OIHW with the
    # per-tap (Cout, Cin) slice transposed).
    w1 = jax.random.normal(k1, (9, in_channels, 64), jnp.float32) * scale
    b1 = jnp.full((1, 64), 0.01, jnp.float32)
    w2 = jax.random.normal(k2, (9, 64, 128), jnp.float32) * scale
    b2 = jnp.full((1, 128), 0.01, jnp.float32)
    # FC weights stored pre-transposed (in, out): y = x @ W^T + b.
    w3 = jax.random.normal(k3, (128, 1024), jnp.float32) * scale
    b3 = jnp.full((1, 1024), 0.01, jnp.float32)
    w4 = jax.random.normal(k4, (1024, classes), jnp.float32) * scale
    b4 = jnp.full((1, classes), 0.01, jnp.float32)
    # Lane-dense final layer: pad classes -> 128 with zeros (zero columns do
    # not change the first `classes` logits; the wrapper slices them off).
    w4p = jnp.zeros((1024, 128), jnp.float32).at[:, :classes].set(w4)
    b4p = jnp.zeros((1, 128), jnp.float32).at[:, :classes].set(b4)
    return dict(w1=w1, b1=b1, w2=w2, b2=b2, w3=w3, b3=b3, w4p=w4p, b4p=b4p)


# ----------------------------------------------------------------------------
# Pure-JAX reference (same math, standard XLA ops) for a correctness check
# ----------------------------------------------------------------------------
def waternet_reference(x_nchw, params, *, classes):
    x = jnp.transpose(x_nchw, (0, 2, 3, 1)).astype(jnp.float32)
    dn = ("NHWC", "HWIO", "NHWC")
    cin = x.shape[-1]
    w1 = params["w1"].reshape(3, 3, cin, 64)
    y = jax.lax.conv_general_dilated(x, w1, (1, 1), "SAME", dimension_numbers=dn)
    y = jax.nn.relu(y + params["b1"])
    y = jax.lax.reduce_window(y, -jnp.inf, jax.lax.max,
                              (1, 2, 2, 1), (1, 2, 2, 1), "VALID")
    w2 = params["w2"].reshape(3, 3, 64, 128)
    y = jax.lax.conv_general_dilated(y, w2, (1, 1), "SAME", dimension_numbers=dn)
    y = jax.nn.relu(y + params["b2"])
    y = jax.lax.reduce_window(y, -jnp.inf, jax.lax.max,
                              (1, 2, 2, 1), (1, 2, 2, 1), "VALID")
    feat = y.reshape(y.shape[0], -1)
    hid = jax.nn.relu(feat @ params["w3"] + params["b3"])
    out = hid @ params["w4p"] + params["b4p"]
    return out[:, :classes]


if __name__ == "__main__":
    # The regressor expects 1*1*128 features after two 2x pools -> spatial 4x4.
    B, Cin, S, classes = 2, 4, 4, 8

    key = jax.random.PRNGKey(0)
    kx, kp = jax.random.split(key)
    x = jax.random.normal(kx, (B, Cin, S, S), jnp.float32)
    params = init_params(kp, Cin, classes)

    fwd = jax.jit(functools.partial(waternet_forward, classes=classes))
    out = fwd(x, params)
    jax.block_until_ready(out)
    assert out.shape == (B, classes), out.shape

    # Numerical sanity check against the pure-JAX reference.
    ref = jax.jit(functools.partial(waternet_reference, classes=classes))(x, params)
    assert bool(jnp.allclose(out, ref, rtol=5e-2, atol=2e-2)), \
        float(jnp.max(jnp.abs(out - ref)))

    print("KERNEL_OK")
</pallas_src>

<mosaic_0001>
module attributes {stable_mosaic.version = 11 : i64} {
  func.func @_waternet_kernel(%arg0: i32, %arg1: memref<128x4xf32, #tpu.memory_space<vmem>>, %arg2: memref<9x4x64xf32, #tpu.memory_space<vmem>>, %arg3: memref<1x64xf32, #tpu.memory_space<vmem>>, %arg4: memref<9x64x128xf32, #tpu.memory_space<vmem>>, %arg5: memref<1x128xf32, #tpu.memory_space<vmem>>, %arg6: memref<128x1024xf32, #tpu.memory_space<vmem>>, %arg7: memref<1x1024xf32, #tpu.memory_space<vmem>>, %arg8: memref<1024x128xf32, #tpu.memory_space<vmem>>, %arg9: memref<1x128xf32, #tpu.memory_space<vmem>>, %arg10: memref<8x128xf32, #tpu.memory_space<vmem>>) attributes {dimension_semantics = [#tpu.dimension_semantics<parallel>], iteration_bounds = array<i64: 1>, scalar_prefetch = 0 : i64, scratch_operands = 0 : i64, tpu.core_type = #tpu.core_type<tc>, window_params = [{transform_indices = @transform_0, window_bounds = array<i64: 128, 4>}, {pipeline_mode = #tpu.pipeline_mode<synchronous>, transform_indices = @transform_1, window_bounds = array<i64: 9, 4, 64>}, {pipeline_mode = #tpu.pipeline_mode<synchronous>, transform_indices = @transform_2, window_bounds = array<i64: 1, 64>}, {pipeline_mode = #tpu.pipeline_mode<synchronous>, transform_indices = @transform_3, window_bounds = array<i64: 9, 64, 128>}, {pipeline_mode = #tpu.pipeline_mode<synchronous>, transform_indices = @transform_4, window_bounds = array<i64: 1, 128>}, {pipeline_mode = #tpu.pipeline_mode<synchronous>, transform_indices = @transform_5, window_bounds = array<i64: 128, 1024>}, {pipeline_mode = #tpu.pipeline_mode<synchronous>, transform_indices = @transform_6, window_bounds = array<i64: 1, 1024>}, {pipeline_mode = #tpu.pipeline_mode<synchronous>, transform_indices = @transform_7, window_bounds = array<i64: 1024, 128>}, {pipeline_mode = #tpu.pipeline_mode<synchronous>, transform_indices = @transform_8, window_bounds = array<i64: 1, 128>}, {transform_indices = @transform_9, window_bounds = array<i64: 8, 128>}]} {
    %c0 = arith.constant 0 : index
    %c0_0 = arith.constant 0 : index
    %0 = vector.load %arg1[%c0, %c0_0] : memref<128x4xf32, #tpu.memory_space<vmem>>, vector<128x4xf32>
    %c0_1 = arith.constant 0 : index
    %c0_2 = arith.constant 0 : index
    %1 = vector.load %arg3[%c0_1, %c0_2] : memref<1x64xf32, #tpu.memory_space<vmem>>, vector<1x64xf32>
    %c0_3 = arith.constant 0 : index
    %c0_4 = arith.constant 0 : index
    %c0_5 = arith.constant 0 : index
    %2 = vector.load %arg2[%c0_3, %c0_4, %c0_5] : memref<9x4x64xf32, #tpu.memory_space<vmem>>, vector<1x4x64xf32>
    %3 = vector.shape_cast %2 : vector<1x4x64xf32> to vector<4x64xf32>
    %cst = arith.constant dense<0.000000e+00> : vector<128x64xf32>
    %4 = tpu.matmul %0, %3, %cst {dimension_numbers = #tpu.dot_dimension_numbers<[1], [0], [0], [1], [0, 0, 1, 1], [], []>} : vector<128x4xf32>, vector<4x64xf32>, vector<128x64xf32> -> vector<128x64xf32>
    %5 = vector.extract_strided_slice %4 {offsets = [0, 0], sizes = [8, 64], strides = [1, 1]} : vector<128x64xf32> to vector<8x64xf32>
    %6 = vector.extract_strided_slice %4 {offsets = [8, 0], sizes = [8, 64], strides = [1, 1]} : vector<128x64xf32> to vector<8x64xf32>
    %7 = vector.extract_strided_slice %4 {offsets = [16, 0], sizes = [8, 64], strides = [1, 1]} : vector<128x64xf32> to vector<8x64xf32>
    %8 = vector.extract_strided_slice %4 {offsets = [32, 0], sizes = [8, 64], strides = [1, 1]} : vector<128x64xf32> to vector<8x64xf32>
    %9 = vector.extract_strided_slice %4 {offsets = [40, 0], sizes = [8, 64], strides = [1, 1]} : vector<128x64xf32> to vector<8x64xf32>
    %10 = vector.extract_strided_slice %4 {offsets = [48, 0], sizes = [8, 64], strides = [1, 1]} : vector<128x64xf32> to vector<8x64xf32>
    %11 = vector.extract_strided_slice %4 {offsets = [64, 0], sizes = [8, 64], strides = [1, 1]} : vector<128x64xf32> to vector<8x64xf32>
    %12 = vector.extract_strided_slice %4 {offsets = [72, 0], sizes = [8, 64], strides = [1, 1]} : vector<128x64xf32> to vector<8x64xf32>
    %13 = vector.extract_strided_slice %4 {offsets = [80, 0], sizes = [8, 64], strides = [1, 1]} : vector<128x64xf32> to vector<8x64xf32>
    %c1 = arith.constant 1 : index
    %c0_6 = arith.constant 0 : index
    %c0_7 = arith.constant 0 : index
    %14 = vector.load %arg2[%c1, %c0_6, %c0_7] : memref<9x4x64xf32, #tpu.memory_space<vmem>>, vector<1x4x64xf32>
    %15 = vector.shape_cast %14 : vector<1x4x64xf32> to vector<4x64xf32>
    %cst_8 = arith.constant dense<0.000000e+00> : vector<128x64xf32>
    %16 = tpu.matmul %0, %15, %cst_8 {dimension_numbers = #tpu.dot_dimension_numbers<[1], [0], [0], [1], [0, 0, 1, 1], [], []>} : vector<128x4xf32>, vector<4x64xf32>, vector<128x64xf32> -> vector<128x64xf32>
    %17 = vector.extract_strided_slice %16 {offsets = [0, 0], sizes = [8, 64], strides = [1, 1]} : vector<128x64xf32> to vector<8x64xf32>
    %18 = vector.extract_strided_slice %16 {offsets = [8, 0], sizes = [8, 64], strides = [1, 1]} : vector<128x64xf32> to vector<8x64xf32>
    %19 = arith.addf %5, %18 : vector<8x64xf32>
    %20 = vector.extract_strided_slice %16 {offsets = [16, 0], sizes = [8, 64], strides = [1, 1]} : vector<128x64xf32> to vector<8x64xf32>
    %21 = arith.addf %6, %20 : vector<8x64xf32>
    %22 = vector.extract_strided_slice %16 {offsets = [24, 0], sizes = [8, 64], strides = [1, 1]} : vector<128x64xf32> to vector<8x64xf32>
    %23 = arith.addf %7, %22 : vector<8x64xf32>
    %24 = vector.extract_strided_slice %16 {offsets = [32, 0], sizes = [8, 64], strides = [1, 1]} : vector<128x64xf32> to vector<8x64xf32>
    %25 = vector.extract_strided_slice %16 {offsets = [40, 0], sizes = [8, 64], strides = [1, 1]} : vector<128x64xf32> to vector<8x64xf32>
    %26 = arith.addf %8, %25 : vector<8x64xf32>
    %27 = vector.extract_strided_slice %16 {offsets = [48, 0], sizes = [8, 64], strides = [1, 1]} : vector<128x64xf32> to vector<8x64xf32>
    %28 = arith.addf %9, %27 : vector<8x64xf32>
    %29 = vector.extract_strided_slice %16 {offsets = [56, 0], sizes = [8, 64], strides = [1, 1]} : vector<128x64xf32> to vector<8x64xf32>
    %30 = arith.addf %10, %29 : vector<8x64xf32>
    %31 = vector.extract_strided_slice %16 {offsets = [64, 0], sizes = [8, 64], strides = [1, 1]} : vector<128x64xf32> to vector<8x64xf32>
    %32 = vector.extract_strided_slice %16 {offsets = [72, 0], sizes = [8, 64], strides = [1, 1]} : vector<128x64xf32> to vector<8x64xf32>
    %33 = arith.addf %11, %32 : vector<8x64xf32>
    %34 = vector.extract_strided_slice %16 {offsets = [80, 0], sizes = [8, 64], strides = [1, 1]} : vector<128x64xf32> to vector<8x64xf32>
    %35 = arith.addf %12, %34 : vector<8x64xf32>
    %36 = vector.extract_strided_slice %16 {offsets = [88, 0], sizes = [8, 64], strides = [1, 1]} : vector<128x64xf32> to vector<8x64xf32>
    %37 = arith.addf %13, %36 : vector<8x64xf32>
    %c2 = arith.constant 2 : index
    %c0_9 = arith.constant 0 : index
    %c0_10 = arith.constant 0 : index
    %38 = vector.load %arg2[%c2, %c0_9, %c0_10] : memref<9x4x64xf32, #tpu.memory_space<vmem>>, vector<1x4x64xf32>
    %39 = vector.shape_cast %38 : vector<1x4x64xf32> to vector<4x64xf32>
    %cst_11 = arith.constant dense<0.000000e+00> : vector<128x64xf32>
    %40 = tpu.matmul %0, %39, %cst_11 {dimension_numbers = #tpu.dot_dimension_numbers<[1], [0], [0], [1], [0, 0, 1, 1], [], []>} : vector<128x4xf32>, vector<4x64xf32>, vector<128x64xf32> -> vector<128x64xf32>
    %41 = vector.extract_strided_slice %40 {offsets = [8, 0], sizes = [8, 64], strides = [1, 1]} : vector<128x64xf32> to vector<8x64xf32>
    %42 = arith.addf %17, %41 : vector<8x64xf32>
    %43 = vector.extract_strided_slice %40 {offsets = [16, 0], sizes = [8, 64], strides = [1, 1]} : vector<128x64xf32> to vector<8x64xf32>
    %44 = arith.addf %19, %43 : vector<8x64xf32>
    %45 = vector.extract_strided_slice %40 {offsets = [24, 0], sizes = [8, 64], strides = [1, 1]} : vector<128x64xf32> to vector<8x64xf32>
    %46 = arith.addf %21, %45 : vector<8x64xf32>
    %47 = vector.extract_strided_slice %40 {offsets = [40, 0], sizes = [8, 64], strides = [1, 1]} : vector<128x64xf32> to vector<8x64xf32>
    %48 = arith.addf %24, %47 : vector<8x64xf32>
    %49 = vector.extract_strided_slice %40 {offsets = [48, 0], sizes = [8, 64], strides = [1, 1]} : vector<128x64xf32> to vector<8x64xf32>
    %50 = arith.addf %26, %49 : vector<8x64xf32>
    %51 = vector.extract_strided_slice %40 {offsets = [56, 0], sizes = [8, 64], strides = [1, 1]} : vector<128x64xf32> to vector<8x64xf32>
    %52 = arith.addf %28, %51 : vector<8x64xf32>
    %53 = vector.extract_strided_slice %40 {offsets = [72, 0], sizes = [8, 64], strides = [1, 1]} : vector<128x64xf32> to vector<8x64xf32>
    %54 = arith.addf %31, %53 : vector<8x64xf32>
    %55 = vector.extract_strided_slice %40 {offsets = [80, 0], sizes = [8, 64], strides = [1, 1]} : vector<128x64xf32> to vector<8x64xf32>
    %56 = arith.addf %33, %55 : vector<8x64xf32>
    %57 = vector.extract_strided_slice %40 {offsets = [88, 0], sizes = [8, 64], strides = [1, 1]} : vector<128x64xf32> to vector<8x64xf32>
    %58 = arith.addf %35, %57 : vector<8x64xf32>
    %c3 = arith.constant 3 : index
    %c0_12 = arith.constant 0 : index
    %c0_13 = arith.constant 0 : index
    %59 = vector.load %arg2[%c3, %c0_12, %c0_13] : memref<9x4x64xf32, #tpu.memory_space<vmem>>, vector<1x4x64xf32>
    %60 = vector.shape_cast %59 : vector<1x4x64xf32> to vector<4x64xf32>
    %cst_14 = arith.constant dense<0.000000e+00> : vector<128x64xf32>
    %61 = tpu.matmul %0, %60, %cst_14 {dimension_numbers = #tpu.dot_dimension_numbers<[1], [0], [0], [1], [0, 0, 1, 1], [], []>} : vector<128x4xf32>, vector<4x64xf32>, vector<128x64xf32> -> vector<128x64xf32>
    %62 = vector.extract_strided_slice %61 {offsets = [0, 0], sizes = [8, 64], strides = [1, 1]} : vector<128x64xf32> to vector<8x64xf32>
    %63 = vector.extract_strided_slice %61 {offsets = [8, 0], sizes = [8, 64], strides = [1, 1]} : vector<128x64xf32> to vector<8x64xf32>
    %64 = vector.extract_strided_slice %61 {offsets = [16, 0], sizes = [8, 64], strides = [1, 1]} : vector<128x64xf32> to vector<8x64xf32>
    %65 = vector.extract_strided_slice %61 {offsets = [32, 0], sizes = [8, 64], strides = [1, 1]} : vector<128x64xf32> to vector<8x64xf32>
    %66 = arith.addf %44, %65 : vector<8x64xf32>
    %67 = vector.extract_strided_slice %61 {offsets = [40, 0], sizes = [8, 64], strides = [1, 1]} : vector<128x64xf32> to vector<8x64xf32>
    %68 = arith.addf %46, %67 : vector<8x64xf32>
    %69 = vector.extract_strided_slice %61 {offsets = [48, 0], sizes = [8, 64], strides = [1, 1]} : vector<128x64xf32> to vector<8x64xf32>
    %70 = arith.addf %23, %69 : vector<8x64xf32>
    %71 = vector.extract_strided_slice %61 {offsets = [64, 0], sizes = [8, 64], strides = [1, 1]} : vector<128x64xf32> to vector<8x64xf32>
    %72 = arith.addf %50, %71 : vector<8x64xf32>
    %73 = vector.extract_strided_slice %61 {offsets = [72, 0], sizes = [8, 64], strides = [1, 1]} : vector<128x64xf32> to vector<8x64xf32>
    %74 = arith.addf %52, %73 : vector<8x64xf32>
    %75 = vector.extract_strided_slice %61 {offsets = [80, 0], sizes = [8, 64], strides = [1, 1]} : vector<128x64xf32> to vector<8x64xf32>
    %76 = arith.addf %30, %75 : vector<8x64xf32>
    %77 = vector.extract_strided_slice %61 {offsets = [96, 0], sizes = [8, 64], strides = [1, 1]} : vector<128x64xf32> to vector<8x64xf32>
    %78 = arith.addf %56, %77 : vector<8x64xf32>
    %79 = vector.extract_strided_slice %61 {offsets = [104, 0], sizes = [8, 64], strides = [1, 1]} : vector<128x64xf32> to vector<8x64xf32>
    %80 = arith.addf %58, %79 : vector<8x64xf32>
    %81 = vector.extract_strided_slice %61 {offsets = [112, 0], sizes = [8, 64], strides = [1, 1]} : vector<128x64xf32> to vector<8x64xf32>
    %82 = arith.addf %37, %81 : vector<8x64xf32>
    %c4 = arith.constant 4 : index
    %c0_15 = arith.constant 0 : index
    %c0_16 = arith.constant 0 : index
    %83 = vector.load %arg2[%c4, %c0_15, %c0_16] : memref<9x4x64xf32, #tpu.memory_space<vmem>>, vector<1x4x64xf32>
    %84 = vector.shape_cast %83 : vector<1x4x64xf32> to vector<4x64xf32>
    %cst_17 = arith.constant dense<0.000000e+00> : vector<128x64xf32>
    %85 = tpu.matmul %0, %84, %cst_17 {dimension_numbers = #tpu.dot_dimension_numbers<[1], [0], [0], [1], [0, 0, 1, 1], [], []>} : vector<128x4xf32>, vector<4x64xf32>, vector<128x64xf32> -> vector<128x64xf32>
    %86 = vector.extract_strided_slice %85 {offsets = [0, 0], sizes = [8, 64], strides = [1, 1]} : vector<128x64xf32> to vector<8x64xf32>
    %87 = vector.extract_strided_slice %85 {offsets = [8, 0], sizes = [8, 64], strides = [1, 1]} : vector<128x64xf32> to vector<8x64xf32>
    %88 = arith.addf %62, %87 : vector<8x64xf32>
    %89 = vector.extract_strided_slice %85 {offsets = [16, 0], sizes = [8, 64], strides = [1, 1]} : vector<128x64xf32> to vector<8x64xf32>
    %90 = arith.addf %63, %89 : vector<8x64xf32>
    %91 = vector.extract_strided_slice %85 {offsets = [24, 0], sizes = [8, 64], strides = [1, 1]} : vector<128x64xf32> to vector<8x64xf32>
    %92 = arith.addf %64, %91 : vector<8x64xf32>
    %93 = vector.extract_strided_slice %85 {offsets = [32, 0], sizes = [8, 64], strides = [1, 1]} : vector<128x64xf32> to vector<8x64xf32>
    %94 = arith.addf %42, %93 : vector<8x64xf32>
    %95 = vector.extract_strided_slice %85 {offsets = [40, 0], sizes = [8, 64], strides = [1, 1]} : vector<128x64xf32> to vector<8x64xf32>
    %96 = arith.addf %66, %95 : vector<8x64xf32>
    %97 = vector.extract_strided_slice %85 {offsets = [48, 0], sizes = [8, 64], strides = [1, 1]} : vector<128x64xf32> to vector<8x64xf32>
    %98 = arith.addf %68, %97 : vector<8x64xf32>
    %99 = vector.extract_strided_slice %85 {offsets = [56, 0], sizes = [8, 64], strides = [1, 1]} : vector<128x64xf32> to vector<8x64xf32>
    %100 = arith.addf %70, %99 : vector<8x64xf32>
    %101 = vector.extract_strided_slice %85 {offsets = [64, 0], sizes = [8, 64], strides = [1, 1]} : vector<128x64xf32> to vector<8x64xf32>
    %102 = arith.addf %48, %101 : vector<8x64xf32>
    %103 = vector.extract_strided_slice %85 {offsets = [72, 0], sizes = [8, 64], strides = [1, 1]} : vector<128x64xf32> to vector<8x64xf32>
    %104 = arith.addf %72, %103 : vector<8x64xf32>
    %105 = vector.extract_strided_slice %85 {offsets = [80, 0], sizes = [8, 64], strides = [1, 1]} : vector<128x64xf32> to vector<8x64xf32>
    %106 = arith.addf %74, %105 : vector<8x64xf32>
    %107 = vector.extract_strided_slice %85 {offsets = [88, 0], sizes = [8, 64], strides = [1, 1]} : vector<128x64xf32> to vector<8x64xf32>
    %108 = arith.addf %76, %107 : vector<8x64xf32>
    %109 = vector.extract_strided_slice %85 {offsets = [96, 0], sizes = [8, 64], strides = [1, 1]} : vector<128x64xf32> to vector<8x64xf32>
    %110 = arith.addf %54, %109 : vector<8x64xf32>
    %111 = vector.extract_strided_slice %85 {offsets = [104, 0], sizes = [8, 64], strides = [1, 1]} : vector<128x64xf32> to vector<8x64xf32>
    %112 = arith.addf %78, %111 : vector<8x64xf32>
    %113 = vector.extract_strided_slice %85 {offsets = [112, 0], sizes = [8, 64], strides = [1, 1]} : vector<128x64xf32> to vector<8x64xf32>
    %114 = arith.addf %80, %113 : vector<8x64xf32>
    %115 = vector.extract_strided_slice %85 {offsets = [120, 0], sizes = [8, 64], strides = [1, 1]} : vector<128x64xf32> to vector<8x64xf32>
    %116 = arith.addf %82, %115 : vector<8x64xf32>
    %c5 = arith.constant 5 : index
    %c0_18 = arith.constant 0 : index
    %c0_19 = arith.constant 0 : index
    %117 = vector.load %arg2[%c5, %c0_18, %c0_19] : memref<9x4x64xf32, #tpu.memory_space<vmem>>, vector<1x4x64xf32>
    %118 = vector.shape_cast %117 : vector<1x4x64xf32> to vector<4x64xf32>
    %cst_20 = arith.constant dense<0.000000e+00> : vector<128x64xf32>
    %119 = tpu.matmul %0, %118, %cst_20 {dimension_numbers = #tpu.dot_dimension_numbers<[1], [0], [0], [1], [0, 0, 1, 1], [], []>} : vector<128x4xf32>, vector<4x64xf32>, vector<128x64xf32> -> vector<128x64xf32>
    %120 = vector.extract_strided_slice %119 {offsets = [8, 0], sizes = [8, 64], strides = [1, 1]} : vector<128x64xf32> to vector<8x64xf32>
    %121 = arith.addf %86, %120 : vector<8x64xf32>
    %122 = vector.extract_strided_slice %119 {offsets = [16, 0], sizes = [8, 64], strides = [1, 1]} : vector<128x64xf32> to vector<8x64xf32>
    %123 = arith.addf %88, %122 : vector<8x64xf32>
    %124 = vector.extract_strided_slice %119 {offsets = [24, 0], sizes = [8, 64], strides = [1, 1]} : vector<128x64xf32> to vector<8x64xf32>
    %125 = arith.addf %90, %124 : vector<8x64xf32>
    %126 = vector.extract_strided_slice %119 {offsets = [40, 0], sizes = [8, 64], strides = [1, 1]} : vector<128x64xf32> to vector<8x64xf32>
    %127 = arith.addf %94, %126 : vector<8x64xf32>
    %128 = vector.extract_strided_slice %119 {offsets = [48, 0], sizes = [8, 64], strides = [1, 1]} : vector<128x64xf32> to vector<8x64xf32>
    %129 = arith.addf %96, %128 : vector<8x64xf32>
    %130 = vector.extract_strided_slice %119 {offsets = [56, 0], sizes = [8, 64], strides = [1, 1]} : vector<128x64xf32> to vector<8x64xf32>
    %131 = arith.addf %98, %130 : vector<8x64xf32>
    %132 = vector.extract_strided_slice %119 {offsets = [72, 0], sizes = [8, 64], strides = [1, 1]} : vector<128x64xf32> to vector<8x64xf32>
    %133 = arith.addf %102, %132 : vector<8x64xf32>
    %134 = vector.extract_strided_slice %119 {offsets = [80, 0], sizes = [8, 64], strides = [1, 1]} : vector<128x64xf32> to vector<8x64xf32>
    %135 = arith.addf %104, %134 : vector<8x64xf32>
    %136 = vector.extract_strided_slice %119 {offsets = [88, 0], sizes = [8, 64], strides = [1, 1]} : vector<128x64xf32> to vector<8x64xf32>
    %137 = arith.addf %106, %136 : vector<8x64xf32>
    %138 = vector.extract_strided_slice %119 {offsets = [104, 0], sizes = [8, 64], strides = [1, 1]} : vector<128x64xf32> to vector<8x64xf32>
    %139 = arith.addf %110, %138 : vector<8x64xf32>
    %140 = vector.extract_strided_slice %119 {offsets = [112, 0], sizes = [8, 64], strides = [1, 1]} : vector<128x64xf32> to vector<8x64xf32>
    %141 = arith.addf %112, %140 : vector<8x64xf32>
    %142 = vector.extract_strided_slice %119 {offsets = [120, 0], sizes = [8, 64], strides = [1, 1]} : vector<128x64xf32> to vector<8x64xf32>
    %143 = arith.addf %114, %142 : vector<8x64xf32>
    %c6 = arith.constant 6 : index
    %c0_21 = arith.constant 0 : index
    %c0_22 = arith.constant 0 : index
    %144 = vector.load %arg2[%c6, %c0_21, %c0_22] : memref<9x4x64xf32, #tpu.memory_space<vmem>>, vector<1x4x64xf32>
    %145 = vector.shape_cast %144 : vector<1x4x64xf32> to vector<4x64xf32>
    %cst_23 = arith.constant dense<0.000000e+00> : vector<128x64xf32>
    %146 = tpu.matmul %0, %145, %cst_23 {dimension_numbers = #tpu.dot_dimension_numbers<[1], [0], [0], [1], [0, 0, 1, 1], [], []>} : vector<128x4xf32>, vector<4x64xf32>, vector<128x64xf32> -> vector<128x64xf32>
    %147 = vector.extract_strided_slice %146 {offsets = [32, 0], sizes = [8, 64], strides = [1, 1]} : vector<128x64xf32> to vector<8x64xf32>
    %148 = arith.addf %123, %147 : vector<8x64xf32>
    %149 = vector.extract_strided_slice %146 {offsets = [40, 0], sizes = [8, 64], strides = [1, 1]} : vector<128x64xf32> to vector<8x64xf32>
    %150 = arith.addf %125, %149 : vector<8x64xf32>
    %151 = vector.extract_strided_slice %146 {offsets = [48, 0], sizes = [8, 64], strides = [1, 1]} : vector<128x64xf32> to vector<8x64xf32>
    %152 = arith.addf %92, %151 : vector<8x64xf32>
    %153 = vector.extract_strided_slice %146 {offsets = [64, 0], sizes = [8, 64], strides = [1, 1]} : vector<128x64xf32> to vector<8x64xf32>
    %154 = arith.addf %129, %153 : vector<8x64xf32>
    %155 = vector.extract_strided_slice %146 {offsets = [72, 0], sizes = [8, 64], strides = [1, 1]} : vector<128x64xf32> to vector<8x64xf32>
    %156 = arith.addf %131, %155 : vector<8x64xf32>
    %157 = vector.extract_strided_slice %146 {offsets = [80, 0], sizes = [8, 64], strides = [1, 1]} : vector<128x64xf32> to vector<8x64xf32>
    %158 = arith.addf %100, %157 : vector<8x64xf32>
    %159 = vector.extract_strided_slice %146 {offsets = [96, 0], sizes = [8, 64], strides = [1, 1]} : vector<128x64xf32> to vector<8x64xf32>
    %160 = arith.addf %135, %159 : vector<8x64xf32>
    %161 = vector.extract_strided_slice %146 {offsets = [104, 0], sizes = [8, 64], strides = [1, 1]} : vector<128x64xf32> to vector<8x64xf32>
    %162 = arith.addf %137, %161 : vector<8x64xf32>
    %163 = vector.extract_strided_slice %146 {offsets = [112, 0], sizes = [8, 64], strides = [1, 1]} : vector<128x64xf32> to vector<8x64xf32>
    %164 = arith.addf %108, %163 : vector<8x64xf32>
    %c7 = arith.constant 7 : index
    %c0_24 = arith.constant 0 : index
    %c0_25 = arith.constant 0 : index
    %165 = vector.load %arg2[%c7, %c0_24, %c0_25] : memref<9x4x64xf32, #tpu.memory_space<vmem>>, vector<1x4x64xf32>
    %166 = vector.shape_cast %165 : vector<1x4x64xf32> to vector<4x64xf32>
    %cst_26 = arith.constant dense<0.000000e+00> : vector<128x64xf32>
    %167 = tpu.matmul %0, %166, %cst_26 {dimension_numbers = #tpu.dot_dimension_numbers<[1], [0], [0], [1], [0, 0, 1, 1], [], []>} : vector<128x4xf32>, vector<4x64xf32>, vector<128x64xf32> -> vector<128x64xf32>
    %168 = vector.extract_strided_slice %167 {offsets = [32, 0], sizes = [8, 64], strides = [1, 1]} : vector<128x64xf32> to vector<8x64xf32>
    %169 = arith.addf %121, %168 : vector<8x64xf32>
    %170 = vector.extract_strided_slice %167 {offsets = [40, 0], sizes = [8, 64], strides = [1, 1]} : vector<128x64xf32> to vector<8x64xf32>
    %171 = arith.addf %148, %170 : vector<8x64xf32>
    %172 = vector.extract_strided_slice %167 {offsets = [48, 0], sizes = [8, 64], strides = [1, 1]} : vector<128x64xf32> to vector<8x64xf32>
    %173 = arith.addf %150, %172 : vector<8x64xf32>
    %174 = vector.extract_strided_slice %167 {offsets = [56, 0], sizes = [8, 64], strides = [1, 1]} : vector<128x64xf32> to vector<8x64xf32>
    %175 = arith.addf %152, %174 : vector<8x64xf32>
    %176 = vector.extract_strided_slice %167 {offsets = [64, 0], sizes = [8, 64], strides = [1, 1]} : vector<128x64xf32> to vector<8x64xf32>
    %177 = arith.addf %127, %176 : vector<8x64xf32>
    %178 = vector.extract_strided_slice %167 {offsets = [72, 0], sizes = [8, 64], strides = [1, 1]} : vector<128x64xf32> to vector<8x64xf32>
    %179 = arith.addf %154, %178 : vector<8x64xf32>
    %180 = vector.extract_strided_slice %167 {offsets = [80, 0], sizes = [8, 64], strides = [1, 1]} : vector<128x64xf32> to vector<8x64xf32>
    %181 = arith.addf %156, %180 : vector<8x64xf32>
    %182 = vector.extract_strided_slice %167 {offsets = [88, 0], sizes = [8, 64], strides = [1, 1]} : vector<128x64xf32> to vector<8x64xf32>
    %183 = arith.addf %158, %182 : vector<8x64xf32>
    %184 = vector.extract_strided_slice %167 {offsets = [96, 0], sizes = [8, 64], strides = [1, 1]} : vector<128x64xf32> to vector<8x64xf32>
    %185 = arith.addf %133, %184 : vector<8x64xf32>
    %186 = vector.extract_strided_slice %167 {offsets = [104, 0], sizes = [8, 64], strides = [1, 1]} : vector<128x64xf32> to vector<8x64xf32>
    %187 = arith.addf %160, %186 : vector<8x64xf32>
    %188 = vector.extract_strided_slice %167 {offsets = [112, 0], sizes = [8, 64], strides = [1, 1]} : vector<128x64xf32> to vector<8x64xf32>
    %189 = arith.addf %162, %188 : vector<8x64xf32>
    %190 = vector.extract_strided_slice %167 {offsets = [120, 0], sizes = [8, 64], strides = [1, 1]} : vector<128x64xf32> to vector<8x64xf32>
    %191 = arith.addf %164, %190 : vector<8x64xf32>
    %c8 = arith.constant 8 : index
    %c0_27 = arith.constant 0 : index
    %c0_28 = arith.constant 0 : index
    %192 = vector.load %arg2[%c8, %c0_27, %c0_28] : memref<9x4x64xf32, #tpu.memory_space<vmem>>, vector<1x4x64xf32>
    %193 = vector.shape_cast %192 : vector<1x4x64xf32> to vector<4x64xf32>
    %cst_29 = arith.constant dense<0.000000e+00> : vector<128x64xf32>
    %194 = tpu.matmul %0, %193, %cst_29 {dimension_numbers = #tpu.dot_dimension_numbers<[1], [0], [0], [1], [0, 0, 1, 1], [], []>} : vector<128x4xf32>, vector<4x64xf32>, vector<128x64xf32> -> vector<128x64xf32>
    %195 = vector.extract_strided_slice %194 {offsets = [40, 0], sizes = [8, 64], strides = [1, 1]} : vector<128x64xf32> to vector<8x64xf32>
    %196 = arith.addf %169, %195 : vector<8x64xf32>
    %197 = vector.extract_strided_slice %194 {offsets = [48, 0], sizes = [8, 64], strides = [1, 1]} : vector<128x64xf32> to vector<8x64xf32>
    %198 = arith.addf %171, %197 : vector<8x64xf32>
    %199 = vector.extract_strided_slice %194 {offsets = [56, 0], sizes = [8, 64], strides = [1, 1]} : vector<128x64xf32> to vector<8x64xf32>
    %200 = arith.addf %173, %199 : vector<8x64xf32>
    %201 = vector.extract_strided_slice %194 {offsets = [72, 0], sizes = [8, 64], strides = [1, 1]} : vector<128x64xf32> to vector<8x64xf32>
    %202 = arith.addf %177, %201 : vector<8x64xf32>
    %203 = vector.extract_strided_slice %194 {offsets = [80, 0], sizes = [8, 64], strides = [1, 1]} : vector<128x64xf32> to vector<8x64xf32>
    %204 = arith.addf %179, %203 : vector<8x64xf32>
    %205 = vector.extract_strided_slice %194 {offsets = [88, 0], sizes = [8, 64], strides = [1, 1]} : vector<128x64xf32> to vector<8x64xf32>
    %206 = arith.addf %181, %205 : vector<8x64xf32>
    %207 = vector.extract_strided_slice %194 {offsets = [104, 0], sizes = [8, 64], strides = [1, 1]} : vector<128x64xf32> to vector<8x64xf32>
    %208 = arith.addf %185, %207 : vector<8x64xf32>
    %209 = vector.extract_strided_slice %194 {offsets = [112, 0], sizes = [8, 64], strides = [1, 1]} : vector<128x64xf32> to vector<8x64xf32>
    %210 = arith.addf %187, %209 : vector<8x64xf32>
    %211 = vector.extract_strided_slice %194 {offsets = [120, 0], sizes = [8, 64], strides = [1, 1]} : vector<128x64xf32> to vector<8x64xf32>
    %212 = arith.addf %189, %211 : vector<8x64xf32>
    %213 = vector.broadcast %1 : vector<1x64xf32> to vector<8x64xf32>
    %214 = arith.addf %196, %213 : vector<8x64xf32>
    %cst_30 = arith.constant 0.000000e+00 : f32
    %215 = vector.broadcast %cst_30 : f32 to vector<8x64xf32>
    %216 = arith.maximumf %214, %215 : vector<8x64xf32>
    %217 = vector.broadcast %1 : vector<1x64xf32> to vector<8x64xf32>
    %218 = arith.addf %198, %217 : vector<8x64xf32>
    %cst_31 = arith.constant 0.000000e+00 : f32
    %219 = vector.broadcast %cst_31 : f32 to vector<8x64xf32>
    %220 = arith.maximumf %218, %219 : vector<8x64xf32>
    %221 = vector.broadcast %1 : vector<1x64xf32> to vector<8x64xf32>
    %222 = arith.addf %200, %221 : vector<8x64xf32>
    %cst_32 = arith.constant 0.000000e+00 : f32
    %223 = vector.broadcast %cst_32 : f32 to vector<8x64xf32>
    %224 = arith.maximumf %222, %223 : vector<8x64xf32>
    %225 = vector.broadcast %1 : vector<1x64xf32> to vector<8x64xf32>
    %226 = arith.addf %175, %225 : vector<8x64xf32>
    %cst_33 = arith.constant 0.000000e+00 : f32
    %227 = vector.broadcast %cst_33 : f32 to vector<8x64xf32>
    %228 = arith.maximumf %226, %227 : vector<8x64xf32>
    %229 = vector.broadcast %1 : vector<1x64xf32> to vector<8x64xf32>
    %230 = arith.addf %202, %229 : vector<8x64xf32>
    %cst_34 = arith.constant 0.000000e+00 : f32
    %231 = vector.broadcast %cst_34 : f32 to vector<8x64xf32>
    %232 = arith.maximumf %230, %231 : vector<8x64xf32>
    %233 = vector.broadcast %1 : vector<1x64xf32> to vector<8x64xf32>
    %234 = arith.addf %204, %233 : vector<8x64xf32>
    %cst_35 = arith.constant 0.000000e+00 : f32
    %235 = vector.broadcast %cst_35 : f32 to vector<8x64xf32>
    %236 = arith.maximumf %234, %235 : vector<8x64xf32>
    %237 = vector.broadcast %1 : vector<1x64xf32> to vector<8x64xf32>
    %238 = arith.addf %206, %237 : vector<8x64xf32>
    %cst_36 = arith.constant 0.000000e+00 : f32
    %239 = vector.broadcast %cst_36 : f32 to vector<8x64xf32>
    %240 = arith.maximumf %238, %239 : vector<8x64xf32>
    %241 = vector.broadcast %1 : vector<1x64xf32> to vector<8x64xf32>
    %242 = arith.addf %183, %241 : vector<8x64xf32>
    %cst_37 = arith.constant 0.000000e+00 : f32
    %243 = vector.broadcast %cst_37 : f32 to vector<8x64xf32>
    %244 = arith.maximumf %242, %243 : vector<8x64xf32>
    %245 = vector.broadcast %1 : vector<1x64xf32> to vector<8x64xf32>
    %246 = arith.addf %208, %245 : vector<8x64xf32>
    %cst_38 = arith.constant 0.000000e+00 : f32
    %247 = vector.broadcast %cst_38 : f32 to vector<8x64xf32>
    %248 = arith.maximumf %246, %247 : vector<8x64xf32>
    %249 = vector.broadcast %1 : vector<1x64xf32> to vector<8x64xf32>
    %250 = arith.addf %210, %249 : vector<8x64xf32>
    %cst_39 = arith.constant 0.000000e+00 : f32
    %251 = vector.broadcast %cst_39 : f32 to vector<8x64xf32>
    %252 = arith.maximumf %250, %251 : vector<8x64xf32>
    %253 = vector.broadcast %1 : vector<1x64xf32> to vector<8x64xf32>
    %254 = arith.addf %212, %253 : vector<8x64xf32>
    %cst_40 = arith.constant 0.000000e+00 : f32
    %255 = vector.broadcast %cst_40 : f32 to vector<8x64xf32>
    %256 = arith.maximumf %254, %255 : vector<8x64xf32>
    %257 = vector.broadcast %1 : vector<1x64xf32> to vector<8x64xf32>
    %258 = arith.addf %191, %257 : vector<8x64xf32>
    %cst_41 = arith.constant 0.000000e+00 : f32
    %259 = vector.broadcast %cst_41 : f32 to vector<8x64xf32>
    %260 = arith.maximumf %258, %259 : vector<8x64xf32>
    %261 = vector.broadcast %1 : vector<1x64xf32> to vector<8x64xf32>
    %262 = arith.addf %139, %261 : vector<8x64xf32>
    %cst_42 = arith.constant 0.000000e+00 : f32
    %263 = vector.broadcast %cst_42 : f32 to vector<8x64xf32>
    %264 = arith.maximumf %262, %263 : vector<8x64xf32>
    %265 = vector.broadcast %1 : vector<1x64xf32> to vector<8x64xf32>
    %266 = arith.addf %141, %265 : vector<8x64xf32>
    %cst_43 = arith.constant 0.000000e+00 : f32
    %267 = vector.broadcast %cst_43 : f32 to vector<8x64xf32>
    %268 = arith.maximumf %266, %267 : vector<8x64xf32>
    %269 = vector.broadcast %1 : vector<1x64xf32> to vector<8x64xf32>
    %270 = arith.addf %143, %269 : vector<8x64xf32>
    %cst_44 = arith.constant 0.000000e+00 : f32
    %271 = vector.broadcast %cst_44 : f32 to vector<8x64xf32>
    %272 = arith.maximumf %270, %271 : vector<8x64xf32>
    %273 = vector.broadcast %1 : vector<1x64xf32> to vector<8x64xf32>
    %274 = arith.addf %116, %273 : vector<8x64xf32>
    %cst_45 = arith.constant 0.000000e+00 : f32
    %275 = vector.broadcast %cst_45 : f32 to vector<8x64xf32>
    %276 = arith.maximumf %274, %275 : vector<8x64xf32>
    %277 = arith.maximumf %216, %220 : vector<8x64xf32>
    %278 = arith.maximumf %232, %236 : vector<8x64xf32>
    %279 = arith.maximumf %277, %278 : vector<8x64xf32>
    %280 = arith.maximumf %224, %228 : vector<8x64xf32>
    %281 = arith.maximumf %240, %244 : vector<8x64xf32>
    %282 = arith.maximumf %280, %281 : vector<8x64xf32>
    %283 = arith.maximumf %248, %252 : vector<8x64xf32>
    %284 = arith.maximumf %264, %268 : vector<8x64xf32>
    %285 = arith.maximumf %283, %284 : vector<8x64xf32>
    %286 = arith.maximumf %256, %260 : vector<8x64xf32>
    %287 = arith.maximumf %272, %276 : vector<8x64xf32>
    %288 = arith.maximumf %286, %287 : vector<8x64xf32>
    %c0_46 = arith.constant 0 : index
    %c0_47 = arith.constant 0 : index
    %289 = vector.load %arg5[%c0_46, %c0_47] : memref<1x128xf32, #tpu.memory_space<vmem>>, vector<1x128xf32>
    %c4_48 = arith.constant 4 : index
    %c0_49 = arith.constant 0 : index
    %c0_50 = arith.constant 0 : index
    %290 = vector.load %arg4[%c4_48, %c0_49, %c0_50] : memref<9x64x128xf32, #tpu.memory_space<vmem>>, vector<1x64x128xf32>
    %291 = vector.shape_cast %290 : vector<1x64x128xf32> to vector<64x128xf32>
    %cst_51 = arith.constant dense<0.000000e+00> : vector<8x128xf32>
    %292 = tpu.matmul %279, %291, %cst_51 {dimension_numbers = #tpu.dot_dimension_numbers<[1], [0], [0], [1], [0, 0, 1, 1], [], []>} : vector<8x64xf32>, vector<64x128xf32>, vector<8x128xf32> -> vector<8x128xf32>
    %c5_52 = arith.constant 5 : index
    %c0_53 = arith.constant 0 : index
    %c0_54 = arith.constant 0 : index
    %293 = vector.load %arg4[%c5_52, %c0_53, %c0_54] : memref<9x64x128xf32, #tpu.memory_space<vmem>>, vector<1x64x128xf32>
    %294 = vector.shape_cast %293 : vector<1x64x128xf32> to vector<64x128xf32>
    %cst_55 = arith.constant dense<0.000000e+00> : vector<8x128xf32>
    %295 = tpu.matmul %282, %294, %cst_55 {dimension_numbers = #tpu.dot_dimension_numbers<[1], [0], [0], [1], [0, 0, 1, 1], [], []>} : vector<8x64xf32>, vector<64x128xf32>, vector<8x128xf32> -> vector<8x128xf32>
    %296 = arith.addf %292, %295 : vector<8x128xf32>
    %c7_56 = arith.constant 7 : index
    %c0_57 = arith.constant 0 : index
    %c0_58 = arith.constant 0 : index
    %297 = vector.load %arg4[%c7_56, %c0_57, %c0_58] : memref<9x64x128xf32, #tpu.memory_space<vmem>>, vector<1x64x128xf32>
    %298 = vector.shape_cast %297 : vector<1x64x128xf32> to vector<64x128xf32>
    %cst_59 = arith.constant dense<0.000000e+00> : vector<8x128xf32>
    %299 = tpu.matmul %285, %298, %cst_59 {dimension_numbers = #tpu.dot_dimension_numbers<[1], [0], [0], [1], [0, 0, 1, 1], [], []>} : vector<8x64xf32>, vector<64x128xf32>, vector<8x128xf32> -> vector<8x128xf32>
    %300 = arith.addf %296, %299 : vector<8x128xf32>
    %c8_60 = arith.constant 8 : index
    %c0_61 = arith.constant 0 : index
    %c0_62 = arith.constant 0 : index
    %301 = vector.load %arg4[%c8_60, %c0_61, %c0_62] : memref<9x64x128xf32, #tpu.memory_space<vmem>>, vector<1x64x128xf32>
    %302 = vector.shape_cast %301 : vector<1x64x128xf32> to vector<64x128xf32>
    %cst_63 = arith.constant dense<0.000000e+00> : vector<8x128xf32>
    %303 = tpu.matmul %288, %302, %cst_63 {dimension_numbers = #tpu.dot_dimension_numbers<[1], [0], [0], [1], [0, 0, 1, 1], [], []>} : vector<8x64xf32>, vector<64x128xf32>, vector<8x128xf32> -> vector<8x128xf32>
    %304 = arith.addf %300, %303 : vector<8x128xf32>
    %305 = vector.broadcast %289 : vector<1x128xf32> to vector<8x128xf32>
    %306 = arith.addf %304, %305 : vector<8x128xf32>
    %cst_64 = arith.constant 0.000000e+00 : f32
    %307 = vector.broadcast %cst_64 : f32 to vector<8x128xf32>
    %308 = arith.maximumf %306, %307 : vector<8x128xf32>
    %c3_65 = arith.constant 3 : index
    %c0_66 = arith.constant 0 : index
    %c0_67 = arith.constant 0 : index
    %309 = vector.load %arg4[%c3_65, %c0_66, %c0_67] : memref<9x64x128xf32, #tpu.memory_space<vmem>>, vector<1x64x128xf32>
    %310 = vector.shape_cast %309 : vector<1x64x128xf32> to vector<64x128xf32>
    %cst_68 = arith.constant dense<0.000000e+00> : vector<8x128xf32>
    %311 = tpu.matmul %279, %310, %cst_68 {dimension_numbers = #tpu.dot_dimension_numbers<[1], [0], [0], [1], [0, 0, 1, 1], [], []>} : vector<8x64xf32>, vector<64x128xf32>, vector<8x128xf32> -> vector<8x128xf32>
    %c4_69 = arith.constant 4 : index
    %c0_70 = arith.constant 0 : index
    %c0_71 = arith.constant 0 : index
    %312 = vector.load %arg4[%c4_69, %c0_70, %c0_71] : memref<9x64x128xf32, #tpu.memory_space<vmem>>, vector<1x64x128xf32>
    %313 = vector.shape_cast %312 : vector<1x64x128xf32> to vector<64x128xf32>
    %cst_72 = arith.constant dense<0.000000e+00> : vector<8x128xf32>
    %314 = tpu.matmul %282, %313, %cst_72 {dimension_numbers = #tpu.dot_dimension_numbers<[1], [0], [0], [1], [0, 0, 1, 1], [], []>} : vector<8x64xf32>, vector<64x128xf32>, vector<8x128xf32> -> vector<8x128xf32>
    %315 = arith.addf %311, %314 : vector<8x128xf32>
    %c6_73 = arith.constant 6 : index
    %c0_74 = arith.constant 0 : index
    %c0_75 = arith.constant 0 : index
    %316 = vector.load %arg4[%c6_73, %c0_74, %c0_75] : memref<9x64x128xf32, #tpu.memory_space<vmem>>, vector<1x64x128xf32>
    %317 = vector.shape_cast %316 : vector<1x64x128xf32> to vector<64x128xf32>
    %cst_76 = arith.constant dense<0.000000e+00> : vector<8x128xf32>
    %318 = tpu.matmul %285, %317, %cst_76 {dimension_numbers = #tpu.dot_dimension_numbers<[1], [0], [0], [1], [0, 0, 1, 1], [], []>} : vector<8x64xf32>, vector<64x128xf32>, vector<8x128xf32> -> vector<8x128xf32>
    %319 = arith.addf %315, %318 : vector<8x128xf32>
    %c7_77 = arith.constant 7 : index
    %c0_78 = arith.constant 0 : index
    %c0_79 = arith.constant 0 : index
    %320 = vector.load %arg4[%c7_77, %c0_78, %c0_79] : memref<9x64x128xf32, #tpu.memory_space<vmem>>, vector<1x64x128xf32>
    %321 = vector.shape_cast %320 : vector<1x64x128xf32> to vector<64x128xf32>
    %cst_80 = arith.constant dense<0.000000e+00> : vector<8x128xf32>
    %322 = tpu.matmul %288, %321, %cst_80 {dimension_numbers = #tpu.dot_dimension_numbers<[1], [0], [0], [1], [0, 0, 1, 1], [], []>} : vector<8x64xf32>, vector<64x128xf32>, vector<8x128xf32> -> vector<8x128xf32>
    %323 = arith.addf %319, %322 : vector<8x128xf32>
    %324 = vector.broadcast %289 : vector<1x128xf32> to vector<8x128xf32>
    %325 = arith.addf %323, %324 : vector<8x128xf32>
    %cst_81 = arith.constant 0.000000e+00 : f32
    %326 = vector.broadcast %cst_81 : f32 to vector<8x128xf32>
    %327 = arith.maximumf %325, %326 : vector<8x128xf32>
    %328 = arith.maximumf %308, %327 : vector<8x128xf32>
    %c1_82 = arith.constant 1 : index
    %c0_83 = arith.constant 0 : index
    %c0_84 = arith.constant 0 : index
    %329 = vector.load %arg4[%c1_82, %c0_83, %c0_84] : memref<9x64x128xf32, #tpu.memory_space<vmem>>, vector<1x64x128xf32>
    %330 = vector.shape_cast %329 : vector<1x64x128xf32> to vector<64x128xf32>
    %cst_85 = arith.constant dense<0.000000e+00> : vector<8x128xf32>
    %331 = tpu.matmul %279, %330, %cst_85 {dimension_numbers = #tpu.dot_dimension_numbers<[1], [0], [0], [1], [0, 0, 1, 1], [], []>} : vector<8x64xf32>, vector<64x128xf32>, vector<8x128xf32> -> vector<8x128xf32>
    %c2_86 = arith.constant 2 : index
    %c0_87 = arith.constant 0 : index
    %c0_88 = arith.constant 0 : index
    %332 = vector.load %arg4[%c2_86, %c0_87, %c0_88] : memref<9x64x128xf32, #tpu.memory_space<vmem>>, vector<1x64x128xf32>
    %333 = vector.shape_cast %332 : vector<1x64x128xf32> to vector<64x128xf32>
    %cst_89 = arith.constant dense<0.000000e+00> : vector<8x128xf32>
    %334 = tpu.matmul %282, %333, %cst_89 {dimension_numbers = #tpu.dot_dimension_numbers<[1], [0], [0], [1], [0, 0, 1, 1], [], []>} : vector<8x64xf32>, vector<64x128xf32>, vector<8x128xf32> -> vector<8x128xf32>
    %335 = arith.addf %331, %334 : vector<8x128xf32>
    %c4_90 = arith.constant 4 : index
    %c0_91 = arith.constant 0 : index
    %c0_92 = arith.constant 0 : index
    %336 = vector.load %arg4[%c4_90, %c0_91, %c0_92] : memref<9x64x128xf32, #tpu.memory_space<vmem>>, vector<1x64x128xf32>
    %337 = vector.shape_cast %336 : vector<1x64x128xf32> to vector<64x128xf32>
    %cst_93 = arith.constant dense<0.000000e+00> : vector<8x128xf32>
    %338 = tpu.matmul %285, %337, %cst_93 {dimension_numbers = #tpu.dot_dimension_numbers<[1], [0], [0], [1], [0, 0, 1, 1], [], []>} : vector<8x64xf32>, vector<64x128xf32>, vector<8x128xf32> -> vector<8x128xf32>
    %339 = arith.addf %335, %338 : vector<8x128xf32>
    %c5_94 = arith.constant 5 : index
    %c0_95 = arith.constant 0 : index
    %c0_96 = arith.constant 0 : index
    %340 = vector.load %arg4[%c5_94, %c0_95, %c0_96] : memref<9x64x128xf32, #tpu.memory_space<vmem>>, vector<1x64x128xf32>
    %341 = vector.shape_cast %340 : vector<1x64x128xf32> to vector<64x128xf32>
    %cst_97 = arith.constant dense<0.000000e+00> : vector<8x128xf32>
    %342 = tpu.matmul %288, %341, %cst_97 {dimension_numbers = #tpu.dot_dimension_numbers<[1], [0], [0], [1], [0, 0, 1, 1], [], []>} : vector<8x64xf32>, vector<64x128xf32>, vector<8x128xf32> -> vector<8x128xf32>
    %343 = arith.addf %339, %342 : vector<8x128xf32>
    %344 = vector.broadcast %289 : vector<1x128xf32> to vector<8x128xf32>
    %345 = arith.addf %343, %344 : vector<8x128xf32>
    %cst_98 = arith.constant 0.000000e+00 : f32
    %346 = vector.broadcast %cst_98 : f32 to vector<8x128xf32>
    %347 = arith.maximumf %345, %346 : vector<8x128xf32>
    %348 = arith.maximumf %328, %347 : vector<8x128xf32>
    %c0_99 = arith.constant 0 : index
    %c0_100 = arith.constant 0 : index
    %c0_101 = arith.constant 0 : index
    %349 = vector.load %arg4[%c0_99, %c0_100, %c0_101] : memref<9x64x128xf32, #tpu.memory_space<vmem>>, vector<1x64x128xf32>
    %350 = vector.shape_cast %349 : vector<1x64x128xf32> to vector<64x128xf32>
    %cst_102 = arith.constant dense<0.000000e+00> : vector<8x128xf32>
    %351 = tpu.matmul %279, %350, %cst_102 {dimension_numbers = #tpu.dot_dimension_numbers<[1], [0], [0], [1], [0, 0, 1, 1], [], []>} : vector<8x64xf32>, vector<64x128xf32>, vector<8x128xf32> -> vector<8x128xf32>
    %c1_103 = arith.constant 1 : index
    %c0_104 = arith.constant 0 : index
    %c0_105 = arith.constant 0 : index
    %352 = vector.load %arg4[%c1_103, %c0_104, %c0_105] : memref<9x64x128xf32, #tpu.memory_space<vmem>>, vector<1x64x128xf32>
    %353 = vector.shape_cast %352 : vector<1x64x128xf32> to vector<64x128xf32>
    %cst_106 = arith.constant dense<0.000000e+00> : vector<8x128xf32>
    %354 = tpu.matmul %282, %353, %cst_106 {dimension_numbers = #tpu.dot_dimension_numbers<[1], [0], [0], [1], [0, 0, 1, 1], [], []>} : vector<8x64xf32>, vector<64x128xf32>, vector<8x128xf32> -> vector<8x128xf32>
    %355 = arith.addf %351, %354 : vector<8x128xf32>
    %c3_107 = arith.constant 3 : index
    %c0_108 = arith.constant 0 : index
    %c0_109 = arith.constant 0 : index
    %356 = vector.load %arg4[%c3_107, %c0_108, %c0_109] : memref<9x64x128xf32, #tpu.memory_space<vmem>>, vector<1x64x128xf32>
    %357 = vector.shape_cast %356 : vector<1x64x128xf32> to vector<64x128xf32>
    %cst_110 = arith.constant dense<0.000000e+00> : vector<8x128xf32>
    %358 = tpu.matmul %285, %357, %cst_110 {dimension_numbers = #tpu.dot_dimension_numbers<[1], [0], [0], [1], [0, 0, 1, 1], [], []>} : vector<8x64xf32>, vector<64x128xf32>, vector<8x128xf32> -> vector<8x128xf32>
    %359 = arith.addf %355, %358 : vector<8x128xf32>
    %c4_111 = arith.constant 4 : index
    %c0_112 = arith.constant 0 : index
    %c0_113 = arith.constant 0 : index
    %360 = vector.load %arg4[%c4_111, %c0_112, %c0_113] : memref<9x64x128xf32, #tpu.memory_space<vmem>>, vector<1x64x128xf32>
    %361 = vector.shape_cast %360 : vector<1x64x128xf32> to vector<64x128xf32>
    %cst_114 = arith.constant dense<0.000000e+00> : vector<8x128xf32>
    %362 = tpu.matmul %288, %361, %cst_114 {dimension_numbers = #tpu.dot_dimension_numbers<[1], [0], [0], [1], [0, 0, 1, 1], [], []>} : vector<8x64xf32>, vector<64x128xf32>, vector<8x128xf32> -> vector<8x128xf32>
    %363 = arith.addf %359, %362 : vector<8x128xf32>
    %364 = vector.broadcast %289 : vector<1x128xf32> to vector<8x128xf32>
    %365 = arith.addf %363, %364 : vector<8x128xf32>
    %cst_115 = arith.constant 0.000000e+00 : f32
    %366 = vector.broadcast %cst_115 : f32 to vector<8x128xf32>
    %367 = arith.maximumf %365, %366 : vector<8x128xf32>
    %368 = arith.maximumf %348, %367 : vector<8x128xf32>
    %c0_116 = arith.constant 0 : index
    %c0_117 = arith.constant 0 : index
    %369 = vector.load %arg6[%c0_116, %c0_117] : memref<128x1024xf32, #tpu.memory_space<vmem>>, vector<128x1024xf32>
    %cst_118 = arith.constant dense<0.000000e+00> : vector<8x1024xf32>
    %370 = tpu.matmul %368, %369, %cst_118 {dimension_numbers = #tpu.dot_dimension_numbers<[1], [0], [0], [1], [0, 0, 1, 1], [], []>} : vector<8x128xf32>, vector<128x1024xf32>, vector<8x1024xf32> -> vector<8x1024xf32>
    %c0_119 = arith.constant 0 : index
    %c0_120 = arith.constant 0 : index
    %371 = vector.load %arg7[%c0_119, %c0_120] : memref<1x1024xf32, #tpu.memory_space<vmem>>, vector<1x1024xf32>
    %372 = vector.broadcast %371 : vector<1x1024xf32> to vector<8x1024xf32>
    %373 = arith.addf %370, %372 : vector<8x1024xf32>
    %cst_121 = arith.constant 0.000000e+00 : f32
    %374 = vector.broadcast %cst_121 : f32 to vector<8x1024xf32>
    %375 = arith.maximumf %373, %374 : vector<8x1024xf32>
    %c0_122 = arith.constant 0 : index
    %c0_123 = arith.constant 0 : index
    %376 = vector.load %arg8[%c0_122, %c0_123] : memref<1024x128xf32, #tpu.memory_space<vmem>>, vector<1024x128xf32>
    %cst_124 = arith.constant dense<0.000000e+00> : vector<8x128xf32>
    %377 = tpu.matmul %375, %376, %cst_124 {dimension_numbers = #tpu.dot_dimension_numbers<[1], [0], [0], [1], [0, 0, 1, 1], [], []>} : vector<8x1024xf32>, vector<1024x128xf32>, vector<8x128xf32> -> vector<8x128xf32>
    %c0_125 = arith.constant 0 : index
    %c0_126 = arith.constant 0 : index
    %378 = vector.load %arg9[%c0_125, %c0_126] : memref<1x128xf32, #tpu.memory_space<vmem>>, vector<1x128xf32>
    %379 = vector.broadcast %378 : vector<1x128xf32> to vector<8x128xf32>
    %380 = arith.addf %377, %379 : vector<8x128xf32>
    %c0_127 = arith.constant 0 : index
    %c0_128 = arith.constant 0 : index
    %381 = vector.load %arg10[%c0_127, %c0_128] : memref<8x128xf32, #tpu.memory_space<vmem>>, vector<8x128xf32>
    tpu.vector_store %arg10[%c0_127, %c0_128], %380 {strides = array<i32>} : memref<8x128xf32, #tpu.memory_space<vmem>>, vector<8x128xf32>,
    return
  }
  func.func @transform_0(%arg0: i32) -> (i32, i32) {
    %c0_i32 = arith.constant 0 : i32
    %c0_i32_0 = arith.constant 0 : i32
    return %arg0, %c0_i32 : i32, i32
  }
  func.func @transform_1(%arg0: i32) -> (i32, i32, i32) {
    %c0_i32 = arith.constant 0 : i32
    %c0_i32_0 = arith.constant 0 : i32
    %c0_i32_1 = arith.constant 0 : i32
    %c0_i32_2 = arith.constant 0 : i32
    return %c0_i32, %c0_i32_0, %c0_i32_1 : i32, i32, i32
  }
  func.func @transform_2(%arg0: i32) -> (i32, i32) {
    %c0_i32 = arith.constant 0 : i32
    %c0_i32_0 = arith.constant 0 : i32
    %c0_i32_1 = arith.constant 0 : i32
    return %c0_i32, %c0_i32_0 : i32, i32
  }
  func.func @transform_3(%arg0: i32) -> (i32, i32, i32) {
    %c0_i32 = arith.constant 0 : i32
    %c0_i32_0 = arith.constant 0 : i32
    %c0_i32_1 = arith.constant 0 : i32
    %c0_i32_2 = arith.constant 0 : i32
    return %c0_i32, %c0_i32_0, %c0_i32_1 : i32, i32, i32
  }
  func.func @transform_4(%arg0: i32) -> (i32, i32) {
    %c0_i32 = arith.constant 0 : i32
    %c0_i32_0 = arith.constant 0 : i32
    %c0_i32_1 = arith.constant 0 : i32
    return %c0_i32, %c0_i32_0 : i32, i32
  }
  func.func @transform_5(%arg0: i32) -> (i32, i32) {
    %c0_i32 = arith.constant 0 : i32
    %c0_i32_0 = arith.constant 0 : i32
    %c0_i32_1 = arith.constant 0 : i32
    return %c0_i32, %c0_i32_0 : i32, i32
  }
  func.func @transform_6(%arg0: i32) -> (i32, i32) {
    %c0_i32 = arith.constant 0 : i32
    %c0_i32_0 = arith.constant 0 : i32
    %c0_i32_1 = arith.constant 0 : i32
    return %c0_i32, %c0_i32_0 : i32, i32
  }
  func.func @transform_7(%arg0: i32) -> (i32, i32) {
    %c0_i32 = arith.constant 0 : i32
    %c0_i32_0 = arith.constant 0 : i32
    %c0_i32_1 = arith.constant 0 : i32
    return %c0_i32, %c0_i32_0 : i32, i32
  }
  func.func @transform_8(%arg0: i32) -> (i32, i32) {
    %c0_i32 = arith.constant 0 : i32
    %c0_i32_0 = arith.constant 0 : i32
    %c0_i32_1 = arith.constant 0 : i32
    return %c0_i32, %c0_i32_0 : i32, i32
  }
  func.func @transform_9(%arg0: i32) -> (i32, i32) {
    %c0_i32 = arith.constant 0 : i32
    %c0_i32_0 = arith.constant 0 : i32
    return %arg0, %c0_i32 : i32, i32
  }
}

</mosaic_0001>

<bundles_post_ra>
// kernel: waternet_forward.1
= control target key start
LH: loop header
LB: loop body
LE: loop exit
PB: predicated region body
PF: predicated region fallthrough
CT: control target
= control target key end

     0   :  { %14 = vsyncpa [#allocation3], 0  ;;  %s6267_s0 = inlined_call_operand.vmem [shape: f32[128,4], index: 0, kind: input, shape index: {}]   ;;  %s6268_s1 = inlined_call_operand.vmem [shape: f32[9,4,64], index: 1, kind: input, shape index: {}]   ;;  %s6269_s2 = inlined_call_operand.vmem [shape: f32[1,64], index: 2, kind: input, shape index: {}]   ;;  %s6270_s3 = inlined_call_operand.hbm [shape: f32[9,64,128], index: 3, kind: input, shape index: {}]   ;;  %s6271_s4 = inlined_call_operand.vmem [shape: f32[1,128], index: 4, kind: input, shape index: {}]   ;;  %s6272_s5 = inlined_call_operand.hbm [shape: f32[128,1024], index: 5, kind: input, shape index: {}]   ;;  %s6273_s6 = inlined_call_operand.vmem [shape: f32[1,1024], index: 6, kind: input, shape index: {}]   ;;  %s6274_s7 = inlined_call_operand.hbm [shape: f32[1024,128], index: 7, kind: input, shape index: {}]   ;;  %s6275_s8 = inlined_call_operand.vmem [shape: f32[1,128], index: 8, kind: input, shape index: {}]   ;;  %s6276_s9 = inlined_call_operand.vmem [shape: f32[8,128], index: 9, kind: output, shape index: {}]  }
   0x1   :  { %15 = vsyncpa [#allocation5], 0  ;;  %s5409_s30 = smov [#allocation4]   ;;  %s5339_s13 = scalar_lea.hbm %s6272_s5, 16384 }
   0x2   :  { %s41_s10 = sshll.u32 %s5409_s30, 4  ;;  %p5340_p0 = scmp.ne.s32.totalorder %s6272_s5, %s5339_s13  ;;  %s42_s10 = int_to_ptr.vmem [resolvable:$true] %s41_s10 }
   0x3   :  { %p5343_p1 = scmp.lt.u32.totalorder %s5339_s13, %s6272_s5 }
   0x5   :  { %p5345_p2 = pnand %p5343_p1, %p5340_p0 }
   0x7   :  { %5348 = shalt.err (!%p5345_p2)
}
   0x8   :  { %s5349_s18 = scalar_lea.vmem %s42_s10, 16384  ;;  %p5354_p4 = scmp.lt.s32.totalorder %s42_s10, %s42_s10 }
   0x9   :  { %p5350_p3 = scmp.ne.s32.totalorder %s42_s10, %s5349_s18  ;;  %p5355_p5 = scmp.lt.s32.totalorder %s5349_s18, %s5349_s18 }
   0xb   :  { %p5356_p6 = por %p5355_p5, %p5354_p4 }
   0xd   :  { %p5357_p7 = pnand %p5356_p6, %p5350_p3 }
   0xf   :  { %5360 = shalt.err (!%p5357_p7)
}
  0x10   :  { %s5410_s19 = smov 1024   ;;  %s5411_s20 = smov 64  }
  0x11   :  { %47 = dma.hbm_to_vmem [thread:$0]  %s6272_s5, 16384, %s42_s10, [#allocation5], %s5410_s19, %s5410_s19, %s5411_s20  }
  0x12   :  { %s5412_s23 = smov [#allocation2]   ;;  %s5361_s27 = scalar_lea.hbm %s6270_s3, 9216 }
  0x13   :  { %s27_s24 = sshll.u32 %s5412_s23, 4  ;;  %p5362_p8 = scmp.ne.s32.totalorder %s6270_s3, %s5361_s27  ;;  %s28_s24 = int_to_ptr.vmem [resolvable:$true] %s27_s24 }
  0x14   :  { %p5365_p9 = scmp.lt.u32.totalorder %s5361_s27, %s6270_s3 }
  0x16   :  { %p5367_p10 = pnand %p5365_p9, %p5362_p8 }
  0x18   :  { %5370 = shalt.err (!%p5367_p10)
}
  0x19   :  { %s5371_s12 = scalar_lea.vmem %s28_s24, 9216  ;;  %p5376_p12 = scmp.lt.s32.totalorder %s28_s24, %s28_s24 }
  0x1a   :  { %p5372_p11 = scmp.ne.s32.totalorder %s28_s24, %s5371_s12  ;;  %p5377_p13 = scmp.lt.s32.totalorder %s5371_s12, %s5371_s12 }
  0x1c   :  { %p5378_p0 = por %p5377_p13, %p5376_p12 }
  0x1e   :  { %p5379_p1 = pnand %p5378_p0, %p5372_p11 }
  0x20   :  { %5382 = shalt.err (!%p5379_p1)
}
  0x21   :  { %s5413_s5 = smov 128   ;;  %s5414_s10 = smov 8  }
  0x22   :  { %33 = dma.hbm_to_vmem [thread:$0]  %s6270_s3, 9216, %s28_s24, [#allocation3], %s5413_s5, %s5413_s5, %s5414_s10  }
  0x23   :  { %s5415_s15 = smov [#allocation6]   ;;  %s5383_s19 = scalar_lea.hbm %s6274_s7, 16384 }
  0x24   :  { %s55_s16 = sshll.u32 %s5415_s15, 4  ;;  %p5384_p2 = scmp.ne.s32.totalorder %s6274_s7, %s5383_s19  ;;  %s56_s16 = int_to_ptr.vmem [resolvable:$true] %s55_s16 }
  0x25   :  { %p5387_p3 = scmp.lt.u32.totalorder %s5383_s19, %s6274_s7 }
  0x27   :  { %p5389_p4 = pnand %p5387_p3, %p5384_p2 }
  0x29   :  { %5392 = shalt.err (!%p5389_p4)
}
  0x2a   :  { %s5393_s25 = scalar_lea.vmem %s56_s16, 16384  ;;  %p5398_p6 = scmp.lt.s32.totalorder %s56_s16, %s56_s16 }
  0x2b   :  { %p5394_p5 = scmp.ne.s32.totalorder %s56_s16, %s5393_s25  ;;  %p5399_p7 = scmp.lt.s32.totalorder %s5393_s25, %s5393_s25 }
  0x2d   :  { %p5400_p8 = por %p5399_p7, %p5398_p6 }
  0x2f   :  { %p5401_p9 = pnand %p5400_p8, %p5394_p5 }
  0x31   :  { %5404 = shalt.err (!%p5401_p9)
}
  0x32   :  { %61 = dma.hbm_to_vmem [thread:$0]  %s6274_s7, 16384, %s56_s16, [#allocation5], %s5413_s5, %s5413_s5, %s5414_s10  }
  0x33   :  { %5405 = dma.done.wait [#allocation3], 9216  }
  0x34   :  { %5406 = vsyncadd [#allocation3], 4294958080 }
  0x35   :  { %5407 = dma.done.wait [#allocation5], 32768  }
  0x36   :  { %5408 = vsyncadd [#allocation5], 4294934528  ;;  %vm140_vm0 = vcmask 1043456   ;;  %vm91_vm1 = vcmask 31744   ;;  %v90_v0 = vld [vmem:[%s6268_s1] sm:$0xf] }
  0x37   :  { %v3719_v1 = vld [vmem:[%s6268_s1 + $0x4] sm:$0xf]  ;;  %4319 = vmatprep.subr.msk.mxu0 %vm140_vm0, %v90_v0  ;;  %v5521_v3 = vld [vmem:[%s6267_s0 + $0x8] sm:$0xff]  ;;  %v5532_v5 = vld [vmem:[%s6267_s0 + $0x10] sm:$0xff]  ;;  %v5416_v36 = vmov 0.0|0.0   ;;  %vm5417_vm2 = vmmov 0  }
  0x38   :  { %v5514_v2 = vld [vmem:[%s6267_s0] sm:$0xff]  ;;  %4345 = vmatprep.subr.msk.mxu1 %vm140_vm0, %v3719_v1  ;;  %4320 = vmatpush3.msk.msra.mxu0 %vm140_vm0, %v90_v0  ;;  %v3737_v4 = vld [vmem:[%s6268_s1 + $0x8] sm:$0xf]  ;;  %v5547_v6 = vld [vmem:[%s6267_s0 + $0x18] sm:$0xff]  ;;  %vm1598_vm3 = vcmask 523264  }
  0x39   :  { %4321 = vmatprep.mubr.msk.f32.mxu0 %vm91_vm1, %v5514_v2  ;;  %4346 = vmatpush3.msk.msra.mxu1 %vm140_vm0, %v3719_v1  ;;  %v5555_v7 = vld [vmem:[%s6267_s0 + $0x20] sm:$0xff]  ;;  %v3773_v8 = vld [vmem:[%s6268_s1 + $0x10] sm:$0xf]  ;;  %v3755_v9 = vld [vmem:[%s6268_s1 + $0xc] sm:$0xf] }
  0x3a   :  { %4347 = vmatprep.mubr.msk.f32.mxu1 %vm91_vm1, %v5514_v2  ;;  %4322 = vmatmul.mubr.msk.f32.vlgmr.msra.gmra.mrb[0].mxu0 %vm91_vm1, %v5521_v3  ;;  %v3791_v10 = vld [vmem:[%s6268_s1 + $0x14] sm:$0xf]  ;;  %v5579_v11 = vld [vmem:[%s6267_s0 + $0x28] sm:$0xff]  ;;  %v5599_v13 = vld [vmem:[%s6267_s0 + $0x38] sm:$0xff] }
  0x3b   :  { %4348 = vmatmul.mubr.msk.f32.vlgmr.msra.gmra.mrb[0].mxu1 %vm91_vm1, %v5521_v3  ;;  %4371 = vmatprep.subr.msk.mxu0 %vm140_vm0, %v3737_v4  ;;  %v5584_v12 = vld [vmem:[%s6267_s0 + $0x30] sm:$0xff]  ;;  %v5604_v14 = vld [vmem:[%s6267_s0 + $0x40] sm:$0xff]  ;;  %v5617_v15 = vld [vmem:[%s6267_s0 + $0x48] sm:$0xff] }
  0x3c   :  { %4324 = vmatprep.mubr.msk.f32.mxu0 %vm91_vm1, %v5532_v5  ;;  %4372 = vmatpush3.msk.msra.mxu0 %vm140_vm0, %v3737_v4  ;;  %v5622_v16 = vld [vmem:[%s6267_s0 + $0x50] sm:$0xff]  ;;  %v5635_v17 = vld [vmem:[%s6267_s0 + $0x58] sm:$0xff]  ;;  %v5640_v18 = vld [vmem:[%s6267_s0 + $0x60] sm:$0xff] }
  0x3d   :  { %4350 = vmatprep.mubr.msk.f32.mxu1 %vm91_vm1, %v5532_v5  ;;  %4423 = vmatprep.subr.msk.mxu1 %vm140_vm0, %v3773_v8  ;;  %v5653_v19 = vld [vmem:[%s6267_s0 + $0x68] sm:$0xff]  ;;  %v5658_v20 = vld [vmem:[%s6267_s0 + $0x70] sm:$0xff]  ;;  %v5671_v21 = vld [vmem:[%s6267_s0 + $0x78] sm:$0xff] }
  0x3e   :  { %4397 = vmatprep.subr.msk.mxu0 %vm140_vm0, %v3755_v9  ;;  %4325 = vmatmul.mubr.msk.f32.gmra.mrb[2].mxu0 %vm91_vm1, %v5547_v6  ;;  %v3827_v22 = vld [vmem:[%s6268_s1 + $0x1c] sm:$0xf]  ;;  %v3809_v23 = vld [vmem:[%s6268_s1 + $0x18] sm:$0xf]  ;;  %v3845_v24 = vld [vmem:[%s6268_s1 + $0x20] sm:$0xf] }
  0x3f   :  { %4351 = vmatmul.mubr.msk.f32.gmra.mrb[2].mxu1 %vm91_vm1, %v5547_v6  ;;  %4327 = vmatprep.mubr.msk.f32.mxu0 %vm91_vm1, %v5555_v7  ;;  %v1590_v32 = vld [vmem:[#allocation2 + $0x140] sm:$0xff]  ;;  %v1591_v33 = vld [vmem:[#allocation2 + $0x148] sm:$0xff]  ;;  %v1592_v49 = vld [vmem:[#allocation2 + $0x150] sm:$0xff] }
  0x40   :  { %4353 = vmatprep.mubr.msk.f32.mxu1 %vm91_vm1, %v5555_v7  ;;  %4424 = vmatpush3.msk.msra.mxu1 %vm140_vm0, %v3773_v8  ;;  %v5923_v37 = vpack.c.bf16 %v1591_v33, %v1590_v32  ;;  %v1593_v50 = vld [vmem:[#allocation2 + $0x158] sm:$0xff]  ;;  %v1594_v61 = vld [vmem:[#allocation2 + $0x160] sm:$0xff]  ;;  %v1595_v62 = vld [vmem:[#allocation2 + $0x168] sm:$0xff] }
  0x41   :  { %4449 = vmatprep.subr.msk.mxu1 %vm140_vm0, %v3791_v10  ;;  %v5940_v53 = vpack.c.bf16 %v1593_v50, %v1592_v49  ;;  %v5948_v1 = vpack.c.bf16 %v1595_v62, %v1594_v61  ;;  %v1752_v32 = vld [vmem:[#allocation2 + $0x1f0] sm:$0xff]  ;;  %v1753_v33 = vld [vmem:[#allocation2 + $0x1f8] sm:$0xff] }
  0x42   :  { %4328 = vmatmul.mubr.msk.f32.gmra.mrb[4].mxu0 %vm91_vm1, %v5579_v11 }
  0x43   :  { %4354 = vmatmul.mubr.msk.f32.gmra.mrb[4].mxu1 %vm91_vm1, %v5579_v11  ;;  %4330 = vmatprep.mubr.msk.f32.mxu0 %vm91_vm1, %v5584_v12 }
  0x44   :  { %4356 = vmatprep.mubr.msk.f32.mxu1 %vm91_vm1, %v5584_v12 }
  0x46   :  { %4331 = vmatmul.mubr.msk.f32.gmra.mrb[6].mxu0 %vm91_vm1, %v5599_v13 }
  0x47   :  { %4357 = vmatmul.mubr.msk.f32.gmra.mrb[6].mxu1 %vm91_vm1, %v5599_v13  ;;  %4333 = vmatprep.mubr.msk.f32.mxu0 %vm91_vm1, %v5604_v14 }
  0x48   :  { %4359 = vmatprep.mubr.msk.f32.mxu1 %vm91_vm1, %v5604_v14 }
  0x4a   :  { %4334 = vmatmul.mubr.msk.f32.gmra.mrb[8].mxu0 %vm91_vm1, %v5617_v15 }
  0x4b   :  { %4360 = vmatmul.mubr.msk.f32.gmra.mrb[8].mxu1 %vm91_vm1, %v5617_v15  ;;  %4336 = vmatprep.mubr.msk.f32.mxu0 %vm91_vm1, %v5622_v16 }
  0x4c   :  { %4362 = vmatprep.mubr.msk.f32.mxu1 %vm91_vm1, %v5622_v16 }
  0x4e   :  { %4337 = vmatmul.mubr.msk.f32.gmra.mrb[10].mxu0 %vm91_vm1, %v5635_v17 }
  0x4f   :  { %4363 = vmatmul.mubr.msk.f32.gmra.mrb[10].mxu1 %vm91_vm1, %v5635_v17  ;;  %4339 = vmatprep.mubr.msk.f32.mxu0 %vm91_vm1, %v5640_v18 }
  0x50   :  { %4365 = vmatprep.mubr.msk.f32.mxu1 %vm91_vm1, %v5640_v18 }
  0x52   :  { %4340 = vmatmul.mubr.msk.f32.gmra.mrb[12].mxu0 %vm91_vm1, %v5653_v19 }
  0x53   :  { %4366 = vmatmul.mubr.msk.f32.gmra.mrb[12].mxu1 %vm91_vm1, %v5653_v19  ;;  %4342 = vmatprep.mubr.msk.f32.mxu0 %vm91_vm1, %v5658_v20 }
  0x54   :  { %4368 = vmatprep.mubr.msk.f32.mxu1 %vm91_vm1, %v5658_v20 }
  0x56   :  { %4343 = vmatmul.mubr.msk.f32.gmra.mrb[14].mxu0 %vm91_vm1, %v5671_v21 }
  0x57   :  { %4369 = vmatmul.mubr.msk.f32.gmra.mrb[14].mxu1 %vm91_vm1, %v5671_v21  ;;  %4373 = vmatprep.mubr.msk.f32.mxu0 %vm91_vm1, %v5514_v2 }
  0x58   :  { %4425 = vmatprep.mubr.msk.f32.mxu1 %vm91_vm1, %v5514_v2 }
  0x5a   :  { %4374 = vmatmul.mubr.msk.f32.vlgmr.msra.gmra.mrb[16].mxu0 %vm91_vm1, %v5521_v3 }
  0x5b   :  { %4426 = vmatmul.mubr.msk.f32.vlgmr.msra.gmra.mrb[16].mxu1 %vm91_vm1, %v5521_v3  ;;  %4398 = vmatpush3.msk.msra.mxu0 %vm140_vm0, %v3755_v9  ;;  %v1596_v9 = vld [vmem:[#allocation2 + $0x170] sm:$0xff] }
  0x5c   :  { %4376 = vmatprep.mubr.msk.f32.mxu0 %vm91_vm1, %v5532_v5  ;;  %4428 = vmatprep.mubr.msk.f32.mxu1 %vm91_vm1, %v5532_v5 }
  0x5d   :  { %4450 = vmatpush3.msk.msra.mxu1 %vm140_vm0, %v3791_v10  ;;  %4501 = vmatprep.subr.msk.mxu0 %vm140_vm0, %v3827_v22  ;;  %v1597_v10 = vld [vmem:[#allocation2 + $0x178] sm:$0xff] }
  0x5e   :  { %4475 = vmatprep.subr.msk.mxu1 %vm140_vm0, %v3809_v23  ;;  %4377 = vmatmul.mubr.msk.f32.gmra.mrb[18].mxu0 %vm91_vm1, %v5547_v6 }
  0x5f   :  { %4429 = vmatmul.mubr.msk.f32.gmra.mrb[18].mxu1 %vm91_vm1, %v5547_v6  ;;  %4379 = vmatprep.mubr.msk.f32.mxu0 %vm91_vm1, %v5555_v7 }
  0x60   :  { %4431 = vmatprep.mubr.msk.f32.mxu1 %vm91_vm1, %v5555_v7 }
  0x62   :  { %4380 = vmatmul.mubr.msk.f32.gmra.mrb[20].mxu0 %vm91_vm1, %v5579_v11 }
  0x63   :  { %4432 = vmatmul.mubr.msk.f32.gmra.mrb[20].mxu1 %vm91_vm1, %v5579_v11  ;;  %4382 = vmatprep.mubr.msk.f32.mxu0 %vm91_vm1, %v5584_v12 }
  0x64   :  { %4434 = vmatprep.mubr.msk.f32.mxu1 %vm91_vm1, %v5584_v12 }
  0x66   :  { %4383 = vmatmul.mubr.msk.f32.gmra.mrb[22].mxu0 %vm91_vm1, %v5599_v13 }
  0x67   :  { %4435 = vmatmul.mubr.msk.f32.gmra.mrb[22].mxu1 %vm91_vm1, %v5599_v13  ;;  %4385 = vmatprep.mubr.msk.f32.mxu0 %vm91_vm1, %v5604_v14 }
  0x68   :  { %4437 = vmatprep.mubr.msk.f32.mxu1 %vm91_vm1, %v5604_v14 }
  0x6a   :  { %4386 = vmatmul.mubr.msk.f32.gmra.mrb[24].mxu0 %vm91_vm1, %v5617_v15 }
  0x6b   :  { %4438 = vmatmul.mubr.msk.f32.gmra.mrb[24].mxu1 %vm91_vm1, %v5617_v15  ;;  %4388 = vmatprep.mubr.msk.f32.mxu0 %vm91_vm1, %v5622_v16 }
  0x6c   :  { %4440 = vmatprep.mubr.msk.f32.mxu1 %vm91_vm1, %v5622_v16 }
  0x6e   :  { %4389 = vmatmul.mubr.msk.f32.gmra.mrb[26].mxu0 %vm91_vm1, %v5635_v17 }
  0x6f   :  { %4441 = vmatmul.mubr.msk.f32.gmra.mrb[26].mxu1 %vm91_vm1, %v5635_v17  ;;  %4391 = vmatprep.mubr.msk.f32.mxu0 %vm91_vm1, %v5640_v18 }
  0x70   :  { %4443 = vmatprep.mubr.msk.f32.mxu1 %vm91_vm1, %v5640_v18 }
  0x72   :  { %4392 = vmatmul.mubr.msk.f32.gmra.mrb[28].mxu0 %vm91_vm1, %v5653_v19 }
  0x73   :  { %4444 = vmatmul.mubr.msk.f32.gmra.mrb[28].mxu1 %vm91_vm1, %v5653_v19  ;;  %4394 = vmatprep.mubr.msk.f32.mxu0 %vm91_vm1, %v5658_v20 }
  0x74   :  { %4446 = vmatprep.mubr.msk.f32.mxu1 %vm91_vm1, %v5658_v20 }
  0x76   :  { %4395 = vmatmul.mubr.msk.f32.gmra.mrb[30].mxu0 %vm91_vm1, %v5671_v21 }
  0x77   :  { %4447 = vmatmul.mubr.msk.f32.gmra.mrb[30].mxu1 %vm91_vm1, %v5671_v21  ;;  %4399 = vmatprep.mubr.msk.f32.mxu0 %vm91_vm1, %v5514_v2 }
  0x78   :  { %4451 = vmatprep.mubr.msk.f32.mxu1 %vm91_vm1, %v5514_v2 }
  0x7a   :  { %4400 = vmatmul.mubr.msk.f32.vlgmr.msra.gmra.mrb[32].mxu0 %vm91_vm1, %v5521_v3 }
  0x7b   :  { %4452 = vmatmul.mubr.msk.f32.vlgmr.msra.gmra.mrb[32].mxu1 %vm91_vm1, %v5521_v3  ;;  %4502 = vmatpush3.msk.msra.mxu0 %vm140_vm0, %v3827_v22  ;;  %v1750_v22 = vld [vmem:[#allocation2 + $0x1e0] sm:$0xff] }
  0x7c   :  { %4402 = vmatprep.mubr.msk.f32.mxu0 %vm91_vm1, %v5532_v5  ;;  %4454 = vmatprep.mubr.msk.f32.mxu1 %vm91_vm1, %v5532_v5 }
  0x7d   :  { %4476 = vmatpush3.msk.msra.mxu1 %vm140_vm0, %v3809_v23  ;;  %4527 = vmatprep.subr.msk.mxu0 %vm140_vm0, %v3845_v24  ;;  %v1751_v23 = vld [vmem:[#allocation2 + $0x1e8] sm:$0xff] }
  0x7e   :  { %4403 = vmatmul.mubr.msk.f32.gmra.mrb[34].mxu0 %vm91_vm1, %v5547_v6  ;;  %4857 = vmatprep.subr.bf16.mxu1 %v5416_v36 }
  0x7f   :  { %4455 = vmatmul.mubr.msk.f32.gmra.mrb[34].mxu1 %vm91_vm1, %v5547_v6  ;;  %4405 = vmatprep.mubr.msk.f32.mxu0 %vm91_vm1, %v5555_v7 }
  0x80   :  { %4457 = vmatprep.mubr.msk.f32.mxu1 %vm91_vm1, %v5555_v7 }
  0x82   :  { %4406 = vmatmul.mubr.msk.f32.gmra.mrb[18].mxu0 %vm91_vm1, %v5579_v11 }
  0x83   :  { %4458 = vmatmul.mubr.msk.f32.gmra.mrb[36].mxu1 %vm91_vm1, %v5579_v11  ;;  %4408 = vmatprep.mubr.msk.f32.mxu0 %vm91_vm1, %v5584_v12 }
  0x84   :  { %4460 = vmatprep.mubr.msk.f32.mxu1 %vm91_vm1, %v5584_v12 }
  0x86   :  { %4409 = vmatmul.mubr.msk.f32.gmra.mrb[36].mxu0 %vm91_vm1, %v5599_v13 }
  0x87   :  { %4461 = vmatmul.mubr.msk.f32.gmra.mrb[38].mxu1 %vm91_vm1, %v5599_v13  ;;  %4411 = vmatprep.mubr.msk.f32.mxu0 %vm91_vm1, %v5604_v14 }
  0x88   :  { %4463 = vmatprep.mubr.msk.f32.mxu1 %vm91_vm1, %v5604_v14 }
  0x8a   :  { %4412 = vmatmul.mubr.msk.f32.gmra.mrb[22].mxu0 %vm91_vm1, %v5617_v15 }
  0x8b   :  { %4464 = vmatmul.mubr.msk.f32.gmra.mrb[40].mxu1 %vm91_vm1, %v5617_v15  ;;  %4414 = vmatprep.mubr.msk.f32.mxu0 %vm91_vm1, %v5622_v16 }
  0x8c   :  { %4466 = vmatprep.mubr.msk.f32.mxu1 %vm91_vm1, %v5622_v16 }
  0x8e   :  { %4415 = vmatmul.mubr.msk.f32.gmra.mrb[38].mxu0 %vm91_vm1, %v5635_v17 }
  0x8f   :  { %4467 = vmatmul.mubr.msk.f32.gmra.mrb[42].mxu1 %vm91_vm1, %v5635_v17  ;;  %4417 = vmatprep.mubr.msk.f32.mxu0 %vm91_vm1, %v5640_v18 }
  0x90   :  { %4469 = vmatprep.mubr.msk.f32.mxu1 %vm91_vm1, %v5640_v18 }
  0x92   :  { %4418 = vmatmul.mubr.msk.f32.gmra.mrb[26].mxu0 %vm91_vm1, %v5653_v19 }
  0x93   :  { %4470 = vmatmul.mubr.msk.f32.gmra.mrb[44].mxu1 %vm91_vm1, %v5653_v19  ;;  %4420 = vmatprep.mubr.msk.f32.mxu0 %vm91_vm1, %v5658_v20 }
  0x94   :  { %4472 = vmatprep.mubr.msk.f32.mxu1 %vm91_vm1, %v5658_v20 }
  0x96   :  { %4421 = vmatmul.mubr.msk.f32.gmra.mrb[40].mxu0 %vm91_vm1, %v5671_v21 }
  0x97   :  { %4473 = vmatmul.mubr.msk.f32.gmra.mrb[46].mxu1 %vm91_vm1, %v5671_v21  ;;  %4503 = vmatprep.mubr.msk.f32.mxu0 %vm91_vm1, %v5514_v2 }
  0x98   :  { %4477 = vmatprep.mubr.msk.f32.mxu1 %vm91_vm1, %v5514_v2 }
  0x9a   :  { %4504 = vmatmul.mubr.msk.f32.vlgmr.msra.gmra.mrb[42].mxu0 %vm91_vm1, %v5521_v3 }
  0x9b   :  { %4478 = vmatmul.mubr.msk.f32.vlgmr.msra.gmra.mrb[48].mxu1 %vm91_vm1, %v5521_v3  ;;  %4528 = vmatpush3.msk.msra.mxu0 %vm140_vm0, %v3845_v24  ;;  %v5972_v24 = vpack.c.bf16 %v1751_v23, %v1750_v22 }
  0x9c   :  { %4480 = vmatprep.mubr.msk.f32.mxu1 %vm91_vm1, %v5532_v5  ;;  %4506 = vmatprep.mubr.msk.f32.mxu0 %vm91_vm1, %v5532_v5 }
  0x9d   :  { %4881 = vmatprep.subr.bf16.mxu0 %v5416_v36  ;;  %4859 = vmatpush3.bf16.msra.mxu1 %v5923_v37 }
  0x9e   :  { %4507 = vmatmul.mubr.msk.f32.gmra.mrb[44].mxu0 %vm91_vm1, %v5547_v6  ;;  %4860 = vmatprep.subr.bf16.mxu1 %v5416_v36 }
  0x9f   :  { %4481 = vmatmul.mubr.msk.f32.gmra.mrb[50].mxu1 %vm91_vm1, %v5547_v6  ;;  %4509 = vmatprep.mubr.msk.f32.mxu0 %vm91_vm1, %v5555_v7 }
  0xa0   :  { %4483 = vmatprep.mubr.msk.f32.mxu1 %vm91_vm1, %v5555_v7 }
  0xa1   :  { %4862 = vmatpush3.bf16.msra.mxu1 %v5940_v53 }
  0xa2   :  { %4510 = vmatmul.mubr.msk.f32.gmra.mrb[46].mxu0 %vm91_vm1, %v5579_v11  ;;  %4863 = vmatprep.subr.bf16.mxu1 %v5416_v36 }
  0xa3   :  { %4484 = vmatmul.mubr.msk.f32.gmra.mrb[34].mxu1 %vm91_vm1, %v5579_v11  ;;  %4512 = vmatprep.mubr.msk.f32.mxu0 %vm91_vm1, %v5584_v12 }
  0xa4   :  { %4486 = vmatprep.mubr.msk.f32.mxu1 %vm91_vm1, %v5584_v12 }
  0xa5   :  { %4865 = vmatpush3.bf16.msra.mxu1 %v5948_v1 }
  0xa6   :  { %4513 = vmatmul.mubr.msk.f32.gmra.mrb[48].mxu0 %vm91_vm1, %v5599_v13  ;;  %4866 = vmatprep.subr.bf16.mxu1 %v5416_v36 }
  0xa7   :  { %4487 = vmatmul.mubr.msk.f32.gmra.mrb[52].mxu1 %vm91_vm1, %v5599_v13  ;;  %4515 = vmatprep.mubr.msk.f32.mxu0 %vm91_vm1, %v5604_v14 }
  0xa8   :  { %4489 = vmatprep.mubr.msk.f32.mxu1 %vm91_vm1, %v5604_v14 }
  0xaa   :  { %4516 = vmatmul.mubr.msk.f32.gmra.mrb[50].mxu0 %vm91_vm1, %v5617_v15 }
  0xab   :  { %4490 = vmatmul.mubr.msk.f32.gmra.mrb[38].mxu1 %vm91_vm1, %v5617_v15  ;;  %4518 = vmatprep.mubr.msk.f32.mxu0 %vm91_vm1, %v5622_v16 }
  0xac   :  { %4492 = vmatprep.mubr.msk.f32.mxu1 %vm91_vm1, %v5622_v16 }
  0xae   :  { %4519 = vmatmul.mubr.msk.f32.gmra.mrb[52].mxu0 %vm91_vm1, %v5635_v17 }
  0xaf   :  { %4493 = vmatmul.mubr.msk.f32.gmra.mrb[54].mxu1 %vm91_vm1, %v5635_v17  ;;  %4521 = vmatprep.mubr.msk.f32.mxu0 %vm91_vm1, %v5640_v18 }
  0xb0   :  { %4495 = vmatprep.mubr.msk.f32.mxu1 %vm91_vm1, %v5640_v18 }
  0xb2   :  { %4522 = vmatmul.mubr.msk.f32.gmra.mrb[54].mxu0 %vm91_vm1, %v5653_v19 }
  0xb3   :  { %4496 = vmatmul.mubr.msk.f32.gmra.mrb[42].mxu1 %vm91_vm1, %v5653_v19  ;;  %4524 = vmatprep.mubr.msk.f32.mxu0 %vm91_vm1, %v5658_v20 }
  0xb4   :  { %4498 = vmatprep.mubr.msk.f32.mxu1 %vm91_vm1, %v5658_v20 }
  0xb6   :  { %4525 = vmatmul.mubr.msk.f32.gmra.mrb[56].mxu0 %vm91_vm1, %v5671_v21 }
  0xb7   :  { %4499 = vmatmul.mubr.msk.f32.gmra.mrb[56].mxu1 %vm91_vm1, %v5671_v21  ;;  %4529 = vmatprep.mubr.msk.f32.mxu0 %vm91_vm1, %v5514_v2  ;;  %v1746_v2 = vld [vmem:[#allocation2 + $0x1c0] sm:$0xff] }
  0xba   :  { %4530 = vmatmul.mubr.msk.f32.vlgmr.msra.gmra.mrb[58].mxu0 %vm91_vm1, %v5521_v3  ;;  %v1747_v3 = vld [vmem:[#allocation2 + $0x1c8] sm:$0xff] }
  0xbb   :  { %4532 = vmatprep.mubr.msk.f32.mxu0 %vm91_vm1, %v5532_v5 }
  0xbe   :  { %4533 = vmatmul.mubr.msk.f32.gmra.mrb[60].mxu0 %vm91_vm1, %v5547_v6  ;;  %v5954_v6 = vpack.c.bf16 %v1747_v3, %v1746_v2 }
  0xbf   :  { %4535 = vmatprep.mubr.msk.f32.mxu0 %vm91_vm1, %v5555_v7 }
  0xc0   :  { %4883 = vmatpush3.bf16.msra.mxu0 %v5954_v6 }
  0xc1   :  { %4884 = vmatprep.subr.bf16.mxu0 %v5416_v36 }
  0xc2   :  { %4536 = vmatmul.mubr.msk.f32.gmra.mrb[62].mxu0 %vm91_vm1, %v5579_v11 }
  0xc3   :  { %4538 = vmatprep.mubr.msk.f32.mxu0 %vm91_vm1, %v5584_v12 }
  0xc6   :  { %4539 = vmatmul.mubr.msk.f32.gmra.mrb[64].mxu0 %vm91_vm1, %v5599_v13  ;;  %v5959_v13 = vpack.c.bf16 %v1597_v10, %v1596_v9 }
  0xc7   :  { %4541 = vmatprep.mubr.msk.f32.mxu0 %vm91_vm1, %v5604_v14  ;;  %v1748_v14 = vld [vmem:[#allocation2 + $0x1d0] sm:$0xff] }
  0xc8   :  { %4868 = vmatpush3.bf16.msra.mxu1 %v5959_v13 }
  0xc9   :  { %4869 = vmatprep.subr.bf16.mxu1 %v5416_v36 }
  0xca   :  { %4542 = vmatmul.mubr.msk.f32.gmra.mrb[66].mxu0 %vm91_vm1, %v5617_v15  ;;  %v1749_v15 = vld [vmem:[#allocation2 + $0x1d8] sm:$0xff] }
  0xcb   :  { %4544 = vmatprep.mubr.msk.f32.mxu0 %vm91_vm1, %v5622_v16  ;;  %v5962_v16 = vpack.c.bf16 %v1749_v15, %v1748_v14 }
  0xcd   :  { %4886 = vmatpush3.bf16.msra.mxu0 %v5962_v16 }
  0xce   :  { %4545 = vmatmul.mubr.msk.f32.gmra.mrb[68].mxu0 %vm91_vm1, %v5635_v17  ;;  %4887 = vmatprep.subr.bf16.mxu0 %v5416_v36 }
  0xcf   :  { %4547 = vmatprep.mubr.msk.f32.mxu0 %vm91_vm1, %v5640_v18 }
  0xd1   :  { %4889 = vmatpush3.bf16.msra.mxu0 %v5972_v24 }
  0xd2   :  { %4548 = vmatmul.mubr.msk.f32.gmra.mrb[70].mxu0 %vm91_vm1, %v5653_v19  ;;  %4890 = vmatprep.subr.bf16.mxu0 %v5416_v36 }
  0xd3   :  { %4550 = vmatprep.mubr.msk.f32.mxu0 %vm91_vm1, %v5658_v20 }
  0xd6   :  { %4551 = vmatmul.mubr.msk.f32.gmra.mrb[72].mxu0 %vm91_vm1, %v5671_v21  ;;  %v5418_v21 = vmov 0.0  }
  0xd7   :  { %4569 = vmatprep.mubr.msk.f32.mxu1 %vm5417_vm2, %v5418_v21  ;;  %4607 = vmatprep.mubr.msk.f32.mxu0 %vm5417_vm2, %v5418_v21 }
 0x10d   :  { %v4323_v25 = vpop.f32.mrb[0].mxu0 }
 0x10e   :  { %v4349_v26 = vpop.f32.mrb[0].mxu1  ;;  %v210_v27 = vpop.f32.mrb[1].mxu0 }
 0x10f   :  { %v5918_v28 = vpop.f32.mrb[1].mxu1  ;;  %v5920_v29 = vadd.f32 %v4349_v26, %v210_v27 }
 0x111   :  { %v4326_v30 = vpop.f32.mrb[2].mxu0 }
 0x112   :  { %v4352_v31 = vpop.f32.mrb[2].mxu1  ;;  %v220_v34 = vpop.f32.mrb[3].mxu0 }
 0x113   :  { %v363_v35 = vpop.f32.mrb[3].mxu1  ;;  %v5926_v38 = vadd.f32 %v4352_v31, %v220_v34  ;;  %v5977_v34 = vpack.c.bf16 %v1753_v33, %v1752_v32 }
 0x114   :  { %v5928_v39 = vadd.f32 %v4323_v25, %v363_v35 }
 0x115   :  { %v4329_v40 = vpop.f32.mrb[4].mxu0  ;;  %4892 = vmatpush3.bf16.msra.mxu0 %v5977_v34 }
 0x116   :  { %v4355_v41 = vpop.f32.mrb[4].mxu1  ;;  %v229_v42 = vpop.f32.mrb[5].mxu0  ;;  %4905 = vmatprep.subr.bf16.mxu0 %v5416_v36 }
 0x117   :  { %v5932_v43 = vpop.f32.mrb[5].mxu1  ;;  %v5934_v44 = vadd.f32 %v4355_v41, %v229_v42 }
 0x119   :  { %v4332_v45 = vpop.f32.mrb[6].mxu0 }
 0x11a   :  { %v4358_v46 = vpop.f32.mrb[6].mxu1  ;;  %v239_v47 = vpop.f32.mrb[7].mxu0 }
 0x11b   :  { %v383_v48 = vpop.f32.mrb[7].mxu1  ;;  %v5936_v51 = vadd.f32 %v4358_v46, %v239_v47 }
 0x11c   :  { %v5938_v52 = vadd.f32 %v4329_v40, %v383_v48 }
 0x11d   :  { %v4335_v54 = vpop.f32.mrb[8].mxu0 }
 0x11e   :  { %v4361_v55 = vpop.f32.mrb[8].mxu1  ;;  %v248_v56 = vpop.f32.mrb[9].mxu0 }
 0x11f   :  { %v5943_v57 = vpop.f32.mrb[9].mxu1  ;;  %v5946_v58 = vadd.f32 %v4361_v55, %v248_v56 }
 0x121   :  { %v4338_v59 = vpop.f32.mrb[10].mxu0 }
 0x122   :  { %v4364_v60 = vpop.f32.mrb[10].mxu1  ;;  %v258_v63 = vpop.f32.mrb[11].mxu0 }
 0x123   :  { %v403_v0 = vpop.f32.mrb[11].mxu1  ;;  %v5950_v4 = vadd.f32 %v4364_v60, %v258_v63 }
 0x124   :  { %v5952_v5 = vadd.f32 %v4335_v54, %v403_v0 }
 0x125   :  { %v4341_v7 = vpop.f32.mrb[12].mxu0 }
 0x126   :  { %v4367_v8 = vpop.f32.mrb[12].mxu1  ;;  %v267_v11 = vpop.f32.mrb[13].mxu0 }
 0x127   :  { %v413_v12 = vpop.f32.mrb[13].mxu1 }
 0x129   :  { %v4344_v17 = vpop.f32.mrb[14].mxu0 }
 0x12a   :  { %v4370_v18 = vpop.f32.mrb[14].mxu1  ;;  %v275_v19 = vpop.f32.mrb[15].mxu0 }
 0x12b   :  { %v421_v20 = vpop.f32.mrb[15].mxu1 }
 0x12d   :  { %v4375_v25 = vpop.f32.mrb[16].mxu0 }
 0x12e   :  { %v4427_v26 = vpop.f32.mrb[16].mxu1  ;;  %v580_v27 = vadd.f32 %v4375_v25, %v5918_v28  ;;  %v508_v30 = vpop.f32.mrb[17].mxu0 }
 0x12f   :  { %v815_v31 = vpop.f32.mrb[17].mxu1 }
 0x132   :  { %v4430_v35 = vpop.f32.mrb[18].mxu1 }
 0x133   :  { %v825_v40 = vpop.f32.mrb[19].mxu1 }
 0x135   :  { %v4381_v41 = vpop.f32.mrb[20].mxu0 }
 0x136   :  { %v4433_v42 = vpop.f32.mrb[20].mxu1  ;;  %v583_v28 = vadd.f32 %v4381_v41, %v5932_v43  ;;  %v527_v45 = vpop.f32.mrb[21].mxu0 }
 0x137   :  { %v835_v46 = vpop.f32.mrb[21].mxu1 }
 0x138   :  { %v897_v47 = vadd.f32 %v835_v46, %v580_v27 }
 0x13a   :  { %v4436_v48 = vpop.f32.mrb[22].mxu1 }
 0x13b   :  { %v845_v49 = vpop.f32.mrb[23].mxu1 }
 0x13d   :  { %v4387_v50 = vpop.f32.mrb[24].mxu0 }
 0x13e   :  { %v4439_v54 = vpop.f32.mrb[24].mxu1  ;;  %v586_v55 = vadd.f32 %v4387_v50, %v5943_v57  ;;  %v546_v56 = vpop.f32.mrb[25].mxu0 }
 0x13f   :  { %v855_v59 = vpop.f32.mrb[25].mxu1 }
 0x140   :  { %v901_v60 = vadd.f32 %v855_v59, %v583_v28 }
 0x142   :  { %v4442_v61 = vpop.f32.mrb[26].mxu1 }
 0x143   :  { %v865_v62 = vpop.f32.mrb[27].mxu1 }
 0x145   :  { %v4393_v63 = vpop.f32.mrb[28].mxu0 }
 0x146   :  { %v4445_v0 = vpop.f32.mrb[28].mxu1  ;;  %v565_v2 = vpop.f32.mrb[29].mxu0 }
 0x147   :  { %v875_v3 = vpop.f32.mrb[29].mxu1 }
 0x148   :  { %v905_v7 = vadd.f32 %v875_v3, %v586_v55 }
 0x149   :  { %v4396_v43 = vpop.f32.mrb[30].mxu0 }
 0x14a   :  { %v4448_v8 = vpop.f32.mrb[30].mxu1  ;;  %v573_v9 = vpop.f32.mrb[31].mxu0 }
 0x14b   :  { %v885_v10 = vpop.f32.mrb[31].mxu1 }
 0x14d   :  { %v4401_v11 = vpop.f32.mrb[32].mxu0 }
 0x14e   :  { %v4453_v12 = vpop.f32.mrb[32].mxu1  ;;  %v5983_v14 = vadd.f32 %v4401_v11, %v825_v40  ;;  %v660_v57 = vpop.f32.mrb[33].mxu0 }
 0x14f   :  { %v5985_v15 = vadd.f32 %v4453_v12, %v815_v31  ;;  %v980_v17 = vpop.f32.mrb[33].mxu1  ;;  %v5987_v18 = vadd.f32 %v4427_v26, %v660_v57 }
 0x151   :  { %v4404_v19 = vpop.f32.mrb[34].mxu0 }
 0x152   :  { %v670_v20 = vpop.f32.mrb[35].mxu0 }
 0x153   :  { %v5989_v22 = vadd.f32 %v4430_v35, %v670_v20 }
 0x155   :  { %v4407_v23 = vpop.f32.mrb[18].mxu0 }
 0x156   :  { %v4459_v25 = vpop.f32.mrb[36].mxu1  ;;  %v5305_v27 = vadd.f32 %v4407_v23, %v5928_v39  ;;  %v679_v32 = vpop.f32.mrb[19].mxu0 }
 0x157   :  { %v5992_v30 = vadd.f32 %v4459_v25, %v897_v47  ;;  %v999_v33 = vpop.f32.mrb[37].mxu1  ;;  %v5306_v40 = vadd.f32 %v679_v32, %v5920_v29 }
 0x158   :  { %v5995_v31 = vadd.f32 %v5305_v27, %v845_v49 }
 0x159   :  { %v4410_v41 = vpop.f32.mrb[36].mxu0  ;;  %v5997_v28 = vadd.f32 %v5306_v40, %v4433_v42 }
 0x15a   :  { %v689_v26 = vpop.f32.mrb[37].mxu0 }
 0x15b   :  { %v737_v45 = vadd.f32 %v689_v26, %v5926_v38 }
 0x15d   :  { %v4413_v35 = vpop.f32.mrb[22].mxu0  ;;  %v6000_v50 = vadd.f32 %v4436_v48, %v737_v45 }
 0x15e   :  { %v4465_v46 = vpop.f32.mrb[40].mxu1  ;;  %v5307_v39 = vadd.f32 %v4413_v35, %v5938_v52  ;;  %v698_v55 = vpop.f32.mrb[23].mxu0 }
 0x15f   :  { %v6003_v47 = vadd.f32 %v4465_v46, %v901_v60  ;;  %v1018_v56 = vpop.f32.mrb[41].mxu1  ;;  %v5308_v29 = vadd.f32 %v698_v55, %v5934_v44  ;;  %v6018_v44 = vld [vmem:[%s6269_s2] ss:$0 sm:$0xff] }
 0x160   :  { %v6006_v49 = vadd.f32 %v5307_v39, %v865_v62 }
 0x161   :  { %v4416_v59 = vpop.f32.mrb[38].mxu0  ;;  %v6008_v42 = vadd.f32 %v5308_v29, %v4439_v54 }
 0x162   :  { %v708_v63 = vpop.f32.mrb[39].mxu0 }
 0x163   :  { %v740_v38 = vadd.f32 %v708_v63, %v5936_v51 }
 0x165   :  { %v4419_v2 = vpop.f32.mrb[26].mxu0  ;;  %v6011_v48 = vadd.f32 %v4442_v61, %v740_v38 }
 0x166   :  { %v4471_v3 = vpop.f32.mrb[44].mxu1  ;;  %v5309_v52 = vadd.f32 %v4419_v2, %v5952_v5  ;;  %v717_v43 = vpop.f32.mrb[27].mxu0 }
 0x167   :  { %v1064_v60 = vadd.f32 %v4471_v3, %v905_v7  ;;  %v1037_v9 = vpop.f32.mrb[45].mxu1  ;;  %v5310_v11 = vadd.f32 %v717_v43, %v5946_v58 }
 0x168   :  { %v907_v54 = vadd.f32 %v5309_v52, %v885_v10 }
 0x169   :  { %v4422_v62 = vpop.f32.mrb[40].mxu0  ;;  %v906_v51 = vadd.f32 %v5310_v11, %v4445_v0  ;;  %v1559_v19 = vadd.f32 %v6018_v44, %v1064_v60 }
 0x16a   :  { %v4474_v12 = vpop.f32.mrb[46].mxu1  ;;  %v727_v17 = vpop.f32.mrb[41].mxu0 }
 0x16b   :  { %v1066_v57 = vadd.f32 %v4474_v12, %v907_v54  ;;  %v1046_v61 = vpop.f32.mrb[47].mxu1  ;;  %v743_v5 = vadd.f32 %v727_v17, %v5950_v4  ;;  %v1560_v33 = vmax.f32 %v1559_v19, 0.0 }
 0x16c   :  { %v1065_v7 = vadd.f32 %v1046_v61, %v906_v51 }
 0x16d   :  { %v1563_v20 = vadd.f32 %v6018_v44, %v1066_v57  ;;  %v908_v58 = vadd.f32 %v4448_v8, %v743_v5  ;;  %v4505_v25 = vpop.f32.mrb[42].mxu0 }
 0x16e   :  { %v1561_v23 = vadd.f32 %v6018_v44, %v1065_v7  ;;  %v4479_v27 = vpop.f32.mrb[48].mxu1  ;;  %v1290_v32 = vpop.f32.mrb[43].mxu0 }
 0x16f   :  { %v1138_v10 = vpop.f32.mrb[49].mxu1  ;;  %v1565_v0 = vadd.f32 %v6018_v44, %v908_v58  ;;  %v1564_v41 = vmax.f32 %v1563_v20, 0.0 }
 0x170   :  { %v1562_v40 = vmax.f32 %v1561_v23, 0.0 }
 0x171   :  { %v1566_v26 = vmax.f32 %v1565_v0, 0.0  ;;  %v4508_v35 = vpop.f32.mrb[44].mxu0 }
 0x172   :  { %v6025_v45 = vmax.f32 %v1560_v33, %v1562_v40  ;;  %v4482_v4 = vpop.f32.mrb[50].mxu1  ;;  %v1298_v46 = vpop.f32.mrb[45].mxu0 }
 0x173   :  { %v1146_v39 = vpop.f32.mrb[51].mxu1  ;;  %v6027_v55 = vmax.f32 %v1564_v41, %v1566_v26 }
 0x175   :  { %v4511_v56 = vpop.f32.mrb[46].mxu0 }
 0x176   :  { %v4485_v8 = vpop.f32.mrb[34].mxu1  ;;  %v1306_v63 = vpop.f32.mrb[47].mxu0 }
 0x177   :  { %v5311_v29 = vadd.f32 %v4485_v8, %v5983_v14  ;;  %v1154_v59 = vpop.f32.mrb[35].mxu1  ;;  %v1365_v2 = vadd.f32 %v1306_v63, %v5985_v15 }
 0x178   :  { %v5312_v38 = vadd.f32 %v1154_v59, %v5987_v18 }
 0x179   :  { %v4514_v52 = vpop.f32.mrb[48].mxu0 }
 0x17a   :  { %v4488_v3 = vpop.f32.mrb[52].mxu1  ;;  %v1366_v60 = vadd.f32 %v5312_v38, %v4511_v56  ;;  %v1316_v9 = vpop.f32.mrb[49].mxu0 }
 0x17b   :  { %v1164_v43 = vpop.f32.mrb[53].mxu1  ;;  %v1367_v54 = vadd.f32 %v5311_v29, %v1316_v9 }
 0x17c   :  { %v1212_v11 = vadd.f32 %v1164_v43, %v5989_v22 }
 0x17d   :  { %v4517_v51 = vpop.f32.mrb[50].mxu0 }
 0x17e   :  { %v1368_v62 = vadd.f32 %v4514_v52, %v1212_v11  ;;  %v4491_v12 = vpop.f32.mrb[38].mxu1  ;;  %v1326_v17 = vpop.f32.mrb[51].mxu0 }
 0x17f   :  { %v5313_v57 = vadd.f32 %v4491_v12, %v5995_v31  ;;  %v1173_v14 = vpop.f32.mrb[39].mxu1  ;;  %v1369_v18 = vadd.f32 %v1326_v17, %v5992_v30 }
 0x180   :  { %v5314_v61 = vadd.f32 %v1173_v14, %v5997_v28 }
 0x181   :  { %v4520_v19 = vpop.f32.mrb[52].mxu0 }
 0x182   :  { %v4494_v15 = vpop.f32.mrb[54].mxu1  ;;  %v1370_v5 = vadd.f32 %v5314_v61, %v4517_v51  ;;  %v1336_v20 = vpop.f32.mrb[53].mxu0 }
 0x183   :  { %v1183_v7 = vpop.f32.mrb[55].mxu1  ;;  %v1371_v22 = vadd.f32 %v5313_v57, %v1336_v20 }
 0x184   :  { %v1215_v58 = vadd.f32 %v1183_v7, %v6000_v50 }
 0x185   :  { %v4523_v27 = vpop.f32.mrb[54].mxu0 }
 0x186   :  { %v1372_v23 = vadd.f32 %v4520_v19, %v1215_v58  ;;  %v4497_v25 = vpop.f32.mrb[42].mxu1  ;;  %v1346_v10 = vpop.f32.mrb[55].mxu0 }
 0x187   :  { %v5315_v32 = vadd.f32 %v4497_v25, %v6006_v49  ;;  %v1192_v31 = vpop.f32.mrb[43].mxu1  ;;  %v1373_v28 = vadd.f32 %v1346_v10, %v6003_v47  ;;  %v1581_v10 = vld [vmem:[#allocation2 + $0x100] sm:$0xff] }
 0x188   :  { %v5316_v33 = vadd.f32 %v1192_v31, %v6008_v42  ;;  %v1541_v42 = vadd.f32 %v6018_v44, %v1368_v62 }
 0x189   :  { %v4526_v0 = vpop.f32.mrb[56].mxu0 }
 0x18a   :  { %v4500_v30 = vpop.f32.mrb[56].mxu1  ;;  %v1374_v40 = vadd.f32 %v5316_v33, %v4523_v27  ;;  %v1356_v26 = vpop.f32.mrb[57].mxu0  ;;  %v1542_v11 = vmax.f32 %v1541_v42, 0.0  ;;  %v1582_v33 = vld [vmem:[#allocation2 + $0x108] sm:$0xff] }
 0x18b   :  { %v1202_v41 = vpop.f32.mrb[57].mxu1  ;;  %v1375_v50 = vadd.f32 %v5315_v32, %v1356_v26  ;;  %v6049_v26 = vpack.c.bf16 %v1582_v33, %v1581_v10  ;;  %v2073_v10 = vld [vmem:[#allocation2 + $0x1a0] sm:$0xff]  ;;  %v2074_v33 = vld [vmem:[#allocation2 + $0x1a8] sm:$0xff] }
 0x18c   :  { %v1218_v35 = vadd.f32 %v1202_v41, %v6011_v48 }
 0x18d   :  { %v4531_v46 = vpop.f32.mrb[58].mxu0 }
 0x18e   :  { %v1376_v4 = vadd.f32 %v4526_v0, %v1218_v35  ;;  %v1448_v39 = vpop.f32.mrb[59].mxu0 }
 0x191   :  { %v4534_v8 = vpop.f32.mrb[60].mxu0 }
 0x192   :  { %v1456_v56 = vpop.f32.mrb[61].mxu0  ;;  %v1583_v8 = vld [vmem:[#allocation2 + $0x110] sm:$0xff] }
 0x193   :  { %v1584_v56 = vld [vmem:[#allocation2 + $0x118] sm:$0xff] }
 0x195   :  { %v4537_v49 = vpop.f32.mrb[62].mxu0 }
 0x196   :  { %v1520_v29 = vadd.f32 %v4537_v49, %v1365_v2  ;;  %v1464_v59 = vpop.f32.mrb[63].mxu0 }
 0x198   :  { %v1535_v3 = vadd.f32 %v6018_v44, %v1520_v29 }
 0x199   :  { %v4540_v63 = vpop.f32.mrb[64].mxu0 }
 0x19a   :  { %v1522_v47 = vadd.f32 %v4540_v63, %v1367_v54  ;;  %v1473_v38 = vpop.f32.mrb[65].mxu0  ;;  %v1536_v14 = vmax.f32 %v1535_v3, 0.0  ;;  %v1549_v54 = vadd.f32 %v6018_v44, %v1372_v23 }
 0x19b   :  { %v1521_v52 = vadd.f32 %v1473_v38, %v1366_v60 }
 0x19c   :  { %v1539_v43 = vadd.f32 %v6018_v44, %v1522_v47  ;;  %v1550_v27 = vmax.f32 %v1549_v54, 0.0  ;;  %v1585_v47 = vld [vmem:[#allocation2 + $0x120] sm:$0xff] }
 0x19d   :  { %v1537_v48 = vadd.f32 %v6018_v44, %v1521_v52  ;;  %v4543_v9 = vpop.f32.mrb[66].mxu0  ;;  %v2069_v54 = vld [vmem:[#allocation2 + $0x180] sm:$0xff] }
 0x19e   :  { %v1540_v12 = vmax.f32 %v1539_v43, 0.0  ;;  %v1523_v51 = vadd.f32 %v4543_v9, %v1369_v18  ;;  %v1483_v57 = vpop.f32.mrb[67].mxu0  ;;  %v1587_v9 = vld [vmem:[#allocation2 + $0x130] sm:$0xff] }
 0x19f   :  { %v1538_v2 = vmax.f32 %v1537_v48, 0.0  ;;  %v1830_v57 = vld [vmem:[#allocation2 + $0x208] sm:$0xff] }
 0x1a0   :  { %v1570_v17 = vmax.f32 %v1540_v12, %v1542_v11  ;;  %v1543_v60 = vadd.f32 %v6018_v44, %v1523_v51  ;;  %v1588_v11 = vld [vmem:[#allocation2 + $0x138] sm:$0xff] }
 0x1a1   :  { %v1567_v61 = vmax.f32 %v1536_v14, %v1538_v2  ;;  %v4546_v15 = vpop.f32.mrb[68].mxu0  ;;  %v6080_v51 = vpack.c.bf16 %v1588_v11, %v1587_v9  ;;  %v1831_v14 = vld [vmem:[#allocation2 + $0x210] sm:$0xff]  ;;  %v1832_v2 = vld [vmem:[#allocation2 + $0x218] sm:$0xff] }
 0x1a2   :  { %v1525_v62 = vadd.f32 %v4546_v15, %v1371_v22  ;;  %v1492_v19 = vpop.f32.mrb[69].mxu0  ;;  %v1544_v30 = vmax.f32 %v1543_v60, 0.0  ;;  %v1834_v15 = vld [vmem:[#allocation2 + $0x228] sm:$0xff]  ;;  %v2238_v11 = vld [vmem:[#allocation2 + $0xb0] sm:$0xff] }
 0x1a3   :  { %v1524_v7 = vadd.f32 %v1492_v19, %v1370_v5  ;;  %v1557_v5 = vadd.f32 %v6018_v44, %v1376_v4  ;;  %v6062_v4 = vpack.c.bf16 %v1584_v56, %v1583_v8  ;;  %v1924_v8 = vld [vmem:[#allocation2 + $0xe0] sm:$0xff]  ;;  %v1925_v56 = vld [vmem:[#allocation2 + $0xe8] sm:$0xff] }
 0x1a4   :  { %v1547_v20 = vadd.f32 %v6018_v44, %v1525_v62  ;;  %v2070_v62 = vld [vmem:[#allocation2 + $0x188] sm:$0xff] }
 0x1a5   :  { %v1545_v58 = vadd.f32 %v6018_v44, %v1524_v7  ;;  %v4549_v25 = vpop.f32.mrb[70].mxu0  ;;  %v4930_v60 = vpack.c.bf16 %v2070_v62, %v2069_v54  ;;  %v1835_v7 = vld [vmem:[#allocation2 + $0x230] sm:$0xff]  ;;  %v2230_v54 = vld [vmem:[#allocation2 + $0x78] sm:$0xff] }
 0x1a6   :  { %v1548_v18 = vmax.f32 %v1547_v20, 0.0  ;;  %v1526_v32 = vadd.f32 %v4549_v25, %v1373_v28  ;;  %v1502_v31 = vpop.f32.mrb[71].mxu0  ;;  %v1836_v20 = vld [vmem:[#allocation2 + $0x238] sm:$0xff] }
 0x1a7   :  { %v1546_v0 = vmax.f32 %v1545_v58, 0.0  ;;  %v2071_v58 = vld [vmem:[#allocation2 + $0x190] sm:$0xff]  ;;  %v2072_v25 = vld [vmem:[#allocation2 + $0x198] sm:$0xff]  ;;  %v1921_v31 = vld [vmem:[#allocation2 + $0xc8] sm:$0xff] }
 0x1a8   :  { %v1571_v41 = vmax.f32 %v1548_v18, %v1550_v27  ;;  %v1551_v49 = vadd.f32 %v6018_v44, %v1526_v32  ;;  %v4903_v27 = vpack.c.bf16 %v1836_v20, %v1835_v7  ;;  %v4933_v18 = vpack.c.bf16 %v2072_v25, %v2071_v58  ;;  %v1920_v32 = vld [vmem:[#allocation2 + $0xc0] sm:$0xff]  ;;  %v2530_v7 = vld [vmem:[#allocation2 + $0x28] sm:$0xff]  ;;  %v2531_v58 = vld [vmem:[#allocation2 + $0x30] sm:$0xff] }
 0x1a9   :  { %v1568_v23 = vmax.f32 %v1544_v30, %v1546_v0  ;;  %v4552_v22 = vpop.f32.mrb[72].mxu0  ;;  %v6107_v30 = vpack.c.bf16 %v1921_v31, %v1920_v32  ;;  %v4936_v0 = vpack.c.bf16 %v2074_v33, %v2073_v10  ;;  %v2532_v25 = vld [vmem:[#allocation2 + $0x38] sm:$0xff]  ;;  %v2818_v31 = vld [vmem:[#allocation4] sm:$0xff] }
 0x1aa   :  { %v6052_v35 = vmax.f32 %v1570_v17, %v1571_v41  ;;  %v1528_v46 = vadd.f32 %v4552_v22, %v1375_v50  ;;  %v1511_v39 = vpop.f32.mrb[73].mxu0  ;;  %v1558_v50 = vmax.f32 %v1557_v5, 0.0  ;;  %v1552_v38 = vmax.f32 %v1551_v49, 0.0  ;;  %v1922_v41 = vld [vmem:[#allocation2 + $0xd0] sm:$0xff]  ;;  %v2076_v5 = vld [vmem:[#allocation2 + $0x1b8] sm:$0xff]  ;;  %v2232_v49 = vld [vmem:[#allocation2 + $0x80] sm:$0xff] }
 0x1ab   :  { %v6054_v28 = vmax.f32 %v1567_v61, %v1568_v23  ;;  %v1527_v29 = vadd.f32 %v1511_v39, %v1374_v40  ;;  %v1586_v40 = vld [vmem:[#allocation2 + $0x128] sm:$0xff]  ;;  %v4897_v17 = vpack.c.bf16 %v1832_v2, %v1831_v14  ;;  %v1833_v61 = vld [vmem:[#allocation2 + $0x220] sm:$0xff]  ;;  %v1923_v23 = vld [vmem:[#allocation2 + $0xd8] sm:$0xff] }
 0x1ac   :  { %v1555_v59 = vadd.f32 %v6018_v44, %v1528_v46  ;;  %4570 = vmatmul.mubr.msk.f32.vlgmr.msra.gmra.mrb[58].mxu1 %vm1598_vm3, %v6052_v35  ;;  %v4900_v19 = vpack.c.bf16 %v1834_v15, %v1833_v61  ;;  %v2075_v22 = vld [vmem:[#allocation2 + $0x1b0] sm:$0xff]  ;;  %v6114_v46 = vpack.c.bf16 %v1923_v23, %v1922_v41  ;;  %v2226_v14 = vld [vmem:[#allocation2 + $0x58] sm:$0xff] }
 0x1ad   :  { %v1553_v63 = vadd.f32 %v6018_v44, %v1527_v29  ;;  %4871 = vmatpush3.bf16.msra.mxu1 %v6049_v26  ;;  %4588 = vmatprep.mubr.msk.f32.mxu1 %vm5417_vm2, %v5418_v21  ;;  %v6068_v44 = vpack.c.bf16 %v1586_v40, %v1585_v47  ;;  %v4939_v39 = vpack.c.bf16 %v2076_v5, %v2075_v22  ;;  %v2233_v29 = vld [vmem:[#allocation2 + $0x88] sm:$0xff]  ;;  %v2234_v47 = vld [vmem:[#allocation2 + $0x90] sm:$0xff]  ;;  %v2235_v40 = vld [vmem:[#allocation2 + $0x98] sm:$0xff] }
 0x1ae   :  { %v1556_v42 = vmax.f32 %v1555_v59, 0.0  ;;  %4872 = vmatprep.subr.bf16.mxu1 %v5416_v36  ;;  %v6121_v59 = vpack.c.bf16 %v1925_v56, %v1924_v8  ;;  %v2229_v15 = vld [vmem:[#allocation2 + $0x70] sm:$0xff]  ;;  %v2829_v32 = vld [vmem:[#allocation4 + $0x58] sm:$0xff]  ;;  %v2834_v22 = vld [vmem:[#allocation4 + $0x80] sm:$0xff] }
 0x1af   :  { %v1554_v3 = vmax.f32 %v1553_v63, 0.0  ;;  %v4954_v63 = vpack.c.bf16 %v2233_v29, %v2232_v49  ;;  %v4975_v62 = vpack.c.bf16 %v2230_v54, %v2229_v15  ;;  %v2845_v23 = vld [vmem:[#allocation4 + $0xd8] sm:$0xff]  ;;  %v2842_v5 = vld [vmem:[#allocation4 + $0xc0] sm:$0xff]  ;;  %v2836_v8 = vld [vmem:[#allocation4 + $0x90] sm:$0xff] }
 0x1b0   :  { %v1576_v52 = vmax.f32 %v1556_v42, %v1558_v50  ;;  %v1926_v50 = vld [vmem:[#allocation2 + $0xf0] sm:$0xff]  ;;  %v1927_v42 = vld [vmem:[#allocation2 + $0xf8] sm:$0xff]  ;;  %v2851_v29 = vld [vmem:[#allocation4 + $0x108] sm:$0xff] }
 0x1b1   :  { %v1573_v43 = vmax.f32 %v1552_v38, %v1554_v3  ;;  %4874 = vmatpush3.bf16.msra.mxu1 %v6062_v4  ;;  %v6128_v38 = vpack.c.bf16 %v1927_v42, %v1926_v50  ;;  %v4957_v3 = vpack.c.bf16 %v2235_v40, %v2234_v47  ;;  %v2844_v56 = vld [vmem:[#allocation4 + $0xd0] sm:$0xff]  ;;  %v2861_v42 = vld [vmem:[#allocation4 + $0x158] sm:$0xff]  ;;  %v2850_v47 = vld [vmem:[#allocation4 + $0x100] sm:$0xff] }
 0x1b2   :  { %v6071_v48 = vmax.f32 %v1576_v52, %v6027_v55  ;;  %4875 = vmatprep.subr.bf16.mxu1 %v5416_v36  ;;  %v1829_v55 = vld [vmem:[#allocation2 + $0x200] sm:$0xff]  ;;  %v5087_v49 = vpack.c.bf16 %v2844_v56, %v2836_v8  ;;  %v2891_v54 = vld [vmem:[#allocation4 + $0x248] sm:$0xff] }
 0x1b3   :  { %v6075_v12 = vmax.f32 %v1573_v43, %v6025_v45  ;;  %v4894_v45 = vpack.c.bf16 %v1830_v57, %v1829_v55  ;;  %v2236_v52 = vld [vmem:[#allocation2 + $0xa0] sm:$0xff]  ;;  %v2237_v43 = vld [vmem:[#allocation2 + $0xa8] sm:$0xff]  ;;  %v2239_v55 = vld [vmem:[#allocation2 + $0xb8] sm:$0xff] }
 0x1b4   :  { %v4960_v9 = vpack.c.bf16 %v2237_v43, %v2236_v52  ;;  %v4963_v57 = vpack.c.bf16 %v2239_v55, %v2238_v11  ;;  %v2858_v40 = vld [vmem:[#allocation4 + $0x140] sm:$0xff]  ;;  %v2852_v52 = vld [vmem:[#allocation4 + $0x110] sm:$0xff]  ;;  %v2867_v11 = vld [vmem:[#allocation4 + $0x188] sm:$0xff] }
 0x1b5   :  { %4877 = vmatpush3.bf16.msra.mxu1 %v6068_v44  ;;  %4608 = vmatmul.mubr.msk.f32.vlgmr.msra.gmra.mrb[74].mxu0 %vm1598_vm3, %v6075_v12  ;;  %v2860_v43 = vld [vmem:[#allocation4 + $0x150] sm:$0xff]  ;;  %v2875_v55 = vld [vmem:[#allocation4 + $0x1c8] sm:$0xff] }
 0x1b6   :  { %4907 = vmatpush3.bf16.msra.mxu0 %v6049_v26  ;;  %4878 = vmatprep.subr.bf16.mxu1 %v5416_v36 }
 0x1b7   :  { %4908 = vmatprep.subr.bf16.mxu0 %v5416_v36  ;;  %4645 = vmatprep.mubr.msk.f32.mxu0 %vm5417_vm2, %v5418_v21 }
 0x1b9   :  { %4880 = vmatpush3.bf16.msra.mxu1 %v6080_v51 }
 0x1ba   :  { %4910 = vmatpush3.bf16.msra.mxu0 %v6062_v4  ;;  %4893 = vmatprep.subr.bf16.mxu1 %v5416_v36 }
 0x1bb   :  { %4911 = vmatprep.subr.bf16.mxu0 %v5416_v36 }
 0x1bc   :  { %4589 = vmatmul.mubr.msk.f32.vlgmr.msra.gmra.mrb[60].mxu1 %vm1598_vm3, %v6054_v28 }
 0x1bd   :  { %4895 = vmatpush3.bf16.msra.mxu1 %v4894_v45  ;;  %4626 = vmatprep.mubr.msk.f32.mxu1 %vm5417_vm2, %v5418_v21  ;;  %v2224_v45 = vld [vmem:[#allocation2 + $0x48] sm:$0xff] }
 0x1be   :  { %4913 = vmatpush3.bf16.msra.mxu0 %v6068_v44  ;;  %4896 = vmatprep.subr.bf16.mxu1 %v5416_v36 }
 0x1bf   :  { %4914 = vmatprep.subr.bf16.mxu0 %v5416_v36 }
 0x1c1   :  { %4898 = vmatpush3.bf16.msra.mxu1 %v4897_v17  ;;  %v2228_v17 = vld [vmem:[#allocation2 + $0x68] sm:$0xff] }
 0x1c2   :  { %4916 = vmatpush3.bf16.msra.mxu0 %v6080_v51  ;;  %4899 = vmatprep.subr.bf16.mxu1 %v5416_v36 }
 0x1c3   :  { %4929 = vmatprep.subr.bf16.mxu0 %v5416_v36 }
 0x1c5   :  { %4901 = vmatpush3.bf16.msra.mxu1 %v4900_v19  ;;  %4646 = vmatmul.mubr.msk.f32.vlgmr.msra.gmra.mrb[76].mxu0 %vm1598_vm3, %v6052_v35  ;;  %v2526_v19 = vld [vmem:[#allocation2 + $0x8] sm:$0xff] }
 0x1c6   :  { %4931 = vmatpush3.bf16.msra.mxu0 %v4930_v60  ;;  %4902 = vmatprep.subr.bf16.mxu1 %v5416_v36 }
 0x1c7   :  { %4932 = vmatprep.subr.bf16.mxu0 %v5416_v36  ;;  %4683 = vmatprep.mubr.msk.f32.mxu0 %vm5417_vm2, %v5418_v21 }
 0x1c9   :  { %4904 = vmatpush3.bf16.msra.mxu1 %v4903_v27  ;;  %v5023_v27 = vpack.c.bf16 %v2532_v25, %v2531_v58  ;;  %v2907_v58 = vld [vmem:[#allocation4 + $0x2c8] sm:$0xff] }
 0x1ca   :  { %4934 = vmatpush3.bf16.msra.mxu0 %v4933_v18  ;;  %4917 = vmatprep.subr.bf16.mxu1 %v5416_v36 }
 0x1cb   :  { %4935 = vmatprep.subr.bf16.mxu0 %v5416_v36 }
 0x1cc   :  { %4627 = vmatmul.mubr.msk.f32.vlgmr.msra.gmra.mrb[62].mxu1 %vm1598_vm3, %v6071_v48 }
 0x1cd   :  { %4919 = vmatpush3.bf16.msra.mxu1 %v6107_v30  ;;  %4664 = vmatprep.mubr.msk.f32.mxu1 %vm5417_vm2, %v5418_v21 }
 0x1ce   :  { %4937 = vmatpush3.bf16.msra.mxu0 %v4936_v0  ;;  %4920 = vmatprep.subr.bf16.mxu1 %v5416_v36  ;;  %v2843_v0 = vld [vmem:[#allocation4 + $0xc8] sm:$0xff] }
 0x1cf   :  { %4938 = vmatprep.subr.bf16.mxu0 %v5416_v36 }
 0x1d1   :  { %4922 = vmatpush3.bf16.msra.mxu1 %v6114_v46 }
 0x1d2   :  { %4940 = vmatpush3.bf16.msra.mxu0 %v4939_v39  ;;  %4923 = vmatprep.subr.bf16.mxu1 %v5416_v36  ;;  %v5055_v39 = vpack.c.bf16 %v2842_v5, %v2834_v22  ;;  %v2916_v5 = vld [vmem:[#allocation4 + $0x310] sm:$0xff] }
 0x1d3   :  { %4953 = vmatprep.subr.bf16.mxu0 %v5416_v36 }
 0x1d5   :  { %4925 = vmatpush3.bf16.msra.mxu1 %v6121_v59  ;;  %4684 = vmatmul.mubr.msk.f32.vlgmr.msra.gmra.mrb[78].mxu0 %vm1598_vm3, %v6075_v12 }
 0x1d6   :  { %4955 = vmatpush3.bf16.msra.mxu0 %v4954_v63  ;;  %4926 = vmatprep.subr.bf16.mxu1 %v5416_v36  ;;  %v2853_v63 = vld [vmem:[#allocation4 + $0x118] sm:$0xff] }
 0x1d7   :  { %4956 = vmatprep.subr.bf16.mxu0 %v5416_v36  ;;  %4721 = vmatprep.mubr.msk.f32.mxu0 %vm5417_vm2, %v5418_v21 }
 0x1d9   :  { %4928 = vmatpush3.bf16.msra.mxu1 %v6128_v38 }
 0x1da   :  { %4958 = vmatpush3.bf16.msra.mxu0 %v4957_v3  ;;  %4941 = vmatprep.subr.bf16.mxu1 %v5416_v36  ;;  %v5059_v3 = vpack.c.bf16 %v2858_v40, %v2850_v47  ;;  %v2938_v47 = vld [vmem:[#allocation4 + $0x3c0] sm:$0xff] }
 0x1db   :  { %4959 = vmatprep.subr.bf16.mxu0 %v5416_v36 }
 0x1dc   :  { %4665 = vmatmul.mubr.msk.f32.vlgmr.msra.gmra.mrb[64].mxu1 %vm1598_vm3, %v6054_v28 }
 0x1dd   :  { %4943 = vmatpush3.bf16.msra.mxu1 %v5954_v6  ;;  %4702 = vmatprep.mubr.msk.f32.mxu1 %vm5417_vm2, %v5418_v21  ;;  %v2223_v6 = vld [vmem:[#allocation2 + $0x40] sm:$0xff] }
 0x1de   :  { %4961 = vmatpush3.bf16.msra.mxu0 %v4960_v9  ;;  %4944 = vmatprep.subr.bf16.mxu1 %v5416_v36  ;;  %v5091_v9 = vpack.c.bf16 %v2860_v43, %v2852_v52  ;;  %v2940_v52 = vld [vmem:[#allocation4 + $0x3d0] sm:$0xff] }
 0x1df   :  { %4962 = vmatprep.subr.bf16.mxu0 %v5416_v36 }
 0x1e1   :  { %4946 = vmatpush3.bf16.msra.mxu1 %v5962_v16  ;;  %v4966_v16 = vpack.c.bf16 %v2224_v45, %v2223_v6  ;;  %v5061_v6 = vpack.c.bf16 %v2875_v55, %v2867_v11  ;;  %v2877_v45 = vld [vmem:[#allocation4 + $0x1d8] sm:$0xff]  ;;  %v2831_v11 = vld [vmem:[#allocation4 + $0x68] sm:$0xff] }
 0x1e2   :  { %4964 = vmatpush3.bf16.msra.mxu0 %v4963_v57  ;;  %4947 = vmatprep.subr.bf16.mxu1 %v5416_v36  ;;  %v2869_v57 = vld [vmem:[#allocation4 + $0x198] sm:$0xff] }
 0x1e3   :  { %4977 = vmatprep.subr.bf16.mxu0 %v5416_v36  ;;  %v2825_v55 = vld [vmem:[#allocation4 + $0x38] sm:$0xff] }
 0x1e5   :  { %4949 = vmatpush3.bf16.msra.mxu1 %v5972_v24  ;;  %4722 = vmatmul.mubr.msk.f32.vlgmr.msra.gmra.mrb[80].mxu0 %vm1598_vm3, %v6052_v35  ;;  %v2225_v24 = vld [vmem:[#allocation2 + $0x50] sm:$0xff] }
 0x1e6   :  { %4979 = vmatpush3.bf16.msra.mxu0 %v6049_v26  ;;  %4950 = vmatprep.subr.bf16.mxu1 %v5416_v36  ;;  %v4969_v2 = vpack.c.bf16 %v2226_v14, %v2225_v24  ;;  %v2874_v24 = vld [vmem:[#allocation4 + $0x1c0] sm:$0xff]  ;;  %v5093_v14 = vpack.c.bf16 %v2877_v45, %v2869_v57 }
 0x1e7   :  { %4980 = vmatprep.subr.bf16.mxu0 %v5416_v36  ;;  %4759 = vmatprep.mubr.msk.f32.mxu0 %vm5417_vm2, %v5418_v21 }
 0x1e9   :  { %4952 = vmatpush3.bf16.msra.mxu1 %v5977_v34  ;;  %v2227_v34 = vld [vmem:[#allocation2 + $0x60] sm:$0xff] }
 0x1ea   :  { %4982 = vmatpush3.bf16.msra.mxu0 %v6062_v4  ;;  %4965 = vmatprep.subr.bf16.mxu1 %v5416_v36  ;;  %v4972_v61 = vpack.c.bf16 %v2228_v17, %v2227_v34  ;;  %v2868_v34 = vld [vmem:[#allocation4 + $0x190] sm:$0xff] }
 0x1eb   :  { %4983 = vmatprep.subr.bf16.mxu0 %v5416_v36  ;;  %v2876_v17 = vld [vmem:[#allocation4 + $0x1d0] sm:$0xff] }
 0x1ec   :  { %4703 = vmatmul.mubr.msk.f32.vlgmr.msra.gmra.mrb[66].mxu1 %vm1598_vm3, %v6071_v48  ;;  %v5095_v15 = vpack.c.bf16 %v2876_v17, %v2868_v34 }
 0x1ed   :  { %4967 = vmatpush3.bf16.msra.mxu1 %v4966_v16  ;;  %4740 = vmatprep.mubr.msk.f32.mxu1 %vm5417_vm2, %v5418_v21 }
 0x1ee   :  { %4985 = vmatpush3.bf16.msra.mxu0 %v6068_v44  ;;  %4968 = vmatprep.subr.bf16.mxu1 %v5416_v36 }
 0x1ef   :  { %4986 = vmatprep.subr.bf16.mxu0 %v5416_v36 }
 0x1f1   :  { %4970 = vmatpush3.bf16.msra.mxu1 %v4969_v2 }
 0x1f2   :  { %4988 = vmatpush3.bf16.msra.mxu0 %v6080_v51  ;;  %4971 = vmatprep.subr.bf16.mxu1 %v5416_v36 }
 0x1f3   :  { %5001 = vmatprep.subr.bf16.mxu0 %v5416_v36 }
 0x1f5   :  { %4973 = vmatpush3.bf16.msra.mxu1 %v4972_v61  ;;  %4760 = vmatmul.mubr.msk.f32.vlgmr.msra.gmra.mrb[82].mxu0 %vm1598_vm3, %v6075_v12 }
 0x1f6   :  { %5003 = vmatpush3.bf16.msra.mxu0 %v4966_v16  ;;  %4974 = vmatprep.subr.bf16.mxu1 %v5416_v36  ;;  %v2866_v16 = vld [vmem:[#allocation4 + $0x180] sm:$0xff] }
 0x1f7   :  { %5004 = vmatprep.subr.bf16.mxu0 %v5416_v36  ;;  %4797 = vmatprep.mubr.msk.f32.mxu0 %vm5417_vm2, %v5418_v21 }
 0x1f9   :  { %4976 = vmatpush3.bf16.msra.mxu1 %v4975_v62 }
 0x1fa   :  { %5006 = vmatpush3.bf16.msra.mxu0 %v4969_v2  ;;  %4989 = vmatprep.subr.bf16.mxu1 %v5416_v36  ;;  %v5063_v2 = vpack.c.bf16 %v2874_v24, %v2866_v16 }
 0x1fb   :  { %5007 = vmatprep.subr.bf16.mxu0 %v5416_v36 }
 0x1fc   :  { %4741 = vmatmul.mubr.msk.f32.vlgmr.msra.gmra.mrb[68].mxu1 %vm1598_vm3, %v6054_v28 }
 0x1fd   :  { %4991 = vmatpush3.bf16.msra.mxu1 %v5923_v37  ;;  %4778 = vmatprep.mubr.msk.f32.mxu1 %vm5417_vm2, %v5418_v21  ;;  %v2525_v37 = vld [vmem:[#allocation2] sm:$0xff] }
 0x1fe   :  { %5009 = vmatpush3.bf16.msra.mxu0 %v4972_v61  ;;  %4992 = vmatprep.subr.bf16.mxu1 %v5416_v36  ;;  %v2883_v61 = vld [vmem:[#allocation4 + $0x208] sm:$0xff] }
 0x1ff   :  { %5010 = vmatprep.subr.bf16.mxu0 %v5416_v36 }
 0x201   :  { %4994 = vmatpush3.bf16.msra.mxu1 %v5940_v53  ;;  %v5014_v53 = vpack.c.bf16 %v2526_v19, %v2525_v37  ;;  %v2893_v37 = vld [vmem:[#allocation4 + $0x258] sm:$0xff]  ;;  %v5065_v19 = vpack.c.bf16 %v2891_v54, %v2883_v61 }
 0x202   :  { %5012 = vmatpush3.bf16.msra.mxu0 %v4975_v62  ;;  %4995 = vmatprep.subr.bf16.mxu1 %v5416_v36  ;;  %v2885_v62 = vld [vmem:[#allocation4 + $0x218] sm:$0xff] }
 0x203   :  { %5025 = vmatprep.subr.bf16.mxu0 %v5416_v36 }
 0x205   :  { %4997 = vmatpush3.bf16.msra.mxu1 %v5948_v1  ;;  %4798 = vmatmul.mubr.msk.f32.vlgmr.msra.gmra.mrb[84].mxu0 %vm1598_vm3, %v6052_v35  ;;  %v2527_v1 = vld [vmem:[#allocation2 + $0x10] sm:$0xff]  ;;  %v2528_v35 = vld [vmem:[#allocation2 + $0x18] sm:$0xff] }
 0x206   :  { %5027 = vmatpush3.bf16.msra.mxu0 %v6107_v30  ;;  %4998 = vmatprep.subr.bf16.mxu1 %v5416_v36  ;;  %v5017_v60 = vpack.c.bf16 %v2528_v35, %v2527_v1  ;;  %v2820_v30 = vld [vmem:[#allocation4 + $0x10] sm:$0xff]  ;;  %v2882_v1 = vld [vmem:[#allocation4 + $0x200] sm:$0xff] }
 0x207   :  { %5028 = vmatprep.subr.bf16.mxu0 %v5416_v36  ;;  %4835 = vmatprep.mubr.msk.f32.mxu0 %vm5417_vm2, %v5418_v21  ;;  %v2890_v35 = vld [vmem:[#allocation4 + $0x240] sm:$0xff] }
 0x209   :  { %5000 = vmatpush3.bf16.msra.mxu1 %v5959_v13  ;;  %v2529_v13 = vld [vmem:[#allocation2 + $0x20] sm:$0xff] }
 0x20a   :  { %5030 = vmatpush3.bf16.msra.mxu0 %v6114_v46  ;;  %5013 = vmatprep.subr.bf16.mxu1 %v5416_v36  ;;  %v5020_v20 = vpack.c.bf16 %v2530_v7, %v2529_v13  ;;  %v5067_v13 = vpack.c.bf16 %v2890_v35, %v2882_v1  ;;  %v2892_v7 = vld [vmem:[#allocation4 + $0x250] sm:$0xff] }
 0x20b   :  { %5031 = vmatprep.subr.bf16.mxu0 %v5416_v36 }
 0x20c   :  { %4779 = vmatmul.mubr.msk.f32.vlgmr.msra.gmra.mrb[70].mxu1 %vm1598_vm3, %v6071_v48 }
 0x20d   :  { %5015 = vmatpush3.bf16.msra.mxu1 %v5014_v53  ;;  %4816 = vmatprep.mubr.msk.f32.mxu1 %vm5417_vm2, %v5418_v21  ;;  %v5097_v53 = vpack.c.bf16 %v2893_v37, %v2885_v62 }
 0x20e   :  { %5033 = vmatpush3.bf16.msra.mxu0 %v6121_v59  ;;  %5016 = vmatprep.subr.bf16.mxu1 %v5416_v36  ;;  %v2859_v59 = vld [vmem:[#allocation4 + $0x148] sm:$0xff] }
 0x20f   :  { %5034 = vmatprep.subr.bf16.mxu0 %v5416_v36  ;;  %v5057_v50 = vpack.c.bf16 %v2859_v59, %v2851_v29  ;;  %v2939_v29 = vld [vmem:[#allocation4 + $0x3c8] sm:$0xff]  ;;  %v2933_v59 = vld [vmem:[#allocation4 + $0x398] sm:$0xff] }
 0x211   :  { %5018 = vmatpush3.bf16.msra.mxu1 %v5017_v60  ;;  %v2884_v60 = vld [vmem:[#allocation4 + $0x210] sm:$0xff] }
 0x212   :  { %5036 = vmatpush3.bf16.msra.mxu0 %v6128_v38  ;;  %5019 = vmatprep.subr.bf16.mxu1 %v5416_v36  ;;  %v5089_v38 = vpack.c.bf16 %v2861_v42, %v2853_v63  ;;  %v5099_v25 = vpack.c.bf16 %v2892_v7, %v2884_v60  ;;  %v2930_v42 = vld [vmem:[#allocation4 + $0x380] sm:$0xff] }
 0x215   :  { %5021 = vmatpush3.bf16.msra.mxu1 %v5020_v20  ;;  %4836 = vmatmul.mubr.msk.f32.vlgmr.msra.gmra.mrb[86].mxu0 %vm1598_vm3, %v6075_v12  ;;  %v2821_v12 = vld [vmem:[#allocation4 + $0x18] sm:$0xff]  ;;  %v2899_v20 = vld [vmem:[#allocation4 + $0x288] sm:$0xff] }
 0x216   :  { %5022 = vmatprep.subr.bf16.mxu1 %v5416_v36  ;;  %3052 = vmatprep.mubr.f32.mxu0 %v5418_v21  ;;  %v5081_v10 = vpack.c.bf16 %v2829_v32, %v2821_v12  ;;  %v2898_v12 = vld [vmem:[#allocation4 + $0x280] sm:$0xff] }
 0x217   :  { %v2906_v32 = vld [vmem:[#allocation4 + $0x2c0] sm:$0xff] }
 0x219   :  { %5024 = vmatpush3.bf16.msra.mxu1 %v5023_v27  ;;  %v5069_v27 = vpack.c.bf16 %v2907_v58, %v2899_v20  ;;  %v3868_v58 = vld [vmem:[%s6271_s4] ss:$0 sm:$0xff] }
 0x21a   :  { %5037 = vmatprep.subr.bf16.mxu1 %v5416_v36 }
 0x21c   :  { %4817 = vmatmul.mubr.msk.f32.vlgmr.msra.gmra.mrb[72].mxu1 %vm1598_vm3, %v6054_v28  ;;  %v2827_v28 = vld [vmem:[#allocation4 + $0x48] sm:$0xff] }
 0x21d   :  { %5039 = vmatpush3.bf16.msra.mxu1 %v6049_v26  ;;  %4854 = vmatprep.mubr.msk.f32.mxu1 %vm5417_vm2, %v5418_v21  ;;  %v2819_v26 = vld [vmem:[#allocation4 + $0x8] sm:$0xff] }
 0x21e   :  { %5040 = vmatprep.subr.bf16.mxu1 %v5416_v36  ;;  %v5049_v18 = vpack.c.bf16 %v2827_v28, %v2819_v26  ;;  %v2901_v26 = vld [vmem:[#allocation4 + $0x298] sm:$0xff] }
 0x21f   :  { %v2909_v28 = vld [vmem:[#allocation4 + $0x2d8] sm:$0xff] }
 0x220   :  { %5050 = vmatprep.subr.bf16.mxu0 %v5049_v18  ;;  %v5101_v18 = vpack.c.bf16 %v2909_v28, %v2901_v26 }
 0x221   :  { %5042 = vmatpush3.bf16.msra.mxu1 %v6062_v4  ;;  %v2826_v4 = vld [vmem:[#allocation4 + $0x40] sm:$0xff] }
 0x222   :  { %5043 = vmatprep.subr.bf16.mxu1 %v5416_v36  ;;  %v5051_v33 = vpack.c.bf16 %v2826_v4, %v2818_v31  ;;  %v2900_v31 = vld [vmem:[#allocation4 + $0x290] sm:$0xff] }
 0x223   :  { %v2908_v4 = vld [vmem:[#allocation4 + $0x2d0] sm:$0xff] }
 0x224   :  { %5052 = vmatpush1.bf16.msra.mxu0 %v5051_v33  ;;  %v5103_v33 = vpack.c.bf16 %v2908_v4, %v2900_v31 }
 0x225   :  { %5045 = vmatpush3.bf16.msra.mxu1 %v6068_v44  ;;  %v2828_v44 = vld [vmem:[#allocation4 + $0x50] sm:$0xff] }
 0x226   :  { %5046 = vmatprep.subr.bf16.mxu1 %v5416_v36  ;;  %v5083_v36 = vpack.c.bf16 %v2828_v44, %v2820_v30  ;;  %v2915_v30 = vld [vmem:[#allocation4 + $0x308] sm:$0xff] }
 0x227   :  { %v2923_v44 = vld [vmem:[#allocation4 + $0x348] sm:$0xff] }
 0x229   :  { %5048 = vmatpush3.bf16.msra.mxu1 %v6080_v51  ;;  %v2835_v51 = vld [vmem:[#allocation4 + $0x88] sm:$0xff] }
 0x22a   :  { %5082 = vmatprep.subr.bf16.mxu1 %v5081_v10  ;;  %v5053_v41 = vpack.c.bf16 %v2843_v0, %v2835_v51  ;;  %v5071_v10 = vpack.c.bf16 %v2906_v32, %v2898_v12  ;;  %v5073_v51 = vpack.c.bf16 %v2923_v44, %v2915_v30  ;;  %v2925_v0 = vld [vmem:[#allocation4 + $0x358] sm:$0xff] }
 0x22c   :  { %4855 = vmatmul.mubr.msk.f32.vlgmr.msra.gmra.mrb[74].mxu1 %vm1598_vm3, %v6071_v48  ;;  %v2837_v48 = vld [vmem:[#allocation4 + $0x98] sm:$0xff]  ;;  %5054 = vmatprep.subr.bf16.mxu0 %v5053_v41  ;;  %v2922_v41 = vld [vmem:[#allocation4 + $0x340] sm:$0xff] }
 0x22d   :  { %3123 = vmatprep.mubr.f32.mxu1 %v5418_v21  ;;  %5084 = vmatpush1.bf16.msra.mxu1 %v5083_v36  ;;  %v5085_v46 = vpack.c.bf16 %v2845_v23, %v2837_v48  ;;  %v2917_v36 = vld [vmem:[#allocation4 + $0x318] sm:$0xff]  ;;  %v2914_v48 = vld [vmem:[#allocation4 + $0x300] sm:$0xff] }
 0x22e   :  { %5056 = vmatpush1.bf16.msra.mxu0 %v5055_v39  ;;  %v5105_v23 = vpack.c.bf16 %v2925_v0, %v2917_v36  ;;  %v5075_v22 = vpack.c.bf16 %v2922_v41, %v2914_v48 }
 0x22f   :  { %5086 = vmatprep.subr.bf16.mxu1 %v5085_v46  ;;  %5058 = vmatprep.subr.bf16.mxu0 %v5057_v50  ;;  %v2924_v46 = vld [vmem:[#allocation4 + $0x350] sm:$0xff]  ;;  %v2941_v50 = vld [vmem:[#allocation4 + $0x3d8] sm:$0xff] }
 0x230   :  { %v5107_v8 = vpack.c.bf16 %v2924_v46, %v2916_v5  ;;  %v5109_v40 = vpack.c.bf16 %v2941_v50, %v2933_v59 }
 0x231   :  { %5088 = vmatpush1.bf16.msra.mxu1 %v5087_v49  ;;  %v2931_v49 = vld [vmem:[#allocation4 + $0x388] sm:$0xff] }
 0x232   :  { %5090 = vmatprep.subr.bf16.mxu1 %v5089_v38  ;;  %5060 = vmatpush1.bf16.msra.mxu0 %v5059_v3  ;;  %v5077_v63 = vpack.c.bf16 %v2939_v29, %v2931_v49  ;;  %v5079_v38 = vpack.c.bf16 %v2938_v47, %v2930_v42  ;;  %v2932_v3 = vld [vmem:[#allocation4 + $0x390] sm:$0xff]  ;;  %v2822_v47 = vld [vmem:[#allocation4 + $0x20] sm:$0xff] }
 0x233   :  { %5062 = vmatprep.subr.bf16.mxu0 %v5061_v6  ;;  %v5111_v43 = vpack.c.bf16 %v2940_v52, %v2932_v3  ;;  %v2833_v6 = vld [vmem:[#allocation4 + $0x78] sm:$0xff]  ;;  %v2824_v3 = vld [vmem:[#allocation4 + $0x30] sm:$0xff] }
 0x234   :  { %v5145_v45 = vpack.c.bf16 %v2833_v6, %v2825_v55  ;;  %v2832_v52 = vld [vmem:[#allocation4 + $0x70] sm:$0xff]  ;;  %v2849_v55 = vld [vmem:[#allocation4 + $0xf8] sm:$0xff] }
 0x235   :  { %5092 = vmatpush1.bf16.msra.mxu1 %v5091_v9  ;;  %v2823_v9 = vld [vmem:[#allocation4 + $0x28] sm:$0xff] }
 0x236   :  { %5094 = vmatprep.subr.bf16.mxu1 %v5093_v14  ;;  %5064 = vmatpush1.bf16.msra.mxu0 %v5063_v2  ;;  %v5113_v57 = vpack.c.bf16 %v2831_v11, %v2823_v9  ;;  %v2847_v9 = vld [vmem:[#allocation4 + $0xe8] sm:$0xff]  ;;  %v2841_v11 = vld [vmem:[#allocation4 + $0xb8] sm:$0xff] }
 0x237   :  { %5066 = vmatprep.subr.bf16.mxu0 %v5065_v19 }
 0x239   :  { %5096 = vmatpush1.bf16.msra.mxu1 %v5095_v15 }
 0x23a   :  { %5098 = vmatprep.subr.bf16.mxu1 %v5097_v53  ;;  %5068 = vmatpush1.bf16.msra.mxu0 %v5067_v13 }
 0x23b   :  { %5070 = vmatprep.subr.bf16.mxu0 %v5069_v27 }
 0x23d   :  { %5100 = vmatpush1.bf16.msra.mxu1 %v5099_v25 }
 0x23e   :  { %5102 = vmatprep.subr.bf16.mxu1 %v5101_v18  ;;  %5072 = vmatpush1.bf16.msra.mxu0 %v5071_v10 }
 0x23f   :  { %5074 = vmatprep.subr.bf16.mxu0 %v5073_v51 }
 0x241   :  { %5104 = vmatpush1.bf16.msra.mxu1 %v5103_v33 }
 0x242   :  { %5106 = vmatprep.subr.bf16.mxu1 %v5105_v23  ;;  %5076 = vmatpush1.bf16.msra.mxu0 %v5075_v22 }
 0x243   :  { %5078 = vmatprep.subr.bf16.mxu0 %v5077_v63 }
 0x245   :  { %5108 = vmatpush1.bf16.msra.mxu1 %v5107_v8 }
 0x246   :  { %5110 = vmatprep.subr.bf16.mxu1 %v5109_v40  ;;  %5080 = vmatpush1.bf16.msra.mxu0 %v5079_v38  ;;  %v2830_v40 = vld [vmem:[#allocation4 + $0x60] sm:$0xff] }
 0x247   :  { %5114 = vmatprep.subr.bf16.mxu0 %v5113_v57  ;;  %v5115_v6 = vpack.c.bf16 %v2830_v40, %v2822_v47  ;;  %v2904_v40 = vld [vmem:[#allocation4 + $0x2b0] sm:$0xff] }
 0x249   :  { %5112 = vmatpush1.bf16.msra.mxu1 %v5111_v43  ;;  %v2839_v43 = vld [vmem:[#allocation4 + $0xa8] sm:$0xff] }
 0x24a   :  { %5146 = vmatprep.subr.bf16.mxu1 %v5145_v45  ;;  %v5147_v45 = vpack.c.bf16 %v2832_v52, %v2824_v3  ;;  %v2919_v3 = vld [vmem:[#allocation4 + $0x328] sm:$0xff] }
 0x24b   :  { %v2927_v52 = vld [vmem:[#allocation4 + $0x368] sm:$0xff] }
 0x27f   :  { %v1668_v39 = vpop.f32.mrb[58].mxu1 }
 0x280   :  { %v4571_v56 = vpop.f32.mrb[59].mxu1 }
 0x288   :  { %v1823_v16 = vpop.f32.mrb[74].mxu0 }
 0x289   :  { %v4609_v24 = vpop.f32.mrb[75].mxu0 }
 0x28a   :  { %v2846_v24 = vld [vmem:[#allocation4 + $0xe0] sm:$0xff] }
 0x28f   :  { %v1741_v14 = vpop.f32.mrb[60].mxu1 }
 0x290   :  { %v1742_v2 = vadd.f32 %v1741_v14, %v1668_v39  ;;  %v4590_v34 = vpop.f32.mrb[61].mxu1 }
 0x291   :  { %v5149_v34 = vpack.c.bf16 %v2849_v55, %v2841_v11 }
 0x292   :  { %v1827_v17 = vadd.f32 %v1823_v16, %v1742_v2  ;;  %v2838_v16 = vld [vmem:[#allocation4 + $0xa0] sm:$0xff]  ;;  %v5117_v2 = vpack.c.bf16 %v2847_v9, %v2839_v43  ;;  %v2921_v43 = vld [vmem:[#allocation4 + $0x338] sm:$0xff] }
 0x293   :  { %v2929_v9 = vld [vmem:[#allocation4 + $0x378] sm:$0xff] }
 0x298   :  { %v1994_v61 = vpop.f32.mrb[76].mxu0 }
 0x299   :  { %v4647_v15 = vpop.f32.mrb[77].mxu0 }
 0x29a   :  { %v2855_v15 = vld [vmem:[#allocation4 + $0x128] sm:$0xff] }
 0x29f   :  { %v1906_v54 = vpop.f32.mrb[62].mxu1 }
 0x2a0   :  { %v1910_v62 = vadd.f32 %v1906_v54, %v1827_v17  ;;  %v4628_v37 = vpop.f32.mrb[63].mxu1  ;;  %v2840_v17 = vld [vmem:[#allocation4 + $0xb0] sm:$0xff]  ;;  %v2863_v54 = vld [vmem:[#allocation4 + $0x168] sm:$0xff] }
 0x2a1   :  { %v2865_v37 = vld [vmem:[#allocation4 + $0x178] sm:$0xff] }
 0x2a2   :  { %v1917_v27 = vadd.f32 %v3868_v58, %v1910_v62  ;;  %v2857_v62 = vld [vmem:[#allocation4 + $0x138] sm:$0xff] }
 0x2a4   :  { %v1918_v18 = vmax.f32 %v1917_v27, 0.0  ;;  %v2873_v27 = vld [vmem:[#allocation4 + $0x1b8] sm:$0xff] }
 0x2a8   :  { %v2143_v19 = vpop.f32.mrb[78].mxu0 }
 0x2a9   :  { %v4685_v53 = vpop.f32.mrb[79].mxu0 }
 0x2af   :  { %v2064_v1 = vpop.f32.mrb[64].mxu1 }
 0x2b0   :  { %v2065_v35 = vadd.f32 %v2064_v1, %v1994_v61  ;;  %v4666_v60 = vpop.f32.mrb[65].mxu1  ;;  %v2848_v61 = vld [vmem:[#allocation4 + $0xf0] sm:$0xff]  ;;  %v2854_v1 = vld [vmem:[#allocation4 + $0x120] sm:$0xff] }
 0x2b1   :  { %v5151_v53 = vpack.c.bf16 %v2848_v61, %v2840_v17  ;;  %v5121_v60 = vpack.c.bf16 %v2863_v54, %v2855_v15  ;;  %v2943_v17 = vld [vmem:[#allocation4 + $0x3e8] sm:$0xff]  ;;  %v2937_v61 = vld [vmem:[#allocation4 + $0x3b8] sm:$0xff] }
 0x2b2   :  { %v2147_v13 = vadd.f32 %v2143_v19, %v2065_v35  ;;  %v5119_v19 = vpack.c.bf16 %v2846_v24, %v2838_v16  ;;  %v2862_v35 = vld [vmem:[#allocation4 + $0x160] sm:$0xff]  ;;  %v5169_v16 = vpack.c.bf16 %v2929_v9, %v2921_v43  ;;  %v2920_v24 = vld [vmem:[#allocation4 + $0x330] sm:$0xff]  ;;  %v2945_v15 = vld [vmem:[#allocation4 + $0x3f8] sm:$0xff] }
 0x2b3   :  { %v3286_v43 = vld [vmem:[#allocation6 + $0x30] sm:$0xff]  ;;  %v3287_v9 = vld [vmem:[#allocation6 + $0x38] sm:$0xff] }
 0x2b8   :  { %v2306_v7 = vpop.f32.mrb[80].mxu0 }
 0x2b9   :  { %v4723_v20 = vpop.f32.mrb[81].mxu0 }
 0x2ba   :  { %v2864_v20 = vld [vmem:[#allocation4 + $0x170] sm:$0xff] }
 0x2bf   :  { %v2214_v25 = vpop.f32.mrb[66].mxu1 }
 0x2c0   :  { %v2218_v26 = vadd.f32 %v2214_v25, %v2147_v13  ;;  %v4704_v28 = vpop.f32.mrb[67].mxu1  ;;  %v5153_v13 = vpack.c.bf16 %v2865_v37, %v2857_v62  ;;  %v2879_v25 = vld [vmem:[#allocation4 + $0x1e8] sm:$0xff]  ;;  %v2934_v37 = vld [vmem:[#allocation4 + $0x3a0] sm:$0xff] }
 0x2c1   :  { %v5123_v28 = vpack.c.bf16 %v2862_v35, %v2854_v1  ;;  %v5173_v1 = vpack.c.bf16 %v2945_v15, %v2937_v61  ;;  %v2936_v35 = vld [vmem:[#allocation4 + $0x3b0] sm:$0xff]  ;;  %v3288_v61 = vld [vmem:[#allocation6 + $0x40] sm:$0xff]  ;;  %v3289_v15 = vld [vmem:[#allocation6 + $0x48] sm:$0xff] }
 0x2c2   :  { %v2219_v12 = vadd.f32 %v3868_v58, %v2218_v26  ;;  %v2881_v26 = vld [vmem:[#allocation4 + $0x1f8] sm:$0xff] }
 0x2c4   :  { %v2220_v32 = vmax.f32 %v2219_v12, 0.0 }
 0x2c6   :  { %v2221_v31 = vmax.f32 %v1918_v18, %v2220_v32  ;;  %v2870_v18 = vld [vmem:[#allocation4 + $0x1a0] sm:$0xff] }
 0x2c7   :  { %v2878_v32 = vld [vmem:[#allocation4 + $0x1e0] sm:$0xff] }
 0x2c8   :  { %v2446_v4 = vpop.f32.mrb[82].mxu0 }
 0x2c9   :  { %v4761_v10 = vpop.f32.mrb[83].mxu0 }
 0x2ca   :  { %v2872_v10 = vld [vmem:[#allocation4 + $0x1b0] sm:$0xff] }
 0x2cf   :  { %v2376_v33 = vpop.f32.mrb[68].mxu1 }
 0x2d0   :  { %v2377_v30 = vadd.f32 %v2376_v33, %v2306_v7  ;;  %v4742_v44 = vpop.f32.mrb[69].mxu1  ;;  %v2856_v7 = vld [vmem:[#allocation4 + $0x130] sm:$0xff] }
 0x2d1   :  { %v5155_v12 = vpack.c.bf16 %v2864_v20, %v2856_v7  ;;  %v2880_v33 = vld [vmem:[#allocation4 + $0x1f0] sm:$0xff]  ;;  %v2895_v44 = vld [vmem:[#allocation4 + $0x268] sm:$0xff]  ;;  %v3328_v20 = vld [vmem:[#allocation6 + $0x180] sm:$0xff] }
 0x2d2   :  { %v2450_v36 = vadd.f32 %v2446_v4, %v2377_v30  ;;  %v5157_v4 = vpack.c.bf16 %v2881_v26, %v2873_v27  ;;  %v2887_v30 = vld [vmem:[#allocation4 + $0x228] sm:$0xff]  ;;  %v3280_v26 = vld [vmem:[#allocation6] sm:$0xff] }
 0x2d3   :  { %v3297_v7 = vld [vmem:[#allocation6 + $0x88] sm:$0xff] }
 0x2d8   :  { %v2599_v51 = vpop.f32.mrb[84].mxu0 }
 0x2d9   :  { %v4799_v0 = vpop.f32.mrb[85].mxu0 }
 0x2da   :  { %v5127_v0 = vpack.c.bf16 %v2878_v32, %v2870_v18  ;;  %v3312_v32 = vld [vmem:[#allocation6 + $0x100] sm:$0xff] }
 0x2df   :  { %v2517_v48 = vpop.f32.mrb[70].mxu1 }
 0x2e0   :  { %v2521_v41 = vadd.f32 %v2517_v48, %v2450_v36  ;;  %v4780_v23 = vpop.f32.mrb[71].mxu1  ;;  %v2889_v36 = vld [vmem:[#allocation4 + $0x238] sm:$0xff]  ;;  %v2886_v48 = vld [vmem:[#allocation4 + $0x220] sm:$0xff] }
 0x2e1   :  { %v5129_v23 = vpack.c.bf16 %v2895_v44, %v2887_v30  ;;  %v3331_v30 = vld [vmem:[#allocation6 + $0x198] sm:$0xff] }
 0x2e2   :  { %v2522_v22 = vadd.f32 %v3868_v58, %v2521_v41  ;;  %v2894_v41 = vld [vmem:[#allocation4 + $0x260] sm:$0xff] }
 0x2e4   :  { %v2523_v5 = vmax.f32 %v2522_v22, 0.0 }
 0x2e6   :  { %v2524_v46 = vmax.f32 %v2221_v31, %v2523_v5  ;;  %v2888_v5 = vld [vmem:[#allocation4 + $0x230] sm:$0xff] }
 0x2e8   :  { %v2739_v39 = vpop.f32.mrb[86].mxu0 }
 0x2e9   :  { %v4837_v8 = vpop.f32.mrb[87].mxu0 }
 0x2ea   :  { %v2911_v8 = vld [vmem:[#allocation4 + $0x2e8] sm:$0xff] }
 0x2ef   :  { %v2669_v56 = vpop.f32.mrb[72].mxu1 }
 0x2f0   :  { %v2670_v49 = vadd.f32 %v2669_v56, %v2599_v51  ;;  %v4818_v29 = vpop.f32.mrb[73].mxu1  ;;  %v2897_v51 = vld [vmem:[#allocation4 + $0x278] sm:$0xff] }
 0x2f1   :  { %v5161_v22 = vpack.c.bf16 %v2897_v51, %v2889_v36  ;;  %v2905_v56 = vld [vmem:[#allocation4 + $0x2b8] sm:$0xff]  ;;  %v5131_v29 = vpack.c.bf16 %v2894_v41, %v2886_v48  ;;  %v3282_v51 = vld [vmem:[#allocation6 + $0x10] sm:$0xff] }
 0x2f2   :  { %v2743_v59 = vadd.f32 %v2739_v39, %v2670_v49  ;;  %v2903_v39 = vld [vmem:[#allocation4 + $0x2a8] sm:$0xff]  ;;  %v2913_v49 = vld [vmem:[#allocation4 + $0x2f8] sm:$0xff]  ;;  %v3314_v41 = vld [vmem:[#allocation6 + $0x110] sm:$0xff] }
 0x2f3   :  { %v5165_v47 = vpack.c.bf16 %v2913_v49, %v2905_v56  ;;  %v3284_v49 = vld [vmem:[#allocation6 + $0x20] sm:$0xff] }
 0x2ff   :  { %v2810_v63 = vpop.f32.mrb[74].mxu1 }
 0x300   :  { %v2814_v50 = vadd.f32 %v2810_v63, %v2743_v59  ;;  %v4856_v42 = vpop.f32.mrb[75].mxu1  ;;  %v2902_v63 = vld [vmem:[#allocation4 + $0x2a0] sm:$0xff] }
 0x301   :  { %v5133_v42 = vpack.c.bf16 %v2911_v8, %v2903_v39  ;;  %v3333_v39 = vld [vmem:[#allocation6 + $0x1a8] sm:$0xff] }
 0x302   :  { %v2815_v38 = vadd.f32 %v3868_v58, %v2814_v50  ;;  %v2871_v58 = vld [vmem:[#allocation4 + $0x1a8] sm:$0xff]  ;;  %v2910_v50 = vld [vmem:[#allocation4 + $0x2e0] sm:$0xff] }
 0x303   :  { %v5125_v31 = vpack.c.bf16 %v2879_v25, %v2871_v58  ;;  %v5135_v11 = vpack.c.bf16 %v2910_v50, %v2902_v63  ;;  %v3329_v58 = vld [vmem:[#allocation6 + $0x188] sm:$0xff]  ;;  %v3316_v50 = vld [vmem:[#allocation6 + $0x120] sm:$0xff] }
 0x304   :  { %v2816_v57 = vmax.f32 %v2815_v38, 0.0  ;;  %v2912_v38 = vld [vmem:[#allocation4 + $0x2f0] sm:$0xff]  ;;  %v5209_v18 = vpack.c.bf16 %v3329_v58, %v3328_v20  ;;  %v3291_v58 = vld [vmem:[#allocation6 + $0x58] sm:$0xff] }
 0x305   :  { %v5167_v55 = vpack.c.bf16 %v2912_v38, %v2904_v40  ;;  %v3303_v40 = vld [vmem:[#allocation6 + $0xb8] sm:$0xff]  ;;  %v3334_v38 = vld [vmem:[#allocation6 + $0x1b0] sm:$0xff] }
 0x306   :  { %v6230_v14 = vmax.f32 %v2524_v46, %v2816_v57  ;;  %v2896_v46 = vld [vmem:[#allocation4 + $0x270] sm:$0xff]  ;;  %v2918_v57 = vld [vmem:[#allocation4 + $0x320] sm:$0xff] }
 0x307   :  { %v5163_v59 = vpack.c.bf16 %v2896_v46, %v2888_v5  ;;  %v3301_v5 = vld [vmem:[#allocation6 + $0xa8] sm:$0xff]  ;;  %v3332_v46 = vld [vmem:[#allocation6 + $0x1a0] sm:$0xff]  ;;  %v3290_v20 = vld [vmem:[#allocation6 + $0x50] sm:$0xff] }
 0x308   :  { %3053 = vmatmul.mubr.f32.vlgmr.msra.gmra.mrb[88].mxu0 %v6230_v14  ;;  %3124 = vmatmul.mubr.f32.vlgmr.msra.gmra.mrb[76].mxu1 %v6230_v14  ;;  %v5217_v63 = vpack.c.bf16 %v3333_v39, %v3332_v46  ;;  %v3343_v46 = vld [vmem:[#allocation6 + $0x1f8] sm:$0xff]  ;;  %v3294_v39 = vld [vmem:[#allocation6 + $0x70] sm:$0xff] }
 0x309   :  { %5116 = vmatpush1.bf16.msra.mxu0 %v5115_v6  ;;  %5148 = vmatpush1.bf16.msra.mxu1 %v5147_v45  ;;  %v2926_v6 = vld [vmem:[#allocation4 + $0x360] sm:$0xff]  ;;  %v5137_v45 = vpack.c.bf16 %v2927_v52, %v2919_v3  ;;  %v3335_v3 = vld [vmem:[#allocation6 + $0x1b8] sm:$0xff] }
 0x30a   :  { %5118 = vmatprep.subr.bf16.mxu0 %v5117_v2  ;;  %5150 = vmatprep.subr.bf16.mxu1 %v5149_v34  ;;  %v2928_v2 = vld [vmem:[#allocation4 + $0x370] sm:$0xff]  ;;  %v2935_v34 = vld [vmem:[#allocation4 + $0x3a8] sm:$0xff]  ;;  %v5139_v54 = vpack.c.bf16 %v2926_v6, %v2918_v57  ;;  %v3319_v6 = vld [vmem:[#allocation6 + $0x138] sm:$0xff] }
 0x30b   :  { %3194 = vmatprep.mubr.f32.mxu0 %v5418_v21  ;;  %3265 = vmatprep.mubr.f32.mxu1 %v5418_v21  ;;  %v5159_v21 = vpack.c.bf16 %v2880_v33, %v2872_v10  ;;  %v5171_v62 = vpack.c.bf16 %v2928_v2, %v2920_v24  ;;  %v3299_v10 = vld [vmem:[#allocation6 + $0x98] sm:$0xff]  ;;  %v3330_v33 = vld [vmem:[#allocation6 + $0x190] sm:$0xff]  ;;  %v3336_v24 = vld [vmem:[#allocation6 + $0x1c0] sm:$0xff] }
 0x30c   :  { %v5213_v48 = vpack.c.bf16 %v3331_v30, %v3330_v33  ;;  %v3318_v57 = vld [vmem:[#allocation6 + $0x130] sm:$0xff]  ;;  %v3337_v2 = vld [vmem:[#allocation6 + $0x1c8] sm:$0xff]  ;;  %v3292_v33 = vld [vmem:[#allocation6 + $0x60] sm:$0xff] }
 0x30d   :  { %5120 = vmatpush1.bf16.msra.mxu0 %v5119_v19  ;;  %5152 = vmatpush1.bf16.msra.mxu1 %v5151_v53  ;;  %v2942_v19 = vld [vmem:[#allocation4 + $0x3e0] sm:$0xff]  ;;  %v5141_v53 = vpack.c.bf16 %v2943_v17, %v2935_v34  ;;  %v5191_v34 = vpack.c.bf16 %v3287_v9, %v3286_v43  ;;  %v5223_v17 = vpack.c.bf16 %v3319_v6, %v3318_v57 }
 0x30e   :  { %5122 = vmatprep.subr.bf16.mxu0 %v5121_v60  ;;  %5154 = vmatprep.subr.bf16.mxu1 %v5153_v13  ;;  %v2944_v60 = vld [vmem:[#allocation4 + $0x3f0] sm:$0xff]  ;;  %v3296_v13 = vld [vmem:[#allocation6 + $0x80] sm:$0xff]  ;;  %v5143_v25 = vpack.c.bf16 %v2942_v19, %v2934_v37  ;;  %v3321_v19 = vld [vmem:[#allocation6 + $0x148] sm:$0xff] }
 0x30f   :  { %v5175_v27 = vpack.c.bf16 %v2944_v60, %v2936_v35  ;;  %v3320_v37 = vld [vmem:[#allocation6 + $0x140] sm:$0xff]  ;;  %v3338_v35 = vld [vmem:[#allocation6 + $0x1d0] sm:$0xff]  ;;  %v3339_v60 = vld [vmem:[#allocation6 + $0x1d8] sm:$0xff] }
 0x311   :  { %5124 = vmatpush1.bf16.msra.mxu0 %v5123_v28  ;;  %5156 = vmatpush1.bf16.msra.mxu1 %v5155_v12  ;;  %v3281_v28 = vld [vmem:[#allocation6 + $0x8] sm:$0xff]  ;;  %v5177_v12 = vpack.c.bf16 %v3297_v7, %v3296_v13  ;;  %v5195_v13 = vpack.c.bf16 %v3289_v15, %v3288_v61  ;;  %v5227_v7 = vpack.c.bf16 %v3321_v19, %v3320_v37  ;;  %v3376_v19 = vld [vmem:[#allocation6 + $0x300] sm:$0xff] }
 0x312   :  { %5126 = vmatprep.subr.bf16.mxu0 %v5125_v31  ;;  %5158 = vmatprep.subr.bf16.mxu1 %v5157_v4  ;;  %v3313_v31 = vld [vmem:[#allocation6 + $0x108] sm:$0xff]  ;;  %v3298_v4 = vld [vmem:[#allocation6 + $0x90] sm:$0xff]  ;;  %v5179_v44 = vpack.c.bf16 %v3281_v28, %v3280_v26  ;;  %v3323_v28 = vld [vmem:[#allocation6 + $0x158] sm:$0xff] }
 0x313   :  { %v5211_v36 = vpack.c.bf16 %v3313_v31, %v3312_v32  ;;  %v3322_v26 = vld [vmem:[#allocation6 + $0x150] sm:$0xff]  ;;  %v3340_v32 = vld [vmem:[#allocation6 + $0x1e0] sm:$0xff]  ;;  %v3341_v31 = vld [vmem:[#allocation6 + $0x1e8] sm:$0xff] }
 0x314   :  { %v3345_v61 = vld [vmem:[#allocation6 + $0x208] sm:$0xff] }
 0x315   :  { %5128 = vmatpush1.bf16.msra.mxu0 %v5127_v0  ;;  %5160 = vmatpush1.bf16.msra.mxu1 %v5159_v21  ;;  %v3283_v0 = vld [vmem:[#allocation6 + $0x18] sm:$0xff]  ;;  %v5181_v21 = vpack.c.bf16 %v3299_v10, %v3298_v4  ;;  %v5199_v4 = vpack.c.bf16 %v3291_v58, %v3290_v20  ;;  %v5231_v10 = vpack.c.bf16 %v3323_v28, %v3322_v26  ;;  %v3346_v28 = vld [vmem:[#allocation6 + $0x210] sm:$0xff] }
 0x316   :  { %5130 = vmatprep.subr.bf16.mxu0 %v5129_v23  ;;  %5162 = vmatprep.subr.bf16.mxu1 %v5161_v22  ;;  %v3315_v23 = vld [vmem:[#allocation6 + $0x118] sm:$0xff]  ;;  %v3300_v22 = vld [vmem:[#allocation6 + $0xa0] sm:$0xff]  ;;  %v5183_v8 = vpack.c.bf16 %v3283_v0, %v3282_v51  ;;  %v3325_v0 = vld [vmem:[#allocation6 + $0x168] sm:$0xff] }
 0x317   :  { %v5215_v56 = vpack.c.bf16 %v3315_v23, %v3314_v41  ;;  %v3324_v51 = vld [vmem:[#allocation6 + $0x160] sm:$0xff]  ;;  %v3310_v41 = vld [vmem:[#allocation6 + $0xf0] sm:$0xff]  ;;  %v3311_v23 = vld [vmem:[#allocation6 + $0xf8] sm:$0xff] }
 0x318   :  { %v3395_v20 = vld [vmem:[#allocation6 + $0x398] sm:$0xff] }
 0x319   :  { %5132 = vmatpush1.bf16.msra.mxu0 %v5131_v29  ;;  %5164 = vmatpush1.bf16.msra.mxu1 %v5163_v59  ;;  %v3285_v29 = vld [vmem:[#allocation6 + $0x28] sm:$0xff]  ;;  %v5185_v59 = vpack.c.bf16 %v3301_v5, %v3300_v22  ;;  %v3342_v22 = vld [vmem:[#allocation6 + $0x1f0] sm:$0xff]  ;;  %v5205_v5 = vpack.c.bf16 %v3311_v23, %v3310_v41 }
 0x31a   :  { %5134 = vmatprep.subr.bf16.mxu0 %v5133_v42  ;;  %5166 = vmatprep.subr.bf16.mxu1 %v5165_v47  ;;  %v3317_v42 = vld [vmem:[#allocation6 + $0x128] sm:$0xff]  ;;  %v3302_v47 = vld [vmem:[#allocation6 + $0xb0] sm:$0xff]  ;;  %v5187_v52 = vpack.c.bf16 %v3285_v29, %v3284_v49 }
 0x31b   :  { %v3326_v29 = vld [vmem:[#allocation6 + $0x170] sm:$0xff]  ;;  %v3349_v41 = vld [vmem:[#allocation6 + $0x228] sm:$0xff] }
 0x31d   :  { %5136 = vmatpush1.bf16.msra.mxu0 %v5135_v11  ;;  %5168 = vmatpush1.bf16.msra.mxu1 %v5167_v55  ;;  %v5189_v11 = vpack.c.bf16 %v3303_v40, %v3302_v47  ;;  %v5221_v55 = vpack.c.bf16 %v3335_v3, %v3334_v38  ;;  %v3392_v47 = vld [vmem:[#allocation6 + $0x380] sm:$0xff]  ;;  %v3393_v38 = vld [vmem:[#allocation6 + $0x388] sm:$0xff] }
 0x31e   :  { %5138 = vmatprep.subr.bf16.mxu0 %v5137_v45  ;;  %5170 = vmatprep.subr.bf16.mxu1 %v5169_v16  ;;  %v3304_v45 = vld [vmem:[#allocation6 + $0xc0] sm:$0xff]  ;;  %v3305_v16 = vld [vmem:[#allocation6 + $0xc8] sm:$0xff]  ;;  %v5273_v3 = vpack.c.bf16 %v3393_v38, %v3392_v47  ;;  %v3383_v38 = vld [vmem:[#allocation6 + $0x338] sm:$0xff] }
 0x321   :  { %5140 = vmatpush1.bf16.msra.mxu0 %v5139_v54  ;;  %5172 = vmatpush1.bf16.msra.mxu1 %v5171_v62  ;;  %v5193_v54 = vpack.c.bf16 %v3305_v16, %v3304_v45  ;;  %v5225_v62 = vpack.c.bf16 %v3337_v2, %v3336_v24 }
 0x322   :  { %5142 = vmatprep.subr.bf16.mxu0 %v5141_v53  ;;  %5174 = vmatprep.subr.bf16.mxu1 %v5173_v1  ;;  %v3306_v53 = vld [vmem:[#allocation6 + $0xd0] sm:$0xff]  ;;  %v3307_v1 = vld [vmem:[#allocation6 + $0xd8] sm:$0xff] }
 0x325   :  { %5144 = vmatpush1.bf16.msra.mxu0 %v5143_v25  ;;  %5176 = vmatpush1.bf16.msra.mxu1 %v5175_v27  ;;  %v5197_v25 = vpack.c.bf16 %v3307_v1, %v3306_v53  ;;  %v5229_v27 = vpack.c.bf16 %v3339_v60, %v3338_v35  ;;  %v3377_v53 = vld [vmem:[#allocation6 + $0x308] sm:$0xff]  ;;  %v3362_v1 = vld [vmem:[#allocation6 + $0x290] sm:$0xff] }
 0x326   :  { %5178 = vmatprep.subr.bf16.mxu0 %v5177_v12  ;;  %5210 = vmatprep.subr.bf16.mxu1 %v5209_v18  ;;  %v3308_v12 = vld [vmem:[#allocation6 + $0xe0] sm:$0xff]  ;;  %v3309_v18 = vld [vmem:[#allocation6 + $0xe8] sm:$0xff]  ;;  %v5275_v26 = vpack.c.bf16 %v3377_v53, %v3376_v19  ;;  %v3354_v19 = vld [vmem:[#allocation6 + $0x250] sm:$0xff] }
 0x327   :  { %v5201_v30 = vpack.c.bf16 %v3309_v18, %v3308_v12  ;;  %v3347_v12 = vld [vmem:[#allocation6 + $0x218] sm:$0xff] }
 0x328   :  { %3195 = vmatmul.mubr.f32.vlgmr.msra.gmra.mrb[90].mxu0 %v6230_v14  ;;  %3266 = vmatmul.mubr.f32.vlgmr.msra.gmra.mrb[78].mxu1 %v6230_v14  ;;  %v5219_v14 = vpack.c.bf16 %v3317_v42, %v3316_v50  ;;  %v3360_v50 = vld [vmem:[#allocation6 + $0x280] sm:$0xff]  ;;  %v3361_v42 = vld [vmem:[#allocation6 + $0x288] sm:$0xff]  ;;  %v3355_v53 = vld [vmem:[#allocation6 + $0x258] sm:$0xff] }
 0x329   :  { %5180 = vmatpush3.bf16.msra.mxu0 %v5179_v44  ;;  %5212 = vmatpush3.bf16.msra.mxu1 %v5211_v36  ;;  %v5233_v44 = vpack.c.bf16 %v3341_v31, %v3340_v32  ;;  %v3293_v36 = vld [vmem:[#allocation6 + $0x68] sm:$0xff]  ;;  %v5241_v40 = vpack.c.bf16 %v3361_v42, %v3360_v50  ;;  %v3351_v50 = vld [vmem:[#allocation6 + $0x238] sm:$0xff] }
 0x32a   :  { %5182 = vmatprep.subr.bf16.mxu0 %v5181_v21  ;;  %5214 = vmatprep.subr.bf16.mxu1 %v5213_v48  ;;  %v5203_v21 = vpack.c.bf16 %v3293_v36, %v3292_v33  ;;  %v5235_v48 = vpack.c.bf16 %v3325_v0, %v3324_v51  ;;  %v3379_v33 = vld [vmem:[#allocation6 + $0x318] sm:$0xff]  ;;  %v3396_v36 = vld [vmem:[#allocation6 + $0x3a0] sm:$0xff]  ;;  %v3397_v51 = vld [vmem:[#allocation6 + $0x3a8] sm:$0xff]  ;;  %v5247_v0 = vpack.c.bf16 %v3347_v12, %v3346_v28 }
 0x32b   :  { %v3356_v12 = vld [vmem:[#allocation6 + $0x260] sm:$0xff] }
 0x32d   :  { %5184 = vmatpush3.bf16.msra.mxu0 %v5183_v8  ;;  %5216 = vmatpush3.bf16.msra.mxu1 %v5215_v56  ;;  %v3295_v8 = vld [vmem:[#allocation6 + $0x78] sm:$0xff]  ;;  %v5237_v56 = vpack.c.bf16 %v3343_v46, %v3342_v22  ;;  %v5281_v22 = vpack.c.bf16 %v3397_v51, %v3396_v36  ;;  %v3381_v46 = vld [vmem:[#allocation6 + $0x328] sm:$0xff] }
 0x32e   :  { %5186 = vmatprep.subr.bf16.mxu0 %v5185_v59  ;;  %5218 = vmatprep.subr.bf16.mxu1 %v5217_v63  ;;  %v5207_v49 = vpack.c.bf16 %v3295_v8, %v3294_v39  ;;  %v3327_v59 = vld [vmem:[#allocation6 + $0x178] sm:$0xff]  ;;  %v3366_v39 = vld [vmem:[#allocation6 + $0x2b0] sm:$0xff] }
 0x32f   :  { %v5239_v63 = vpack.c.bf16 %v3327_v59, %v3326_v29  ;;  %v3367_v8 = vld [vmem:[#allocation6 + $0x2b8] sm:$0xff] }
 0x330   :  { %v5253_v42 = vpack.c.bf16 %v3367_v8, %v3366_v39  ;;  %v3375_v51 = vld [vmem:[#allocation6 + $0x2f8] sm:$0xff] }
 0x331   :  { %5188 = vmatpush3.bf16.msra.mxu0 %v5187_v52  ;;  %5220 = vmatpush3.bf16.msra.mxu1 %v5219_v14  ;;  %v2948_v52 = vlaneseq  ;;  %v3359_v8 = vld [vmem:[#allocation6 + $0x278] sm:$0xff] }
 0x332   :  { %5190 = vmatprep.subr.bf16.mxu0 %v5189_v11  ;;  %5222 = vmatprep.subr.bf16.mxu1 %v5221_v55  ;;  %v6245_v11 = vld [vmem:[%s6273_s6] sm:$0xff] }
 0x333   :  { %v6238_v14 = vshrl.u32 %v2948_v52, 7  ;;  %v3369_v52 = vld [vmem:[#allocation6 + $0x2c8] sm:$0xff] }
 0x335   :  { %5192 = vmatpush3.bf16.msra.mxu0 %v5191_v34  ;;  %5224 = vmatpush3.bf16.msra.mxu1 %v5223_v17  ;;  %v2950_v43 = vsub.s32 0, %v6238_v14  ;;  %v2958_v9 = vsub.s32 2, %v6238_v14  ;;  %v2954_v55 = vsub.s32 1, %v6238_v14  ;;  %v2962_v57 = vsub.s32 3, %v6238_v14  ;;  %v3344_v17 = vld [vmem:[#allocation6 + $0x200] sm:$0xff] }
 0x336   :  { %5194 = vmatprep.subr.bf16.mxu0 %v5193_v54  ;;  %5226 = vmatprep.subr.bf16.mxu1 %v5225_v62  ;;  %v2966_v28 = vsub.s32 4, %v6238_v14  ;;  %v2978_v36 = vsub.s32 7, %v6238_v14 }
 0x337   :  { %v2951_v6 = vrot.slane %v6245_v11, %v2950_v43  ;;  %v2959_v45 = vrot.slane %v6245_v11, %v2958_v9  ;;  %v2955_v16 = vrot.slane %v6245_v11, %v2954_v55  ;;  %v2963_v24 = vrot.slane %v6245_v11, %v2962_v57  ;;  %v3400_v43 = vld [vmem:[#allocation6 + $0x3c0] sm:$0xff]  ;;  %v3401_v9 = vld [vmem:[#allocation6 + $0x3c8] sm:$0xff] }
 0x339   :  { %5196 = vmatpush3.bf16.msra.mxu0 %v5195_v13  ;;  %5228 = vmatpush3.bf16.msra.mxu1 %v5227_v7  ;;  %v3363_v13 = vld [vmem:[#allocation6 + $0x298] sm:$0xff]  ;;  %v3394_v7 = vld [vmem:[#allocation6 + $0x390] sm:$0xff] }
 0x33a   :  { %5198 = vmatprep.subr.bf16.mxu0 %v5197_v25  ;;  %5230 = vmatprep.subr.bf16.mxu1 %v5229_v27  ;;  %v5243_v27 = vpack.c.bf16 %v3345_v61, %v3344_v17  ;;  %v5245_v31 = vpack.c.bf16 %v3363_v13, %v3362_v1  ;;  %v3370_v17 = vld [vmem:[#allocation6 + $0x2d0] sm:$0xff]  ;;  %v3371_v61 = vld [vmem:[#allocation6 + $0x2d8] sm:$0xff] }
 0x33b   :  { %v5261_v1 = vpack.c.bf16 %v3371_v61, %v3370_v17  ;;  %v3387_v13 = vld [vmem:[#allocation6 + $0x358] sm:$0xff] }
 0x33d   :  { %5200 = vmatpush3.bf16.msra.mxu0 %v5199_v4  ;;  %5232 = vmatpush3.bf16.msra.mxu1 %v5231_v10  ;;  %v5277_v4 = vpack.c.bf16 %v3395_v20, %v3394_v7  ;;  %v3378_v10 = vld [vmem:[#allocation6 + $0x310] sm:$0xff]  ;;  %v3372_v7 = vld [vmem:[#allocation6 + $0x2e0] sm:$0xff]  ;;  %v3373_v20 = vld [vmem:[#allocation6 + $0x2e8] sm:$0xff] }
 0x33e   :  { %5202 = vmatprep.subr.bf16.mxu0 %v5201_v30  ;;  %5234 = vmatprep.subr.bf16.mxu1 %v5233_v44  ;;  %v3364_v30 = vld [vmem:[#allocation6 + $0x2a0] sm:$0xff]  ;;  %v3365_v44 = vld [vmem:[#allocation6 + $0x2a8] sm:$0xff] }
 0x33f   :  { %v5249_v23 = vpack.c.bf16 %v3365_v44, %v3364_v30  ;;  %v3374_v30 = vld [vmem:[#allocation6 + $0x2f0] sm:$0xff]  ;;  %v2970_v44 = vsub.s32 5, %v6238_v14 }
 0x341   :  { %5204 = vmatpush3.bf16.msra.mxu0 %v5203_v21  ;;  %5236 = vmatpush3.bf16.msra.mxu1 %v5235_v48  ;;  %v5279_v21 = vpack.c.bf16 %v3379_v33, %v3378_v10  ;;  %v3348_v48 = vld [vmem:[#allocation6 + $0x220] sm:$0xff]  ;;  %v3389_v33 = vld [vmem:[#allocation6 + $0x368] sm:$0xff] }
 0x342   :  { %5206 = vmatprep.subr.bf16.mxu0 %v5205_v5  ;;  %5238 = vmatprep.subr.bf16.mxu1 %v5237_v56  ;;  %v3380_v5 = vld [vmem:[#allocation6 + $0x320] sm:$0xff]  ;;  %v3398_v56 = vld [vmem:[#allocation6 + $0x3b0] sm:$0xff]  ;;  %v5251_v29 = vpack.c.bf16 %v3349_v41, %v3348_v48  ;;  %v2967_v48 = vrot.slane %v6245_v11, %v2966_v28 }
 0x343   :  { %v5283_v59 = vpack.c.bf16 %v3381_v46, %v3380_v5  ;;  %v3388_v10 = vld [vmem:[#allocation6 + $0x360] sm:$0xff]  ;;  %v5269_v46 = vpack.c.bf16 %v3375_v51, %v3374_v30 }
 0x345   :  { %5208 = vmatpush3.bf16.msra.mxu0 %v5207_v49  ;;  %5240 = vmatpush3.bf16.msra.mxu1 %v5239_v63  ;;  %v3399_v49 = vld [vmem:[#allocation6 + $0x3b8] sm:$0xff]  ;;  %v3350_v63 = vld [vmem:[#allocation6 + $0x230] sm:$0xff] }
 0x346   :  { %5242 = vmatprep.subr.bf16.mxu0 %v5241_v40  ;;  %5274 = vmatprep.subr.bf16.mxu1 %v5273_v3  ;;  %v5285_v47 = vpack.c.bf16 %v3399_v49, %v3398_v56  ;;  %v3382_v40 = vld [vmem:[#allocation6 + $0x330] sm:$0xff]  ;;  %v3368_v3 = vld [vmem:[#allocation6 + $0x2c0] sm:$0xff]  ;;  %v5255_v55 = vpack.c.bf16 %v3351_v50, %v3350_v63  ;;  %v3391_v49 = vld [vmem:[#allocation6 + $0x378] sm:$0xff] }
 0x347   :  { %v5287_v57 = vpack.c.bf16 %v3383_v38, %v3382_v40  ;;  %v3390_v56 = vld [vmem:[#allocation6 + $0x370] sm:$0xff] }
 0x3db   :  { %v3054_v2 = vpop.f32.mrb[88].mxu0  ;;  %v3125_v34 = vpop.f32.mrb[76].mxu1 }
 0x3dc   :  { %v3055_v15 = vadd.f32 %v3054_v2, %v2951_v6  ;;  %v3126_v54 = vadd.f32 %v3125_v34, %v2959_v45  ;;  %v3056_v62 = vpop.f32.mrb[89].mxu0  ;;  %v3127_v37 = vpop.f32.mrb[77].mxu1  ;;  %v3352_v6 = vld [vmem:[#allocation6 + $0x240] sm:$0xff]  ;;  %v3353_v45 = vld [vmem:[#allocation6 + $0x248] sm:$0xff] }
 0x3dd   :  { %v3057_v35 = vadd.f32 %v3056_v62, %v2955_v16  ;;  %v3128_v60 = vadd.f32 %v3127_v37, %v2963_v24  ;;  %v5257_v16 = vpack.c.bf16 %v3369_v52, %v3368_v3  ;;  %v5289_v24 = vpack.c.bf16 %v3401_v9, %v3400_v43  ;;  %v3384_v2 = vld [vmem:[#allocation6 + $0x340] sm:$0xff]  ;;  %v3385_v34 = vld [vmem:[#allocation6 + $0x348] sm:$0xff] }
 0x3de   :  { %v3272_v18 = vmax.f32 %v3055_v15, 0.0  ;;  %v3274_v32 = vmax.f32 %v3126_v54, 0.0  ;;  %v3402_v15 = vld [vmem:[#allocation6 + $0x3d0] sm:$0xff]  ;;  %v3403_v54 = vld [vmem:[#allocation6 + $0x3d8] sm:$0xff]  ;;  %v5259_v62 = vpack.c.bf16 %v3353_v45, %v3352_v6  ;;  %v5291_v37 = vpack.c.bf16 %v3385_v34, %v3384_v2 }
 0x3df   :  { %v3273_v58 = vmax.f32 %v3057_v35, 0.0  ;;  %v3275_v25 = vmax.f32 %v3128_v60, 0.0  ;;  %v5293_v35 = vpack.c.bf16 %v3403_v54, %v3402_v15  ;;  %v3386_v60 = vld [vmem:[#allocation6 + $0x350] sm:$0xff] }
 0x3e1   :  { %3479 = vmatprep.mubr.f32.mxu0 %v3273_v58  ;;  %3549 = vmatprep.mubr.f32.mxu1 %v3275_v25  ;;  %v3404_v58 = vld [vmem:[#allocation6 + $0x3e0] sm:$0xff]  ;;  %v3405_v25 = vld [vmem:[#allocation6 + $0x3e8] sm:$0xff] }
 0x3e2   :  { %3480 = vmatmul.mubr.f32.vlgmr.msra.gmra.mrb[92].mxu0 %v3272_v18  ;;  %3550 = vmatmul.mubr.f32.vlgmr.msra.gmra.mrb[80].mxu1 %v3274_v32  ;;  %v3357_v18 = vld [vmem:[#allocation6 + $0x268] sm:$0xff]  ;;  %v5265_v32 = vpack.c.bf16 %v3373_v20, %v3372_v7 }
 0x3e3   :  { %5244 = vmatpush3.bf16.msra.mxu0 %v5243_v27  ;;  %5276 = vmatpush3.bf16.msra.mxu1 %v5275_v26  ;;  %v5263_v27 = vpack.c.bf16 %v3355_v53, %v3354_v19  ;;  %v5295_v26 = vpack.c.bf16 %v3387_v13, %v3386_v60  ;;  %v5267_v41 = vpack.c.bf16 %v3357_v18, %v3356_v12 }
 0x3e4   :  { %5246 = vmatprep.subr.bf16.mxu0 %v5245_v31  ;;  %5278 = vmatprep.subr.bf16.mxu1 %v5277_v4  ;;  %v5297_v31 = vpack.c.bf16 %v3405_v25, %v3404_v58  ;;  %v2974_v4 = vsub.s32 6, %v6238_v14  ;;  %v2971_v14 = vrot.slane %v6245_v11, %v2970_v44 }
 0x3e6   :  { %v2975_v5 = vrot.slane %v6245_v11, %v2974_v4 }
 0x3e7   :  { %5248 = vmatpush3.bf16.msra.mxu0 %v5247_v0  ;;  %5280 = vmatpush3.bf16.msra.mxu1 %v5279_v21  ;;  %v3406_v0 = vld [vmem:[#allocation6 + $0x3f0] sm:$0xff]  ;;  %v3407_v21 = vld [vmem:[#allocation6 + $0x3f8] sm:$0xff] }
 0x3e8   :  { %5250 = vmatprep.subr.bf16.mxu0 %v5249_v23  ;;  %5282 = vmatprep.subr.bf16.mxu1 %v5281_v22  ;;  %v5299_v23 = vpack.c.bf16 %v3389_v33, %v3388_v10  ;;  %v3358_v22 = vld [vmem:[#allocation6 + $0x270] sm:$0xff]  ;;  %v5301_v39 = vpack.c.bf16 %v3407_v21, %v3406_v0 }
 0x3e9   :  { %v5271_v50 = vpack.c.bf16 %v3359_v8, %v3358_v22 }
 0x3eb   :  { %5252 = vmatpush3.bf16.msra.mxu0 %v5251_v29  ;;  %5284 = vmatpush3.bf16.msra.mxu1 %v5283_v59  ;;  %v2979_v29 = vrot.slane %v6245_v11, %v2978_v36 }
 0x3ec   :  { %5254 = vmatprep.subr.bf16.mxu0 %v5253_v42  ;;  %5286 = vmatprep.subr.bf16.mxu1 %v5285_v47  ;;  %v5303_v42 = vpack.c.bf16 %v3391_v49, %v3390_v56 }
 0x3ef   :  { %5256 = vmatpush3.bf16.msra.mxu0 %v5255_v55  ;;  %5288 = vmatpush3.bf16.msra.mxu1 %v5287_v57 }
 0x3f0   :  { %5258 = vmatprep.subr.bf16.mxu0 %v5257_v16  ;;  %5290 = vmatprep.subr.bf16.mxu1 %v5289_v24  ;;  %v3881_v16 = vld [vmem:[%s6275_s8] ss:$0 sm:$0xff] }
 0x3f3   :  { %5260 = vmatpush3.bf16.msra.mxu0 %v5259_v62  ;;  %5292 = vmatpush3.bf16.msra.mxu1 %v5291_v37 }
 0x3f4   :  { %5262 = vmatprep.subr.bf16.mxu0 %v5261_v1  ;;  %5294 = vmatprep.subr.bf16.mxu1 %v5293_v35 }
 0x3f7   :  { %5264 = vmatpush3.bf16.msra.mxu0 %v5263_v27  ;;  %5296 = vmatpush3.bf16.msra.mxu1 %v5295_v26 }
 0x3f8   :  { %5266 = vmatprep.subr.bf16.mxu0 %v5265_v32  ;;  %5298 = vmatprep.subr.bf16.mxu1 %v5297_v31 }
 0x3fb   :  { %v3196_v59 = vpop.f32.mrb[90].mxu0  ;;  %v3267_v63 = vpop.f32.mrb[78].mxu1  ;;  %5268 = vmatpush3.bf16.msra.mxu0 %v5267_v41  ;;  %5300 = vmatpush3.bf16.msra.mxu1 %v5299_v23 }
 0x3fc   :  { %v3197_v47 = vadd.f32 %v3196_v59, %v2967_v48  ;;  %v3268_v40 = vadd.f32 %v3267_v63, %v2975_v5  ;;  %v3198_v38 = vpop.f32.mrb[91].mxu0  ;;  %v3269_v3 = vpop.f32.mrb[79].mxu1  ;;  %5270 = vmatprep.subr.bf16.mxu0 %v5269_v46  ;;  %5302 = vmatprep.subr.bf16.mxu1 %v5301_v39 }
 0x3fd   :  { %v3199_v52 = vadd.f32 %v3198_v38, %v2971_v14  ;;  %v3270_v43 = vadd.f32 %v3269_v3, %v2979_v29 }
 0x3fe   :  { %v3276_v57 = vmax.f32 %v3197_v47, 0.0  ;;  %v3278_v11 = vmax.f32 %v3268_v40, 0.0 }
 0x3ff   :  { %v3277_v9 = vmax.f32 %v3199_v52, 0.0  ;;  %v3279_v55 = vmax.f32 %v3270_v43, 0.0  ;;  %5272 = vmatpush3.bf16.msra.mxu0 %v5271_v50  ;;  %5304 = vmatpush3.bf16.msra.mxu1 %v5303_v42 }
 0x401   :  { %3619 = vmatprep.mubr.f32.mxu0 %v3277_v9  ;;  %3689 = vmatprep.mubr.f32.mxu1 %v3279_v55 }
 0x402   :  { %3620 = vmatmul.mubr.f32.vlgmr.msra.gmra.mrb[94].mxu0 %v3276_v57  ;;  %3690 = vmatmul.mubr.f32.vlgmr.msra.gmra.mrb[82].mxu1 %v3278_v11 }
 0x4b5   :  { %v4211_v6 = vpop.f32.mrb[92].mxu0  ;;  %v4246_v45 = vpop.f32.mrb[80].mxu1 }
 0x4b6   :  { %v4212_v24 = vpop.f32.mrb[93].mxu0  ;;  %v4247_v2 = vpop.f32.mrb[81].mxu1 }
 0x4b7   :  { %v4213_v34 = vadd.f32 %v4212_v24, %v4211_v6  ;;  %v4248_v17 = vadd.f32 %v4247_v2, %v4246_v45 }
 0x4b9   :  { %v3482_v61 = vadd.f32 %v4213_v34, %v3881_v16 }
 0x4bb   :  { %v3552_v15 = vadd.f32 %v4248_v17, %v3482_v61 }
 0x4d5   :  { %v4281_v54 = vpop.f32.mrb[94].mxu0  ;;  %v4316_v62 = vpop.f32.mrb[82].mxu1 }
 0x4d6   :  { %v4282_v37 = vpop.f32.mrb[95].mxu0  ;;  %v4317_v19 = vpop.f32.mrb[83].mxu1 }
 0x4d7   :  { %v4283_v53 = vadd.f32 %v4282_v37, %v4281_v54  ;;  %v4318_v1 = vadd.f32 %v4317_v19, %v4316_v62 }
 0x4d9   :  { %v3622_v35 = vadd.f32 %v4283_v53, %v3552_v15 }
 0x4db   :  { %v3692_v60 = vadd.f32 %v4318_v1, %v3622_v35 }
 0x4dd   :  { %3695 = vst [vmem:[%s6276_s9] sm:$0xff] %v3692_v60 }
 0x4de   :  { %3700 = vsyncpa [#allocation3], 1 }
 0x4df   :  { %3701 = vsyncpa [#allocation5], 1 }

</bundles_post_ra>
